<compile_context>
chip_gen: v7x
topology: tpu7x:2x2x1
jax: 0.10.0
libtpu: 0.0.40
codegen_flags: <defaults>
</compile_context>

<pallas_src>
import jax
import jax.numpy as jnp
import numpy as np
from jax.experimental import pallas as pl
from jax.experimental.pallas import tpu as pltpu


def _round_up(x, m):
    return ((x + m - 1) // m) * m


def _pick_time_chunk(T, target=8):
    """Largest divisor of T that is <= min(target, T//2) (keeps >=2 chunks when possible)."""
    if T <= 1:
        return max(T, 1)
    cap = max(1, min(target, T // 2))
    for c in range(cap, 0, -1):
        if T % c == 0:
            return c
    return 1


def _vmem_limit(est_bytes):
    return int(min(100 * 1024 * 1024, max(32 * 1024 * 1024, int(est_bytes * 1.3))))


# ----------------------------------------------------------------------------
# Fused multi-layer LSTM kernel, grid = (num_time_chunks,) marked "arbitrary".
#   inputs : emb (T*Bp, Ip) bf16 [chunked over time],
#            per layer: W_ih^T (in, 4Hp) bf16, W_hh^T (Hp, 4Hp) bf16, bias (1,4Hp) f32,
#            h0 (L, Bp, Hp) f32, c0 (L, Bp, Hp) f32
#   outputs: last-layer hidden states (T*Bp, Hp) bf16 [chunked], h_T, c_T (L, Bp, Hp)
# Gate order follows PyTorch: [i, f, g, o] (padded gate-blockwise to Hp).
# ----------------------------------------------------------------------------
def _make_fused_lstm_kernel(nlayers, C, Bp, Hp, num_chunks):
    def kernel(*refs):
        emb_ref = refs[0]
        layer_refs = refs[1:1 + 3 * nlayers]
        h0_ref = refs[1 + 3 * nlayers]
        c0_ref = refs[2 + 3 * nlayers]
        out_ref, hN_ref, cN_ref = refs[3 + 3 * nlayers:6 + 3 * nlayers]
        gx_sc, hseq_sc, h_sc, c_sc = refs[6 + 3 * nlayers:]

        chunk = pl.program_id(0)

        @pl.when(chunk == 0)
        def _init():
            h_sc[...] = h0_ref[...]
            c_sc[...] = c0_ref[...]

        def sigm(x):
            # sigmoid(x) = 0.5*(tanh(0.5*x)+1): single EUP op on the serial path.
            return 0.5 * (jnp.tanh(0.5 * x) + 1.0)

        for l in range(nlayers):
            w_ih_ref, w_hh_ref, b_ref = layer_refs[3 * l:3 * l + 3]

            # Hoisted input projection: one GEMM per (layer, chunk), off the
            # serial critical path.  Layer 0 reads the pipelined emb block;
            # later layers consume the previous layer's chunk from VMEM
            # (never round-tripped to HBM).
            if l == 0:
                xin = emb_ref[...]
            else:
                xin = hseq_sc[...].astype(jnp.bfloat16)
            gx_sc[...] = (jnp.dot(xin, w_ih_ref[...],
                                  preferred_element_type=jnp.float32)
                          + b_ref[...])

            last_layer = (l == nlayers - 1)

            # Recurrence: per step only h @ W_hh + precomputed gates.  W_hh is
            # consumed directly from its VMEM ref inside the dot (not hoisted
            # into a value -> no long vreg live range across the unrolled loop).
            def step(t, carry, l=l, w_hh_ref=w_hh_ref):
                row = pl.multiple_of(t * Bp, Bp)
                g = (gx_sc[pl.ds(row, Bp), :]
                     + jnp.dot(h_sc[l].astype(jnp.bfloat16), w_hh_ref[...],
                               preferred_element_type=jnp.float32))
                # 128-lane-aligned gate slices (Hp is a multiple of 128).
                i = sigm(g[:, 0 * Hp:1 * Hp])
                f = sigm(g[:, 1 * Hp:2 * Hp])
                gg = jnp.tanh(g[:, 2 * Hp:3 * Hp])
                o = sigm(g[:, 3 * Hp:4 * Hp])
                c_new = f * c_sc[l] + i * gg
                h_new = o * jnp.tanh(c_new)
                c_sc[l] = c_new
                h_sc[l] = h_new
                # Full-vreg f32 store (8 sublanes); the bf16 cast happens once
                # per chunk below (no per-step masked bf16 stores on v5e).
                hseq_sc[pl.ds(row, Bp), :] = h_new
                return carry

            # Trip count == chunk size (<= 8), so full unroll stays bounded.
            jax.lax.fori_loop(0, C, step, 0, unroll=True)

            if last_layer:
                # One lane-dense bulk cast+store per chunk into the pipelined
                # HBM-bound output block.
                out_ref[...] = hseq_sc[...].astype(out_ref.dtype)

        @pl.when(chunk == num_chunks - 1)
        def _fin():
            hN_ref[...] = h_sc[...]
            cN_ref[...] = c_sc[...]

    return kernel


def fused_lstm(emb2, layer_args, h0p, c0p, *, nlayers, T, Bp, Hp, Ip):
    H4 = 4 * Hp
    C = _pick_time_chunk(T)
    num_chunks = T // C
    kernel = _make_fused_lstm_kernel(nlayers, C, Bp, Hp, num_chunks)

    in_specs = [pl.BlockSpec((C * Bp, Ip), lambda c: (c, 0))]
    for l in range(nlayers):
        in_dim = Ip if l == 0 else Hp
        in_specs += [
            pl.BlockSpec((in_dim, H4), lambda c: (0, 0)),
            pl.BlockSpec((Hp, H4), lambda c: (0, 0)),
            pl.BlockSpec((1, H4), lambda c: (0, 0)),
        ]
    in_specs += [
        pl.BlockSpec((nlayers, Bp, Hp), lambda c: (0, 0, 0)),
        pl.BlockSpec((nlayers, Bp, Hp), lambda c: (0, 0, 0)),
    ]
    out_specs = (
        pl.BlockSpec((C * Bp, Hp), lambda c: (c, 0)),
        pl.BlockSpec((nlayers, Bp, Hp), lambda c: (0, 0, 0)),
        pl.BlockSpec((nlayers, Bp, Hp), lambda c: (0, 0, 0)),
    )
    out_shape = (
        jax.ShapeDtypeStruct((T * Bp, Hp), jnp.bfloat16),   # all last-layer h_t
        jax.ShapeDtypeStruct((nlayers, Bp, Hp), jnp.float32),
        jax.ShapeDtypeStruct((nlayers, Bp, Hp), jnp.float32),
    )
    scratch_shapes = [
        pltpu.VMEM((C * Bp, H4), jnp.float32),       # per-chunk input-projection gates
        pltpu.VMEM((C * Bp, Hp), jnp.float32),       # per-chunk inter-layer hidden states
        pltpu.VMEM((nlayers, Bp, Hp), jnp.float32),  # persistent h carries
        pltpu.VMEM((nlayers, Bp, Hp), jnp.float32),  # persistent c carries
    ]

    weight_bytes = sum(int(np.prod(a.shape)) * a.dtype.itemsize for a in layer_args)
    est_vmem = (2 * (C * Bp * Ip * 2)                    # emb block, double-buffered
                + 2 * weight_bytes                       # resident weights (conservative x2)
                + 2 * 4 * (nlayers * Bp * Hp * 4)        # h0/c0/hN/cN blocks
                + 2 * (C * Bp * Hp * 2)                  # out block, double-buffered
                + C * Bp * H4 * 4 + C * Bp * Hp * 4      # gx + hseq scratch
                + 2 * nlayers * Bp * Hp * 4)             # h/c scratch

    flops = 0
    for l in range(nlayers):
        in_dim = Ip if l == 0 else Hp
        flops += 2 * T * Bp * in_dim * H4 + 2 * T * Bp * Hp * H4
    cost = pl.CostEstimate(
        flops=int(flops),
        transcendentals=int(nlayers * T * Bp * 5 * Hp),
        bytes_accessed=int(T * Bp * Ip * 2 + weight_bytes
                           + 4 * nlayers * Bp * Hp * 4 + T * Bp * Hp * 2),
    )

    return pl.pallas_call(
        kernel,
        grid=(num_chunks,),
        out_shape=out_shape,
        in_specs=in_specs,
        out_specs=out_specs,
        scratch_shapes=scratch_shapes,
        compiler_params=pltpu.CompilerParams(
            dimension_semantics=("arbitrary",),
            vmem_limit_bytes=_vmem_limit(est_vmem)),
        cost_estimate=cost,
    )(emb2, *layer_args, h0p, c0p)


# ----------------------------------------------------------------------------
# Decoder (nn.Linear): tiled GEMM, vocab-outer grid so the weight is streamed
# from HBM exactly once; both axes "parallel" (megacore-shardable).
# ----------------------------------------------------------------------------
def _decoder_kernel(x_ref, w_ref, b_ref, o_ref):
    o_ref[...] = (jnp.dot(x_ref[...].astype(jnp.bfloat16), w_ref[...],
                          preferred_element_type=jnp.float32)
                  + b_ref[...])


def decoder_linear(x, w_t, b):
    """x: (N, Hp) bf16 with N % 8 == 0; w_t: (Hp, Vp) bf16, Vp % 128 == 0; b: (1, Vp) f32."""
    N, Hp = x.shape
    Vp = w_t.shape[1]
    tn = min(N, 512)      # larger row tile -> fewer weight re-reads if rows > vocab tiles
    tv = min(Vp, 512)
    Np = _round_up(N, tn)
    Vq = _round_up(Vp, tv)
    if Np != N:
        x = jnp.pad(x, ((0, Np - N), (0, 0)))
    if Vq != Vp:
        w_t = jnp.pad(w_t, ((0, 0), (0, Vq - Vp)))
        b = jnp.pad(b, ((0, 0), (0, Vq - Vp)))

    est_vmem = 2 * (tn * Hp * 2 + Hp * tv * 2 + tv * 4 + tn * tv * 4)
    out = pl.pallas_call(
        _decoder_kernel,
        out_shape=jax.ShapeDtypeStruct((Np, Vq), jnp.float32),
        # vocab tiles outer, row tiles inner: weight block index only changes
        # with the outer axis, so the (Hp x Vp) weight streams from HBM once.
        grid=(Vq // tv, Np // tn),
        in_specs=[
            pl.BlockSpec((tn, Hp), lambda j, i: (i, 0)),
            pl.BlockSpec((Hp, tv), lambda j, i: (0, j)),
            pl.BlockSpec((1, tv), lambda j, i: (0, j)),
        ],
        out_specs=pl.BlockSpec((tn, tv), lambda j, i: (i, j)),
        compiler_params=pltpu.CompilerParams(
            dimension_semantics=("parallel", "parallel"),
            vmem_limit_bytes=_vmem_limit(est_vmem)),
        cost_estimate=pl.CostEstimate(
            flops=int(2 * Np * Hp * Vq),
            transcendentals=0,
            bytes_accessed=int(Np * Hp * 2 + Hp * Vq * 2 + Np * Vq * 4)),
    )(x, w_t, b)
    return out[:N, :Vp]


# ----------------------------------------------------------------------------
# One-time parameter preparation (hoisted out of the per-call forward).
# ----------------------------------------------------------------------------
def prepare_params(params):
    ntoken, ninp = params["encoder_w"].shape
    V, H = params["decoder_w"].shape
    nlayers = len(params["lstm"])
    Hp = _round_up(H, 128)
    Ip = _round_up(ninp, 128)
    Vp = _round_up(V, 128)

    enc = jnp.pad(params["encoder_w"],
                  ((0, 0), (0, Ip - ninp))).astype(jnp.bfloat16)

    # Pad weights gate-blockwise (padded hidden units stay exactly zero since
    # weights/biases and h0/c0 pads are zero -> g=tanh(0)=0 -> c_pad=h_pad=0).
    layer_args = []
    for l in range(nlayers):
        w_ih, w_hh, b_ih, b_hh = params["lstm"][l]
        in_dim = w_ih.shape[1]
        in_pad = Ip if l == 0 else Hp
        w_ih4 = jnp.pad(w_ih.reshape(4, H, in_dim),
                        ((0, 0), (0, Hp - H), (0, in_pad - in_dim)))
        w_hh4 = jnp.pad(w_hh.reshape(4, H, H),
                        ((0, 0), (0, Hp - H), (0, Hp - H)))
        bias4 = jnp.pad((b_ih + b_hh).reshape(4, H), ((0, 0), (0, Hp - H)))
        layer_args.append((
            w_ih4.reshape(4 * Hp, in_pad).T.astype(jnp.bfloat16),   # (in_pad, 4Hp)
            w_hh4.reshape(4 * Hp, Hp).T.astype(jnp.bfloat16),       # (Hp, 4Hp)
            bias4.reshape(1, 4 * Hp).astype(jnp.float32),
        ))

    w_dec_t = jnp.pad(params["decoder_w"],
                      ((0, Vp - V), (0, Hp - H))).T.astype(jnp.bfloat16)  # (Hp, Vp)
    b_dec = jnp.pad(params["decoder_b"], (0, Vp - V)).reshape(1, Vp).astype(jnp.float32)

    prep = {"encoder_w": enc, "lstm": layer_args,
            "decoder_w_t": w_dec_t, "decoder_b": b_dec}
    meta = {"ntoken": ntoken, "ninp": ninp, "nhid": H, "nvocab": V,
            "nlayers": nlayers, "Hp": Hp, "Ip": Ip, "Vp": Vp}
    return prep, meta


# ----------------------------------------------------------------------------
# Full RNNModel forward (LSTM variant, eval-mode dropout = identity)
# ----------------------------------------------------------------------------
def rnn_model_forward(prep, tokens, hidden, meta):
    h0_all, c0_all = hidden                         # (nlayers, B, H) each
    nlayers, B, H = h0_all.shape
    T = tokens.shape[0]
    Hp, Ip, Vp, V = meta["Hp"], meta["Ip"], meta["Vp"], meta["nvocab"]

    Bp = _round_up(B, 8)       # sublane padding (8 f32 rows per vreg)

    # Encoder (embedding lookup) — plain-JAX gather glue.
    # TODO(synk): training-mode dropout (RNG mask) not implemented; eval-mode identity only.
    emb = jnp.take(prep["encoder_w"], tokens, axis=0)      # (T, B, Ip) bf16
    emb = jnp.pad(emb, ((0, 0), (0, Bp - B), (0, 0)))
    emb2 = emb.reshape(T * Bp, Ip)

    layer_args = [w for triple in prep["lstm"] for w in triple]

    h0p = jnp.pad(h0_all, ((0, 0), (0, Bp - B), (0, Hp - H)))
    c0p = jnp.pad(c0_all, ((0, 0), (0, Bp - B), (0, Hp - H)))

    out2, hNp, cNp = fused_lstm(emb2, layer_args, h0p, c0p,
                                nlayers=nlayers, T=T, Bp=Bp, Hp=Hp, Ip=Ip)

    decoded_p = decoder_linear(out2, prep["decoder_w_t"], prep["decoder_b"])
    decoded = decoded_p.reshape(T, Bp, Vp)[:, :B, :V]

    return decoded, (hNp[:, :B, :H], cNp[:, :B, :H])


# ----------------------------------------------------------------------------
# Pure-JAX f32 reference (for correctness check)
# ----------------------------------------------------------------------------
def rnn_model_forward_ref(params, tokens, hidden):
    h0_all, c0_all = hidden
    emb = jnp.take(params["encoder_w"], tokens, axis=0)
    x = emb
    hN, cN = [], []
    for l in range(len(params["lstm"])):
        w_ih, w_hh, b_ih, b_hh = params["lstm"][l]
        H = w_hh.shape[1]

        def cell(carry, x_t):
            h, c = carry
            gates = x_t @ w_ih.T + b_ih + h @ w_hh.T + b_hh
            i = jax.nn.sigmoid(gates[:, 0 * H:1 * H])
            f = jax.nn.sigmoid(gates[:, 1 * H:2 * H])
            g = jnp.tanh(gates[:, 2 * H:3 * H])
            o = jax.nn.sigmoid(gates[:, 3 * H:4 * H])
            c_new = f * c + i * g
            h_new = o * jnp.tanh(c_new)
            return (h_new, c_new), h_new

        (hT, cT), outs = jax.lax.scan(cell, (h0_all[l], c0_all[l]), x)
        x = outs
        hN.append(hT)
        cN.append(cT)
    T, B, H = x.shape
    decoded = x.reshape(T * B, H) @ params["decoder_w"].T + params["decoder_b"]
    return decoded.reshape(T, B, -1), (jnp.stack(hN), jnp.stack(cN))


if __name__ == "__main__":
    ntoken, ninp, nhid, nlayers = 32, 32, 32, 2
    seq_len, batch = 8, 2

    key = jax.random.PRNGKey(0)
    keys = jax.random.split(key, 3 + 4 * nlayers)
    initrange = 0.1
    stdv = 1.0 / np.sqrt(nhid)

    lstm_params = []
    kidx = 3
    for l in range(nlayers):
        in_size = ninp if l == 0 else nhid
        w_ih = jax.random.uniform(keys[kidx + 0], (4 * nhid, in_size),
                                  minval=-stdv, maxval=stdv, dtype=jnp.float32)
        w_hh = jax.random.uniform(keys[kidx + 1], (4 * nhid, nhid),
                                  minval=-stdv, maxval=stdv, dtype=jnp.float32)
        b_ih = jax.random.uniform(keys[kidx + 2], (4 * nhid,),
                                  minval=-stdv, maxval=stdv, dtype=jnp.float32)
        b_hh = jax.random.uniform(keys[kidx + 3], (4 * nhid,),
                                  minval=-stdv, maxval=stdv, dtype=jnp.float32)
        lstm_params.append((w_ih, w_hh, b_ih, b_hh))
        kidx += 4

    params = {
        "encoder_w": jax.random.uniform(keys[0], (ntoken, ninp),
                                        minval=-initrange, maxval=initrange,
                                        dtype=jnp.float32),
        "decoder_w": jax.random.uniform(keys[1], (ntoken, nhid),
                                        minval=-initrange, maxval=initrange,
                                        dtype=jnp.float32),
        "decoder_b": jnp.zeros((ntoken,), jnp.float32),
        "lstm": lstm_params,
    }

    tokens = jax.random.randint(keys[2], (seq_len, batch), 0, ntoken,
                                dtype=jnp.int32)
    hidden = (jnp.zeros((nlayers, batch, nhid), jnp.float32),
              jnp.zeros((nlayers, batch, nhid), jnp.float32))

    # One-time weight reformatting, hoisted out of the per-call forward.
    prep, meta = prepare_params(params)
    prep = jax.tree_util.tree_map(jax.block_until_ready, prep)

    forward = jax.jit(lambda p, t, h: rnn_model_forward(p, t, h, meta))
    decoded, (hN, cN) = forward(prep, tokens, hidden)
    decoded = jax.block_until_ready(decoded)
    hN = jax.block_until_ready(hN)
    cN = jax.block_until_ready(cN)

    # Sanity-check against pure-JAX f32 reference (kernel uses bf16 MXU inputs,
    # so tolerances are relaxed accordingly — intentional inference precision).
    dec_ref, (hN_ref, cN_ref) = rnn_model_forward_ref(params, tokens, hidden)
    np.testing.assert_allclose(np.asarray(decoded), np.asarray(dec_ref),
                               rtol=2e-2, atol=1e-2)
    np.testing.assert_allclose(np.asarray(hN), np.asarray(hN_ref),
                               rtol=2e-2, atol=1e-2)
    np.testing.assert_allclose(np.asarray(cN), np.asarray(cN_ref),
                               rtol=2e-2, atol=1e-2)

    assert decoded.shape == (seq_len, batch, ntoken)
    assert hN.shape == (nlayers, batch, nhid) and cN.shape == (nlayers, batch, nhid)
    print("KERNEL_OK")
</pallas_src>

<mosaic_0001>
module attributes {stable_mosaic.version = 11 : i64} {
  func.func @_decoder_kernel(%arg0: i32, %arg1: i32, %arg2: memref<64x128xbf16, #tpu.memory_space<vmem>>, %arg3: memref<128x128xbf16, #tpu.memory_space<vmem>>, %arg4: memref<1x128xf32, #tpu.memory_space<vmem>>, %arg5: memref<64x128xf32, #tpu.memory_space<vmem>>) attributes {dimension_semantics = [#tpu.dimension_semantics<parallel>, #tpu.dimension_semantics<parallel>], iteration_bounds = array<i64: 1, 1>, scalar_prefetch = 0 : i64, scratch_operands = 0 : i64, tpu.core_type = #tpu.core_type<tc>, window_params = [{transform_indices = @transform_0, window_bounds = array<i64: 64, 128>}, {transform_indices = @transform_1, window_bounds = array<i64: 128, 128>}, {transform_indices = @transform_2, window_bounds = array<i64: 1, 128>}, {transform_indices = @transform_3, window_bounds = array<i64: 64, 128>}]} {
    %c0 = arith.constant 0 : index
    %c0_0 = arith.constant 0 : index
    %0 = vector.load %arg2[%c0, %c0_0] : memref<64x128xbf16, #tpu.memory_space<vmem>>, vector<64x128xbf16>
    %c0_1 = arith.constant 0 : index
    %c0_2 = arith.constant 0 : index
    %1 = vector.load %arg3[%c0_1, %c0_2] : memref<128x128xbf16, #tpu.memory_space<vmem>>, vector<128x128xbf16>
    %cst = arith.constant dense<0.000000e+00> : vector<64x128xf32>
    %2 = tpu.matmul %0, %1, %cst {dimension_numbers = #tpu.dot_dimension_numbers<[1], [0], [0], [1], [0, 0, 1, 1], [], []>} : vector<64x128xbf16>, vector<128x128xbf16>, vector<64x128xf32> -> vector<64x128xf32>
    %c0_3 = arith.constant 0 : index
    %c0_4 = arith.constant 0 : index
    %3 = vector.load %arg4[%c0_3, %c0_4] : memref<1x128xf32, #tpu.memory_space<vmem>>, vector<1x128xf32>
    %4 = vector.broadcast %3 : vector<1x128xf32> to vector<64x128xf32>
    %5 = arith.addf %2, %4 : vector<64x128xf32>
    %c0_5 = arith.constant 0 : index
    %c0_6 = arith.constant 0 : index
    %6 = vector.load %arg5[%c0_5, %c0_6] : memref<64x128xf32, #tpu.memory_space<vmem>>, vector<64x128xf32>
    tpu.vector_store %arg5[%c0_5, %c0_6], %5 {strides = array<i32>} : memref<64x128xf32, #tpu.memory_space<vmem>>, vector<64x128xf32>,
    return
  }
  func.func @transform_0(%arg0: i32, %arg1: i32) -> (i32, i32) {
    %c0_i32 = arith.constant 0 : i32
    %c0_i32_0 = arith.constant 0 : i32
    return %arg1, %c0_i32 : i32, i32
  }
  func.func @transform_1(%arg0: i32, %arg1: i32) -> (i32, i32) {
    %c0_i32 = arith.constant 0 : i32
    %c0_i32_0 = arith.constant 0 : i32
    return %c0_i32, %arg0 : i32, i32
  }
  func.func @transform_2(%arg0: i32, %arg1: i32) -> (i32, i32) {
    %c0_i32 = arith.constant 0 : i32
    %c0_i32_0 = arith.constant 0 : i32
    return %c0_i32, %arg0 : i32, i32
  }
  func.func @transform_3(%arg0: i32, %arg1: i32) -> (i32, i32) {
    %c0_i32 = arith.constant 0 : i32
    return %arg1, %arg0 : i32, i32
  }
}

module attributes {stable_mosaic.version = 11 : i64} {
  func.func @kernel(%arg0: i32, %arg1: memref<32x128xbf16, #tpu.memory_space<vmem>>, %arg2: memref<128x512xbf16, #tpu.memory_space<vmem>>, %arg3: memref<128x512xbf16, #tpu.memory_space<vmem>>, %arg4: memref<1x512xf32, #tpu.memory_space<vmem>>, %arg5: memref<128x512xbf16, #tpu.memory_space<vmem>>, %arg6: memref<128x512xbf16, #tpu.memory_space<vmem>>, %arg7: memref<1x512xf32, #tpu.memory_space<vmem>>, %arg8: memref<2x8x128xf32, #tpu.memory_space<vmem>>, %arg9: memref<2x8x128xf32, #tpu.memory_space<vmem>>, %arg10: memref<32x128xbf16, #tpu.memory_space<vmem>>, %arg11: memref<2x8x128xf32, #tpu.memory_space<vmem>>, %arg12: memref<2x8x128xf32, #tpu.memory_space<vmem>>, %arg13: memref<32x512xf32, #tpu.memory_space<vmem>>, %arg14: memref<32x128xf32, #tpu.memory_space<vmem>>, %arg15: memref<2x8x128xf32, #tpu.memory_space<vmem>>, %arg16: memref<2x8x128xf32, #tpu.memory_space<vmem>>) attributes {dimension_semantics = [#tpu.dimension_semantics<arbitrary>], iteration_bounds = array<i64: 2>, scalar_prefetch = 0 : i64, scratch_operands = 4 : i64, tpu.core_type = #tpu.core_type<tc>, window_params = [{transform_indices = @transform_0, window_bounds = array<i64: 32, 128>}, {pipeline_mode = #tpu.pipeline_mode<synchronous>, transform_indices = @transform_1, window_bounds = array<i64: 128, 512>}, {pipeline_mode = #tpu.pipeline_mode<synchronous>, transform_indices = @transform_2, window_bounds = array<i64: 128, 512>}, {pipeline_mode = #tpu.pipeline_mode<synchronous>, transform_indices = @transform_3, window_bounds = array<i64: 1, 512>}, {pipeline_mode = #tpu.pipeline_mode<synchronous>, transform_indices = @transform_4, window_bounds = array<i64: 128, 512>}, {pipeline_mode = #tpu.pipeline_mode<synchronous>, transform_indices = @transform_5, window_bounds = array<i64: 128, 512>}, {pipeline_mode = #tpu.pipeline_mode<synchronous>, transform_indices = @transform_6, window_bounds = array<i64: 1, 512>}, {pipeline_mode = #tpu.pipeline_mode<synchronous>, transform_indices = @transform_7, window_bounds = array<i64: 2, 8, 128>}, {pipeline_mode = #tpu.pipeline_mode<synchronous>, transform_indices = @transform_8, window_bounds = array<i64: 2, 8, 128>}, {transform_indices = @transform_9, window_bounds = array<i64: 32, 128>}, {pipeline_mode = #tpu.pipeline_mode<synchronous>, transform_indices = @transform_10, window_bounds = array<i64: 2, 8, 128>}, {pipeline_mode = #tpu.pipeline_mode<synchronous>, transform_indices = @transform_11, window_bounds = array<i64: 2, 8, 128>}]} {
    %c0_i32 = arith.constant 0 : i32
    %0 = arith.cmpi eq, %arg0, %c0_i32 : i32
    %1 = arith.extui %0 : i1 to i32
    %c0_i32_0 = arith.constant 0 : i32
    %2 = arith.cmpi ne, %1, %c0_i32_0 : i32
    scf.if %2 {
      %c0_243 = arith.constant 0 : index
      %c0_244 = arith.constant 0 : index
      %c0_245 = arith.constant 0 : index
      %432 = vector.load %arg8[%c0_243, %c0_244, %c0_245] : memref<2x8x128xf32, #tpu.memory_space<vmem>>, vector<2x8x128xf32>
      %c0_246 = arith.constant 0 : index
      %c0_247 = arith.constant 0 : index
      %c0_248 = arith.constant 0 : index
      %433 = vector.load %arg15[%c0_246, %c0_247, %c0_248] : memref<2x8x128xf32, #tpu.memory_space<vmem>>, vector<2x8x128xf32>
      tpu.vector_store %arg15[%c0_246, %c0_247, %c0_248], %432 {strides = array<i32>} : memref<2x8x128xf32, #tpu.memory_space<vmem>>, vector<2x8x128xf32>,
      %c0_249 = arith.constant 0 : index
      %c0_250 = arith.constant 0 : index
      %c0_251 = arith.constant 0 : index
      %434 = vector.load %arg9[%c0_249, %c0_250, %c0_251] : memref<2x8x128xf32, #tpu.memory_space<vmem>>, vector<2x8x128xf32>
      %c0_252 = arith.constant 0 : index
      %c0_253 = arith.constant 0 : index
      %c0_254 = arith.constant 0 : index
      %435 = vector.load %arg16[%c0_252, %c0_253, %c0_254] : memref<2x8x128xf32, #tpu.memory_space<vmem>>, vector<2x8x128xf32>
      tpu.vector_store %arg16[%c0_252, %c0_253, %c0_254], %434 {strides = array<i32>} : memref<2x8x128xf32, #tpu.memory_space<vmem>>, vector<2x8x128xf32>,
    } else {
    }
    %c0 = arith.constant 0 : index
    %c0_1 = arith.constant 0 : index
    %3 = vector.load %arg1[%c0, %c0_1] : memref<32x128xbf16, #tpu.memory_space<vmem>>, vector<32x128xbf16>
    %c0_2 = arith.constant 0 : index
    %c0_3 = arith.constant 0 : index
    %4 = vector.load %arg2[%c0_2, %c0_3] : memref<128x512xbf16, #tpu.memory_space<vmem>>, vector<128x512xbf16>
    %cst = arith.constant dense<0.000000e+00> : vector<32x512xf32>
    %5 = tpu.matmul %3, %4, %cst {dimension_numbers = #tpu.dot_dimension_numbers<[1], [0], [0], [1], [0, 0, 1, 1], [], []>} : vector<32x128xbf16>, vector<128x512xbf16>, vector<32x512xf32> -> vector<32x512xf32>
    %c0_4 = arith.constant 0 : index
    %c0_5 = arith.constant 0 : index
    %6 = vector.load %arg4[%c0_4, %c0_5] : memref<1x512xf32, #tpu.memory_space<vmem>>, vector<1x512xf32>
    %7 = vector.broadcast %6 : vector<1x512xf32> to vector<32x512xf32>
    %8 = arith.addf %5, %7 : vector<32x512xf32>
    %c0_6 = arith.constant 0 : index
    %c0_7 = arith.constant 0 : index
    %9 = vector.load %arg13[%c0_6, %c0_7] : memref<32x512xf32, #tpu.memory_space<vmem>>, vector<32x512xf32>
    tpu.vector_store %arg13[%c0_6, %c0_7], %8 {strides = array<i32>} : memref<32x512xf32, #tpu.memory_space<vmem>>, vector<32x512xf32>,
    %c0_i32_8 = arith.constant 0 : i32
    %c8_i32 = arith.constant 8 : i32
    %10 = arith.muli %c0_i32_8, %c8_i32 : i32
    %11 = tpu.assume_multiple %10, 8 : i32
    %12 = arith.index_cast %11 : i32 to index
    %c0_9 = arith.constant 0 : index
    %13 = vector.load %arg13[%12, %c0_9] : memref<32x512xf32, #tpu.memory_space<vmem>>, vector<8x512xf32>
    %c0_10 = arith.constant 0 : index
    %c0_11 = arith.constant 0 : index
    %c0_12 = arith.constant 0 : index
    %14 = vector.load %arg15[%c0_10, %c0_11, %c0_12] : memref<2x8x128xf32, #tpu.memory_space<vmem>>, vector<1x8x128xf32>
    %15 = vector.shape_cast %14 : vector<1x8x128xf32> to vector<8x128xf32>
    %16 = arith.truncf %15 : vector<8x128xf32> to vector<8x128xbf16>
    %c0_13 = arith.constant 0 : index
    %c0_14 = arith.constant 0 : index
    %17 = vector.load %arg3[%c0_13, %c0_14] : memref<128x512xbf16, #tpu.memory_space<vmem>>, vector<128x512xbf16>
    %cst_15 = arith.constant dense<0.000000e+00> : vector<8x512xf32>
    %18 = tpu.matmul %16, %17, %cst_15 {dimension_numbers = #tpu.dot_dimension_numbers<[1], [0], [0], [1], [0, 0, 1, 1], [], []>} : vector<8x128xbf16>, vector<128x512xbf16>, vector<8x512xf32> -> vector<8x512xf32>
    %19 = arith.addf %13, %18 : vector<8x512xf32>
    %20 = vector.extract_strided_slice %19 {offsets = [0, 0], sizes = [8, 128], strides = [1, 1]} : vector<8x512xf32> to vector<8x128xf32>
    %cst_16 = arith.constant 5.000000e-01 : f32
    %21 = vector.broadcast %cst_16 : f32 to vector<8x128xf32>
    %22 = arith.mulf %21, %20 : vector<8x128xf32>
    %23 = math.tanh %22 : vector<8x128xf32>
    %cst_17 = arith.constant 1.000000e+00 : f32
    %24 = vector.broadcast %cst_17 : f32 to vector<8x128xf32>
    %25 = arith.addf %23, %24 : vector<8x128xf32>
    %cst_18 = arith.constant 5.000000e-01 : f32
    %26 = vector.broadcast %cst_18 : f32 to vector<8x128xf32>
    %27 = arith.mulf %26, %25 : vector<8x128xf32>
    %28 = vector.extract_strided_slice %19 {offsets = [0, 128], sizes = [8, 128], strides = [1, 1]} : vector<8x512xf32> to vector<8x128xf32>
    %cst_19 = arith.constant 5.000000e-01 : f32
    %29 = vector.broadcast %cst_19 : f32 to vector<8x128xf32>
    %30 = arith.mulf %29, %28 : vector<8x128xf32>
    %31 = math.tanh %30 : vector<8x128xf32>
    %cst_20 = arith.constant 1.000000e+00 : f32
    %32 = vector.broadcast %cst_20 : f32 to vector<8x128xf32>
    %33 = arith.addf %31, %32 : vector<8x128xf32>
    %cst_21 = arith.constant 5.000000e-01 : f32
    %34 = vector.broadcast %cst_21 : f32 to vector<8x128xf32>
    %35 = arith.mulf %34, %33 : vector<8x128xf32>
    %36 = vector.extract_strided_slice %19 {offsets = [0, 256], sizes = [8, 128], strides = [1, 1]} : vector<8x512xf32> to vector<8x128xf32>
    %37 = math.tanh %36 : vector<8x128xf32>
    %38 = vector.extract_strided_slice %19 {offsets = [0, 384], sizes = [8, 128], strides = [1, 1]} : vector<8x512xf32> to vector<8x128xf32>
    %cst_22 = arith.constant 5.000000e-01 : f32
    %39 = vector.broadcast %cst_22 : f32 to vector<8x128xf32>
    %40 = arith.mulf %39, %38 : vector<8x128xf32>
    %41 = math.tanh %40 : vector<8x128xf32>
    %cst_23 = arith.constant 1.000000e+00 : f32
    %42 = vector.broadcast %cst_23 : f32 to vector<8x128xf32>
    %43 = arith.addf %41, %42 : vector<8x128xf32>
    %cst_24 = arith.constant 5.000000e-01 : f32
    %44 = vector.broadcast %cst_24 : f32 to vector<8x128xf32>
    %45 = arith.mulf %44, %43 : vector<8x128xf32>
    %c0_25 = arith.constant 0 : index
    %c0_26 = arith.constant 0 : index
    %c0_27 = arith.constant 0 : index
    %46 = vector.load %arg16[%c0_25, %c0_26, %c0_27] : memref<2x8x128xf32, #tpu.memory_space<vmem>>, vector<1x8x128xf32>
    %47 = vector.shape_cast %46 : vector<1x8x128xf32> to vector<8x128xf32>
    %48 = arith.mulf %35, %47 : vector<8x128xf32>
    %49 = arith.mulf %27, %37 : vector<8x128xf32>
    %50 = arith.addf %48, %49 : vector<8x128xf32>
    %51 = math.tanh %50 : vector<8x128xf32>
    %52 = arith.mulf %45, %51 : vector<8x128xf32>
    %c0_28 = arith.constant 0 : index
    %c0_29 = arith.constant 0 : index
    %c0_30 = arith.constant 0 : index
    %53 = vector.load %arg16[%c0_28, %c0_29, %c0_30] : memref<2x8x128xf32, #tpu.memory_space<vmem>>, vector<1x8x128xf32>
    %54 = vector.shape_cast %53 : vector<1x8x128xf32> to vector<8x128xf32>
    %55 = vector.shape_cast %50 : vector<8x128xf32> to vector<1x8x128xf32>
    tpu.vector_store %arg16[%c0_28, %c0_29, %c0_30], %55 {strides = array<i32>} : memref<2x8x128xf32, #tpu.memory_space<vmem>>, vector<1x8x128xf32>,
    %c0_31 = arith.constant 0 : index
    %c0_32 = arith.constant 0 : index
    %c0_33 = arith.constant 0 : index
    %56 = vector.load %arg15[%c0_31, %c0_32, %c0_33] : memref<2x8x128xf32, #tpu.memory_space<vmem>>, vector<1x8x128xf32>
    %57 = vector.shape_cast %56 : vector<1x8x128xf32> to vector<8x128xf32>
    %58 = vector.shape_cast %52 : vector<8x128xf32> to vector<1x8x128xf32>
    tpu.vector_store %arg15[%c0_31, %c0_32, %c0_33], %58 {strides = array<i32>} : memref<2x8x128xf32, #tpu.memory_space<vmem>>, vector<1x8x128xf32>,
    %59 = arith.index_cast %11 : i32 to index
    %c0_34 = arith.constant 0 : index
    %60 = vector.load %arg14[%59, %c0_34] : memref<32x128xf32, #tpu.memory_space<vmem>>, vector<8x128xf32>
    tpu.vector_store %arg14[%59, %c0_34], %52 {strides = array<i32>} : memref<32x128xf32, #tpu.memory_space<vmem>>, vector<8x128xf32>,
    %c1_i32 = arith.constant 1 : i32
    %c8_i32_35 = arith.constant 8 : i32
    %61 = arith.muli %c1_i32, %c8_i32_35 : i32
    %62 = tpu.assume_multiple %61, 8 : i32
    %63 = arith.index_cast %62 : i32 to index
    %c0_36 = arith.constant 0 : index
    %64 = vector.load %arg13[%63, %c0_36] : memref<32x512xf32, #tpu.memory_space<vmem>>, vector<8x512xf32>
    %c0_37 = arith.constant 0 : index
    %c0_38 = arith.constant 0 : index
    %c0_39 = arith.constant 0 : index
    %65 = vector.load %arg15[%c0_37, %c0_38, %c0_39] : memref<2x8x128xf32, #tpu.memory_space<vmem>>, vector<1x8x128xf32>
    %66 = vector.shape_cast %65 : vector<1x8x128xf32> to vector<8x128xf32>
    %67 = arith.truncf %66 : vector<8x128xf32> to vector<8x128xbf16>
    %c0_40 = arith.constant 0 : index
    %c0_41 = arith.constant 0 : index
    %68 = vector.load %arg3[%c0_40, %c0_41] : memref<128x512xbf16, #tpu.memory_space<vmem>>, vector<128x512xbf16>
    %cst_42 = arith.constant dense<0.000000e+00> : vector<8x512xf32>
    %69 = tpu.matmul %67, %68, %cst_42 {dimension_numbers = #tpu.dot_dimension_numbers<[1], [0], [0], [1], [0, 0, 1, 1], [], []>} : vector<8x128xbf16>, vector<128x512xbf16>, vector<8x512xf32> -> vector<8x512xf32>
    %70 = arith.addf %64, %69 : vector<8x512xf32>
    %71 = vector.extract_strided_slice %70 {offsets = [0, 0], sizes = [8, 128], strides = [1, 1]} : vector<8x512xf32> to vector<8x128xf32>
    %cst_43 = arith.constant 5.000000e-01 : f32
    %72 = vector.broadcast %cst_43 : f32 to vector<8x128xf32>
    %73 = arith.mulf %72, %71 : vector<8x128xf32>
    %74 = math.tanh %73 : vector<8x128xf32>
    %cst_44 = arith.constant 1.000000e+00 : f32
    %75 = vector.broadcast %cst_44 : f32 to vector<8x128xf32>
    %76 = arith.addf %74, %75 : vector<8x128xf32>
    %cst_45 = arith.constant 5.000000e-01 : f32
    %77 = vector.broadcast %cst_45 : f32 to vector<8x128xf32>
    %78 = arith.mulf %77, %76 : vector<8x128xf32>
    %79 = vector.extract_strided_slice %70 {offsets = [0, 128], sizes = [8, 128], strides = [1, 1]} : vector<8x512xf32> to vector<8x128xf32>
    %cst_46 = arith.constant 5.000000e-01 : f32
    %80 = vector.broadcast %cst_46 : f32 to vector<8x128xf32>
    %81 = arith.mulf %80, %79 : vector<8x128xf32>
    %82 = math.tanh %81 : vector<8x128xf32>
    %cst_47 = arith.constant 1.000000e+00 : f32
    %83 = vector.broadcast %cst_47 : f32 to vector<8x128xf32>
    %84 = arith.addf %82, %83 : vector<8x128xf32>
    %cst_48 = arith.constant 5.000000e-01 : f32
    %85 = vector.broadcast %cst_48 : f32 to vector<8x128xf32>
    %86 = arith.mulf %85, %84 : vector<8x128xf32>
    %87 = vector.extract_strided_slice %70 {offsets = [0, 256], sizes = [8, 128], strides = [1, 1]} : vector<8x512xf32> to vector<8x128xf32>
    %88 = math.tanh %87 : vector<8x128xf32>
    %89 = vector.extract_strided_slice %70 {offsets = [0, 384], sizes = [8, 128], strides = [1, 1]} : vector<8x512xf32> to vector<8x128xf32>
    %cst_49 = arith.constant 5.000000e-01 : f32
    %90 = vector.broadcast %cst_49 : f32 to vector<8x128xf32>
    %91 = arith.mulf %90, %89 : vector<8x128xf32>
    %92 = math.tanh %91 : vector<8x128xf32>
    %cst_50 = arith.constant 1.000000e+00 : f32
    %93 = vector.broadcast %cst_50 : f32 to vector<8x128xf32>
    %94 = arith.addf %92, %93 : vector<8x128xf32>
    %cst_51 = arith.constant 5.000000e-01 : f32
    %95 = vector.broadcast %cst_51 : f32 to vector<8x128xf32>
    %96 = arith.mulf %95, %94 : vector<8x128xf32>
    %c0_52 = arith.constant 0 : index
    %c0_53 = arith.constant 0 : index
    %c0_54 = arith.constant 0 : index
    %97 = vector.load %arg16[%c0_52, %c0_53, %c0_54] : memref<2x8x128xf32, #tpu.memory_space<vmem>>, vector<1x8x128xf32>
    %98 = vector.shape_cast %97 : vector<1x8x128xf32> to vector<8x128xf32>
    %99 = arith.mulf %86, %98 : vector<8x128xf32>
    %100 = arith.mulf %78, %88 : vector<8x128xf32>
    %101 = arith.addf %99, %100 : vector<8x128xf32>
    %102 = math.tanh %101 : vector<8x128xf32>
    %103 = arith.mulf %96, %102 : vector<8x128xf32>
    %c0_55 = arith.constant 0 : index
    %c0_56 = arith.constant 0 : index
    %c0_57 = arith.constant 0 : index
    %104 = vector.load %arg16[%c0_55, %c0_56, %c0_57] : memref<2x8x128xf32, #tpu.memory_space<vmem>>, vector<1x8x128xf32>
    %105 = vector.shape_cast %104 : vector<1x8x128xf32> to vector<8x128xf32>
    %106 = vector.shape_cast %101 : vector<8x128xf32> to vector<1x8x128xf32>
    tpu.vector_store %arg16[%c0_55, %c0_56, %c0_57], %106 {strides = array<i32>} : memref<2x8x128xf32, #tpu.memory_space<vmem>>, vector<1x8x128xf32>,
    %c0_58 = arith.constant 0 : index
    %c0_59 = arith.constant 0 : index
    %c0_60 = arith.constant 0 : index
    %107 = vector.load %arg15[%c0_58, %c0_59, %c0_60] : memref<2x8x128xf32, #tpu.memory_space<vmem>>, vector<1x8x128xf32>
    %108 = vector.shape_cast %107 : vector<1x8x128xf32> to vector<8x128xf32>
    %109 = vector.shape_cast %103 : vector<8x128xf32> to vector<1x8x128xf32>
    tpu.vector_store %arg15[%c0_58, %c0_59, %c0_60], %109 {strides = array<i32>} : memref<2x8x128xf32, #tpu.memory_space<vmem>>, vector<1x8x128xf32>,
    %110 = arith.index_cast %62 : i32 to index
    %c0_61 = arith.constant 0 : index
    %111 = vector.load %arg14[%110, %c0_61] : memref<32x128xf32, #tpu.memory_space<vmem>>, vector<8x128xf32>
    tpu.vector_store %arg14[%110, %c0_61], %103 {strides = array<i32>} : memref<32x128xf32, #tpu.memory_space<vmem>>, vector<8x128xf32>,
    %c2_i32 = arith.constant 2 : i32
    %c8_i32_62 = arith.constant 8 : i32
    %112 = arith.muli %c2_i32, %c8_i32_62 : i32
    %113 = tpu.assume_multiple %112, 8 : i32
    %114 = arith.index_cast %113 : i32 to index
    %c0_63 = arith.constant 0 : index
    %115 = vector.load %arg13[%114, %c0_63] : memref<32x512xf32, #tpu.memory_space<vmem>>, vector<8x512xf32>
    %c0_64 = arith.constant 0 : index
    %c0_65 = arith.constant 0 : index
    %c0_66 = arith.constant 0 : index
    %116 = vector.load %arg15[%c0_64, %c0_65, %c0_66] : memref<2x8x128xf32, #tpu.memory_space<vmem>>, vector<1x8x128xf32>
    %117 = vector.shape_cast %116 : vector<1x8x128xf32> to vector<8x128xf32>
    %118 = arith.truncf %117 : vector<8x128xf32> to vector<8x128xbf16>
    %c0_67 = arith.constant 0 : index
    %c0_68 = arith.constant 0 : index
    %119 = vector.load %arg3[%c0_67, %c0_68] : memref<128x512xbf16, #tpu.memory_space<vmem>>, vector<128x512xbf16>
    %cst_69 = arith.constant dense<0.000000e+00> : vector<8x512xf32>
    %120 = tpu.matmul %118, %119, %cst_69 {dimension_numbers = #tpu.dot_dimension_numbers<[1], [0], [0], [1], [0, 0, 1, 1], [], []>} : vector<8x128xbf16>, vector<128x512xbf16>, vector<8x512xf32> -> vector<8x512xf32>
    %121 = arith.addf %115, %120 : vector<8x512xf32>
    %122 = vector.extract_strided_slice %121 {offsets = [0, 0], sizes = [8, 128], strides = [1, 1]} : vector<8x512xf32> to vector<8x128xf32>
    %cst_70 = arith.constant 5.000000e-01 : f32
    %123 = vector.broadcast %cst_70 : f32 to vector<8x128xf32>
    %124 = arith.mulf %123, %122 : vector<8x128xf32>
    %125 = math.tanh %124 : vector<8x128xf32>
    %cst_71 = arith.constant 1.000000e+00 : f32
    %126 = vector.broadcast %cst_71 : f32 to vector<8x128xf32>
    %127 = arith.addf %125, %126 : vector<8x128xf32>
    %cst_72 = arith.constant 5.000000e-01 : f32
    %128 = vector.broadcast %cst_72 : f32 to vector<8x128xf32>
    %129 = arith.mulf %128, %127 : vector<8x128xf32>
    %130 = vector.extract_strided_slice %121 {offsets = [0, 128], sizes = [8, 128], strides = [1, 1]} : vector<8x512xf32> to vector<8x128xf32>
    %cst_73 = arith.constant 5.000000e-01 : f32
    %131 = vector.broadcast %cst_73 : f32 to vector<8x128xf32>
    %132 = arith.mulf %131, %130 : vector<8x128xf32>
    %133 = math.tanh %132 : vector<8x128xf32>
    %cst_74 = arith.constant 1.000000e+00 : f32
    %134 = vector.broadcast %cst_74 : f32 to vector<8x128xf32>
    %135 = arith.addf %133, %134 : vector<8x128xf32>
    %cst_75 = arith.constant 5.000000e-01 : f32
    %136 = vector.broadcast %cst_75 : f32 to vector<8x128xf32>
    %137 = arith.mulf %136, %135 : vector<8x128xf32>
    %138 = vector.extract_strided_slice %121 {offsets = [0, 256], sizes = [8, 128], strides = [1, 1]} : vector<8x512xf32> to vector<8x128xf32>
    %139 = math.tanh %138 : vector<8x128xf32>
    %140 = vector.extract_strided_slice %121 {offsets = [0, 384], sizes = [8, 128], strides = [1, 1]} : vector<8x512xf32> to vector<8x128xf32>
    %cst_76 = arith.constant 5.000000e-01 : f32
    %141 = vector.broadcast %cst_76 : f32 to vector<8x128xf32>
    %142 = arith.mulf %141, %140 : vector<8x128xf32>
    %143 = math.tanh %142 : vector<8x128xf32>
    %cst_77 = arith.constant 1.000000e+00 : f32
    %144 = vector.broadcast %cst_77 : f32 to vector<8x128xf32>
    %145 = arith.addf %143, %144 : vector<8x128xf32>
    %cst_78 = arith.constant 5.000000e-01 : f32
    %146 = vector.broadcast %cst_78 : f32 to vector<8x128xf32>
    %147 = arith.mulf %146, %145 : vector<8x128xf32>
    %c0_79 = arith.constant 0 : index
    %c0_80 = arith.constant 0 : index
    %c0_81 = arith.constant 0 : index
    %148 = vector.load %arg16[%c0_79, %c0_80, %c0_81] : memref<2x8x128xf32, #tpu.memory_space<vmem>>, vector<1x8x128xf32>
    %149 = vector.shape_cast %148 : vector<1x8x128xf32> to vector<8x128xf32>
    %150 = arith.mulf %137, %149 : vector<8x128xf32>
    %151 = arith.mulf %129, %139 : vector<8x128xf32>
    %152 = arith.addf %150, %151 : vector<8x128xf32>
    %153 = math.tanh %152 : vector<8x128xf32>
    %154 = arith.mulf %147, %153 : vector<8x128xf32>
    %c0_82 = arith.constant 0 : index
    %c0_83 = arith.constant 0 : index
    %c0_84 = arith.constant 0 : index
    %155 = vector.load %arg16[%c0_82, %c0_83, %c0_84] : memref<2x8x128xf32, #tpu.memory_space<vmem>>, vector<1x8x128xf32>
    %156 = vector.shape_cast %155 : vector<1x8x128xf32> to vector<8x128xf32>
    %157 = vector.shape_cast %152 : vector<8x128xf32> to vector<1x8x128xf32>
    tpu.vector_store %arg16[%c0_82, %c0_83, %c0_84], %157 {strides = array<i32>} : memref<2x8x128xf32, #tpu.memory_space<vmem>>, vector<1x8x128xf32>,
    %c0_85 = arith.constant 0 : index
    %c0_86 = arith.constant 0 : index
    %c0_87 = arith.constant 0 : index
    %158 = vector.load %arg15[%c0_85, %c0_86, %c0_87] : memref<2x8x128xf32, #tpu.memory_space<vmem>>, vector<1x8x128xf32>
    %159 = vector.shape_cast %158 : vector<1x8x128xf32> to vector<8x128xf32>
    %160 = vector.shape_cast %154 : vector<8x128xf32> to vector<1x8x128xf32>
    tpu.vector_store %arg15[%c0_85, %c0_86, %c0_87], %160 {strides = array<i32>} : memref<2x8x128xf32, #tpu.memory_space<vmem>>, vector<1x8x128xf32>,
    %161 = arith.index_cast %113 : i32 to index
    %c0_88 = arith.constant 0 : index
    %162 = vector.load %arg14[%161, %c0_88] : memref<32x128xf32, #tpu.memory_space<vmem>>, vector<8x128xf32>
    tpu.vector_store %arg14[%161, %c0_88], %154 {strides = array<i32>} : memref<32x128xf32, #tpu.memory_space<vmem>>, vector<8x128xf32>,
    %c3_i32 = arith.constant 3 : i32
    %c8_i32_89 = arith.constant 8 : i32
    %163 = arith.muli %c3_i32, %c8_i32_89 : i32
    %164 = tpu.assume_multiple %163, 8 : i32
    %165 = arith.index_cast %164 : i32 to index
    %c0_90 = arith.constant 0 : index
    %166 = vector.load %arg13[%165, %c0_90] : memref<32x512xf32, #tpu.memory_space<vmem>>, vector<8x512xf32>
    %c0_91 = arith.constant 0 : index
    %c0_92 = arith.constant 0 : index
    %c0_93 = arith.constant 0 : index
    %167 = vector.load %arg15[%c0_91, %c0_92, %c0_93] : memref<2x8x128xf32, #tpu.memory_space<vmem>>, vector<1x8x128xf32>
    %168 = vector.shape_cast %167 : vector<1x8x128xf32> to vector<8x128xf32>
    %169 = arith.truncf %168 : vector<8x128xf32> to vector<8x128xbf16>
    %c0_94 = arith.constant 0 : index
    %c0_95 = arith.constant 0 : index
    %170 = vector.load %arg3[%c0_94, %c0_95] : memref<128x512xbf16, #tpu.memory_space<vmem>>, vector<128x512xbf16>
    %cst_96 = arith.constant dense<0.000000e+00> : vector<8x512xf32>
    %171 = tpu.matmul %169, %170, %cst_96 {dimension_numbers = #tpu.dot_dimension_numbers<[1], [0], [0], [1], [0, 0, 1, 1], [], []>} : vector<8x128xbf16>, vector<128x512xbf16>, vector<8x512xf32> -> vector<8x512xf32>
    %172 = arith.addf %166, %171 : vector<8x512xf32>
    %173 = vector.extract_strided_slice %172 {offsets = [0, 0], sizes = [8, 128], strides = [1, 1]} : vector<8x512xf32> to vector<8x128xf32>
    %cst_97 = arith.constant 5.000000e-01 : f32
    %174 = vector.broadcast %cst_97 : f32 to vector<8x128xf32>
    %175 = arith.mulf %174, %173 : vector<8x128xf32>
    %176 = math.tanh %175 : vector<8x128xf32>
    %cst_98 = arith.constant 1.000000e+00 : f32
    %177 = vector.broadcast %cst_98 : f32 to vector<8x128xf32>
    %178 = arith.addf %176, %177 : vector<8x128xf32>
    %cst_99 = arith.constant 5.000000e-01 : f32
    %179 = vector.broadcast %cst_99 : f32 to vector<8x128xf32>
    %180 = arith.mulf %179, %178 : vector<8x128xf32>
    %181 = vector.extract_strided_slice %172 {offsets = [0, 128], sizes = [8, 128], strides = [1, 1]} : vector<8x512xf32> to vector<8x128xf32>
    %cst_100 = arith.constant 5.000000e-01 : f32
    %182 = vector.broadcast %cst_100 : f32 to vector<8x128xf32>
    %183 = arith.mulf %182, %181 : vector<8x128xf32>
    %184 = math.tanh %183 : vector<8x128xf32>
    %cst_101 = arith.constant 1.000000e+00 : f32
    %185 = vector.broadcast %cst_101 : f32 to vector<8x128xf32>
    %186 = arith.addf %184, %185 : vector<8x128xf32>
    %cst_102 = arith.constant 5.000000e-01 : f32
    %187 = vector.broadcast %cst_102 : f32 to vector<8x128xf32>
    %188 = arith.mulf %187, %186 : vector<8x128xf32>
    %189 = vector.extract_strided_slice %172 {offsets = [0, 256], sizes = [8, 128], strides = [1, 1]} : vector<8x512xf32> to vector<8x128xf32>
    %190 = math.tanh %189 : vector<8x128xf32>
    %191 = vector.extract_strided_slice %172 {offsets = [0, 384], sizes = [8, 128], strides = [1, 1]} : vector<8x512xf32> to vector<8x128xf32>
    %cst_103 = arith.constant 5.000000e-01 : f32
    %192 = vector.broadcast %cst_103 : f32 to vector<8x128xf32>
    %193 = arith.mulf %192, %191 : vector<8x128xf32>
    %194 = math.tanh %193 : vector<8x128xf32>
    %cst_104 = arith.constant 1.000000e+00 : f32
    %195 = vector.broadcast %cst_104 : f32 to vector<8x128xf32>
    %196 = arith.addf %194, %195 : vector<8x128xf32>
    %cst_105 = arith.constant 5.000000e-01 : f32
    %197 = vector.broadcast %cst_105 : f32 to vector<8x128xf32>
    %198 = arith.mulf %197, %196 : vector<8x128xf32>
    %c0_106 = arith.constant 0 : index
    %c0_107 = arith.constant 0 : index
    %c0_108 = arith.constant 0 : index
    %199 = vector.load %arg16[%c0_106, %c0_107, %c0_108] : memref<2x8x128xf32, #tpu.memory_space<vmem>>, vector<1x8x128xf32>
    %200 = vector.shape_cast %199 : vector<1x8x128xf32> to vector<8x128xf32>
    %201 = arith.mulf %188, %200 : vector<8x128xf32>
    %202 = arith.mulf %180, %190 : vector<8x128xf32>
    %203 = arith.addf %201, %202 : vector<8x128xf32>
    %204 = math.tanh %203 : vector<8x128xf32>
    %205 = arith.mulf %198, %204 : vector<8x128xf32>
    %c0_109 = arith.constant 0 : index
    %c0_110 = arith.constant 0 : index
    %c0_111 = arith.constant 0 : index
    %206 = vector.load %arg16[%c0_109, %c0_110, %c0_111] : memref<2x8x128xf32, #tpu.memory_space<vmem>>, vector<1x8x128xf32>
    %207 = vector.shape_cast %206 : vector<1x8x128xf32> to vector<8x128xf32>
    %208 = vector.shape_cast %203 : vector<8x128xf32> to vector<1x8x128xf32>
    tpu.vector_store %arg16[%c0_109, %c0_110, %c0_111], %208 {strides = array<i32>} : memref<2x8x128xf32, #tpu.memory_space<vmem>>, vector<1x8x128xf32>,
    %c0_112 = arith.constant 0 : index
    %c0_113 = arith.constant 0 : index
    %c0_114 = arith.constant 0 : index
    %209 = vector.load %arg15[%c0_112, %c0_113, %c0_114] : memref<2x8x128xf32, #tpu.memory_space<vmem>>, vector<1x8x128xf32>
    %210 = vector.shape_cast %209 : vector<1x8x128xf32> to vector<8x128xf32>
    %211 = vector.shape_cast %205 : vector<8x128xf32> to vector<1x8x128xf32>
    tpu.vector_store %arg15[%c0_112, %c0_113, %c0_114], %211 {strides = array<i32>} : memref<2x8x128xf32, #tpu.memory_space<vmem>>, vector<1x8x128xf32>,
    %212 = arith.index_cast %164 : i32 to index
    %c0_115 = arith.constant 0 : index
    %213 = vector.load %arg14[%212, %c0_115] : memref<32x128xf32, #tpu.memory_space<vmem>>, vector<8x128xf32>
    tpu.vector_store %arg14[%212, %c0_115], %205 {strides = array<i32>} : memref<32x128xf32, #tpu.memory_space<vmem>>, vector<8x128xf32>,
    %c4_i32 = arith.constant 4 : i32
    %c0_116 = arith.constant 0 : index
    %c0_117 = arith.constant 0 : index
    %214 = vector.load %arg14[%c0_116, %c0_117] : memref<32x128xf32, #tpu.memory_space<vmem>>, vector<32x128xf32>
    %215 = arith.truncf %214 : vector<32x128xf32> to vector<32x128xbf16>
    %c0_118 = arith.constant 0 : index
    %c0_119 = arith.constant 0 : index
    %216 = vector.load %arg5[%c0_118, %c0_119] : memref<128x512xbf16, #tpu.memory_space<vmem>>, vector<128x512xbf16>
    %cst_120 = arith.constant dense<0.000000e+00> : vector<32x512xf32>
    %217 = tpu.matmul %215, %216, %cst_120 {dimension_numbers = #tpu.dot_dimension_numbers<[1], [0], [0], [1], [0, 0, 1, 1], [], []>} : vector<32x128xbf16>, vector<128x512xbf16>, vector<32x512xf32> -> vector<32x512xf32>
    %c0_121 = arith.constant 0 : index
    %c0_122 = arith.constant 0 : index
    %218 = vector.load %arg7[%c0_121, %c0_122] : memref<1x512xf32, #tpu.memory_space<vmem>>, vector<1x512xf32>
    %219 = vector.broadcast %218 : vector<1x512xf32> to vector<32x512xf32>
    %220 = arith.addf %217, %219 : vector<32x512xf32>
    %c0_123 = arith.constant 0 : index
    %c0_124 = arith.constant 0 : index
    %221 = vector.load %arg13[%c0_123, %c0_124] : memref<32x512xf32, #tpu.memory_space<vmem>>, vector<32x512xf32>
    tpu.vector_store %arg13[%c0_123, %c0_124], %220 {strides = array<i32>} : memref<32x512xf32, #tpu.memory_space<vmem>>, vector<32x512xf32>,
    %c0_i32_125 = arith.constant 0 : i32
    %c8_i32_126 = arith.constant 8 : i32
    %222 = arith.muli %c0_i32_125, %c8_i32_126 : i32
    %223 = tpu.assume_multiple %222, 8 : i32
    %224 = arith.index_cast %223 : i32 to index
    %c0_127 = arith.constant 0 : index
    %225 = vector.load %arg13[%224, %c0_127] : memref<32x512xf32, #tpu.memory_space<vmem>>, vector<8x512xf32>
    %c1 = arith.constant 1 : index
    %c0_128 = arith.constant 0 : index
    %c0_129 = arith.constant 0 : index
    %226 = vector.load %arg15[%c1, %c0_128, %c0_129] : memref<2x8x128xf32, #tpu.memory_space<vmem>>, vector<1x8x128xf32>
    %227 = vector.shape_cast %226 : vector<1x8x128xf32> to vector<8x128xf32>
    %228 = arith.truncf %227 : vector<8x128xf32> to vector<8x128xbf16>
    %c0_130 = arith.constant 0 : index
    %c0_131 = arith.constant 0 : index
    %229 = vector.load %arg6[%c0_130, %c0_131] : memref<128x512xbf16, #tpu.memory_space<vmem>>, vector<128x512xbf16>
    %cst_132 = arith.constant dense<0.000000e+00> : vector<8x512xf32>
    %230 = tpu.matmul %228, %229, %cst_132 {dimension_numbers = #tpu.dot_dimension_numbers<[1], [0], [0], [1], [0, 0, 1, 1], [], []>} : vector<8x128xbf16>, vector<128x512xbf16>, vector<8x512xf32> -> vector<8x512xf32>
    %231 = arith.addf %225, %230 : vector<8x512xf32>
    %232 = vector.extract_strided_slice %231 {offsets = [0, 0], sizes = [8, 128], strides = [1, 1]} : vector<8x512xf32> to vector<8x128xf32>
    %cst_133 = arith.constant 5.000000e-01 : f32
    %233 = vector.broadcast %cst_133 : f32 to vector<8x128xf32>
    %234 = arith.mulf %233, %232 : vector<8x128xf32>
    %235 = math.tanh %234 : vector<8x128xf32>
    %cst_134 = arith.constant 1.000000e+00 : f32
    %236 = vector.broadcast %cst_134 : f32 to vector<8x128xf32>
    %237 = arith.addf %235, %236 : vector<8x128xf32>
    %cst_135 = arith.constant 5.000000e-01 : f32
    %238 = vector.broadcast %cst_135 : f32 to vector<8x128xf32>
    %239 = arith.mulf %238, %237 : vector<8x128xf32>
    %240 = vector.extract_strided_slice %231 {offsets = [0, 128], sizes = [8, 128], strides = [1, 1]} : vector<8x512xf32> to vector<8x128xf32>
    %cst_136 = arith.constant 5.000000e-01 : f32
    %241 = vector.broadcast %cst_136 : f32 to vector<8x128xf32>
    %242 = arith.mulf %241, %240 : vector<8x128xf32>
    %243 = math.tanh %242 : vector<8x128xf32>
    %cst_137 = arith.constant 1.000000e+00 : f32
    %244 = vector.broadcast %cst_137 : f32 to vector<8x128xf32>
    %245 = arith.addf %243, %244 : vector<8x128xf32>
    %cst_138 = arith.constant 5.000000e-01 : f32
    %246 = vector.broadcast %cst_138 : f32 to vector<8x128xf32>
    %247 = arith.mulf %246, %245 : vector<8x128xf32>
    %248 = vector.extract_strided_slice %231 {offsets = [0, 256], sizes = [8, 128], strides = [1, 1]} : vector<8x512xf32> to vector<8x128xf32>
    %249 = math.tanh %248 : vector<8x128xf32>
    %250 = vector.extract_strided_slice %231 {offsets = [0, 384], sizes = [8, 128], strides = [1, 1]} : vector<8x512xf32> to vector<8x128xf32>
    %cst_139 = arith.constant 5.000000e-01 : f32
    %251 = vector.broadcast %cst_139 : f32 to vector<8x128xf32>
    %252 = arith.mulf %251, %250 : vector<8x128xf32>
    %253 = math.tanh %252 : vector<8x128xf32>
    %cst_140 = arith.constant 1.000000e+00 : f32
    %254 = vector.broadcast %cst_140 : f32 to vector<8x128xf32>
    %255 = arith.addf %253, %254 : vector<8x128xf32>
    %cst_141 = arith.constant 5.000000e-01 : f32
    %256 = vector.broadcast %cst_141 : f32 to vector<8x128xf32>
    %257 = arith.mulf %256, %255 : vector<8x128xf32>
    %c1_142 = arith.constant 1 : index
    %c0_143 = arith.constant 0 : index
    %c0_144 = arith.constant 0 : index
    %258 = vector.load %arg16[%c1_142, %c0_143, %c0_144] : memref<2x8x128xf32, #tpu.memory_space<vmem>>, vector<1x8x128xf32>
    %259 = vector.shape_cast %258 : vector<1x8x128xf32> to vector<8x128xf32>
    %260 = arith.mulf %247, %259 : vector<8x128xf32>
    %261 = arith.mulf %239, %249 : vector<8x128xf32>
    %262 = arith.addf %260, %261 : vector<8x128xf32>
    %263 = math.tanh %262 : vector<8x128xf32>
    %264 = arith.mulf %257, %263 : vector<8x128xf32>
    %c1_145 = arith.constant 1 : index
    %c0_146 = arith.constant 0 : index
    %c0_147 = arith.constant 0 : index
    %265 = vector.load %arg16[%c1_145, %c0_146, %c0_147] : memref<2x8x128xf32, #tpu.memory_space<vmem>>, vector<1x8x128xf32>
    %266 = vector.shape_cast %265 : vector<1x8x128xf32> to vector<8x128xf32>
    %267 = vector.shape_cast %262 : vector<8x128xf32> to vector<1x8x128xf32>
    tpu.vector_store %arg16[%c1_145, %c0_146, %c0_147], %267 {strides = array<i32>} : memref<2x8x128xf32, #tpu.memory_space<vmem>>, vector<1x8x128xf32>,
    %c1_148 = arith.constant 1 : index
    %c0_149 = arith.constant 0 : index
    %c0_150 = arith.constant 0 : index
    %268 = vector.load %arg15[%c1_148, %c0_149, %c0_150] : memref<2x8x128xf32, #tpu.memory_space<vmem>>, vector<1x8x128xf32>
    %269 = vector.shape_cast %268 : vector<1x8x128xf32> to vector<8x128xf32>
    %270 = vector.shape_cast %264 : vector<8x128xf32> to vector<1x8x128xf32>
    tpu.vector_store %arg15[%c1_148, %c0_149, %c0_150], %270 {strides = array<i32>} : memref<2x8x128xf32, #tpu.memory_space<vmem>>, vector<1x8x128xf32>,
    %271 = arith.index_cast %223 : i32 to index
    %c0_151 = arith.constant 0 : index
    %272 = vector.load %arg14[%271, %c0_151] : memref<32x128xf32, #tpu.memory_space<vmem>>, vector<8x128xf32>
    tpu.vector_store %arg14[%271, %c0_151], %264 {strides = array<i32>} : memref<32x128xf32, #tpu.memory_space<vmem>>, vector<8x128xf32>,
    %c1_i32_152 = arith.constant 1 : i32
    %c8_i32_153 = arith.constant 8 : i32
    %273 = arith.muli %c1_i32_152, %c8_i32_153 : i32
    %274 = tpu.assume_multiple %273, 8 : i32
    %275 = arith.index_cast %274 : i32 to index
    %c0_154 = arith.constant 0 : index
    %276 = vector.load %arg13[%275, %c0_154] : memref<32x512xf32, #tpu.memory_space<vmem>>, vector<8x512xf32>
    %c1_155 = arith.constant 1 : index
    %c0_156 = arith.constant 0 : index
    %c0_157 = arith.constant 0 : index
    %277 = vector.load %arg15[%c1_155, %c0_156, %c0_157] : memref<2x8x128xf32, #tpu.memory_space<vmem>>, vector<1x8x128xf32>
    %278 = vector.shape_cast %277 : vector<1x8x128xf32> to vector<8x128xf32>
    %279 = arith.truncf %278 : vector<8x128xf32> to vector<8x128xbf16>
    %c0_158 = arith.constant 0 : index
    %c0_159 = arith.constant 0 : index
    %280 = vector.load %arg6[%c0_158, %c0_159] : memref<128x512xbf16, #tpu.memory_space<vmem>>, vector<128x512xbf16>
    %cst_160 = arith.constant dense<0.000000e+00> : vector<8x512xf32>
    %281 = tpu.matmul %279, %280, %cst_160 {dimension_numbers = #tpu.dot_dimension_numbers<[1], [0], [0], [1], [0, 0, 1, 1], [], []>} : vector<8x128xbf16>, vector<128x512xbf16>, vector<8x512xf32> -> vector<8x512xf32>
    %282 = arith.addf %276, %281 : vector<8x512xf32>
    %283 = vector.extract_strided_slice %282 {offsets = [0, 0], sizes = [8, 128], strides = [1, 1]} : vector<8x512xf32> to vector<8x128xf32>
    %cst_161 = arith.constant 5.000000e-01 : f32
    %284 = vector.broadcast %cst_161 : f32 to vector<8x128xf32>
    %285 = arith.mulf %284, %283 : vector<8x128xf32>
    %286 = math.tanh %285 : vector<8x128xf32>
    %cst_162 = arith.constant 1.000000e+00 : f32
    %287 = vector.broadcast %cst_162 : f32 to vector<8x128xf32>
    %288 = arith.addf %286, %287 : vector<8x128xf32>
    %cst_163 = arith.constant 5.000000e-01 : f32
    %289 = vector.broadcast %cst_163 : f32 to vector<8x128xf32>
    %290 = arith.mulf %289, %288 : vector<8x128xf32>
    %291 = vector.extract_strided_slice %282 {offsets = [0, 128], sizes = [8, 128], strides = [1, 1]} : vector<8x512xf32> to vector<8x128xf32>
    %cst_164 = arith.constant 5.000000e-01 : f32
    %292 = vector.broadcast %cst_164 : f32 to vector<8x128xf32>
    %293 = arith.mulf %292, %291 : vector<8x128xf32>
    %294 = math.tanh %293 : vector<8x128xf32>
    %cst_165 = arith.constant 1.000000e+00 : f32
    %295 = vector.broadcast %cst_165 : f32 to vector<8x128xf32>
    %296 = arith.addf %294, %295 : vector<8x128xf32>
    %cst_166 = arith.constant 5.000000e-01 : f32
    %297 = vector.broadcast %cst_166 : f32 to vector<8x128xf32>
    %298 = arith.mulf %297, %296 : vector<8x128xf32>
    %299 = vector.extract_strided_slice %282 {offsets = [0, 256], sizes = [8, 128], strides = [1, 1]} : vector<8x512xf32> to vector<8x128xf32>
    %300 = math.tanh %299 : vector<8x128xf32>
    %301 = vector.extract_strided_slice %282 {offsets = [0, 384], sizes = [8, 128], strides = [1, 1]} : vector<8x512xf32> to vector<8x128xf32>
    %cst_167 = arith.constant 5.000000e-01 : f32
    %302 = vector.broadcast %cst_167 : f32 to vector<8x128xf32>
    %303 = arith.mulf %302, %301 : vector<8x128xf32>
    %304 = math.tanh %303 : vector<8x128xf32>
    %cst_168 = arith.constant 1.000000e+00 : f32
    %305 = vector.broadcast %cst_168 : f32 to vector<8x128xf32>
    %306 = arith.addf %304, %305 : vector<8x128xf32>
    %cst_169 = arith.constant 5.000000e-01 : f32
    %307 = vector.broadcast %cst_169 : f32 to vector<8x128xf32>
    %308 = arith.mulf %307, %306 : vector<8x128xf32>
    %c1_170 = arith.constant 1 : index
    %c0_171 = arith.constant 0 : index
    %c0_172 = arith.constant 0 : index
    %309 = vector.load %arg16[%c1_170, %c0_171, %c0_172] : memref<2x8x128xf32, #tpu.memory_space<vmem>>, vector<1x8x128xf32>
    %310 = vector.shape_cast %309 : vector<1x8x128xf32> to vector<8x128xf32>
    %311 = arith.mulf %298, %310 : vector<8x128xf32>
    %312 = arith.mulf %290, %300 : vector<8x128xf32>
    %313 = arith.addf %311, %312 : vector<8x128xf32>
    %314 = math.tanh %313 : vector<8x128xf32>
    %315 = arith.mulf %308, %314 : vector<8x128xf32>
    %c1_173 = arith.constant 1 : index
    %c0_174 = arith.constant 0 : index
    %c0_175 = arith.constant 0 : index
    %316 = vector.load %arg16[%c1_173, %c0_174, %c0_175] : memref<2x8x128xf32, #tpu.memory_space<vmem>>, vector<1x8x128xf32>
    %317 = vector.shape_cast %316 : vector<1x8x128xf32> to vector<8x128xf32>
    %318 = vector.shape_cast %313 : vector<8x128xf32> to vector<1x8x128xf32>
    tpu.vector_store %arg16[%c1_173, %c0_174, %c0_175], %318 {strides = array<i32>} : memref<2x8x128xf32, #tpu.memory_space<vmem>>, vector<1x8x128xf32>,
    %c1_176 = arith.constant 1 : index
    %c0_177 = arith.constant 0 : index
    %c0_178 = arith.constant 0 : index
    %319 = vector.load %arg15[%c1_176, %c0_177, %c0_178] : memref<2x8x128xf32, #tpu.memory_space<vmem>>, vector<1x8x128xf32>
    %320 = vector.shape_cast %319 : vector<1x8x128xf32> to vector<8x128xf32>
    %321 = vector.shape_cast %315 : vector<8x128xf32> to vector<1x8x128xf32>
    tpu.vector_store %arg15[%c1_176, %c0_177, %c0_178], %321 {strides = array<i32>} : memref<2x8x128xf32, #tpu.memory_space<vmem>>, vector<1x8x128xf32>,
    %322 = arith.index_cast %274 : i32 to index
    %c0_179 = arith.constant 0 : index
    %323 = vector.load %arg14[%322, %c0_179] : memref<32x128xf32, #tpu.memory_space<vmem>>, vector<8x128xf32>
    tpu.vector_store %arg14[%322, %c0_179], %315 {strides = array<i32>} : memref<32x128xf32, #tpu.memory_space<vmem>>, vector<8x128xf32>,
    %c2_i32_180 = arith.constant 2 : i32
    %c8_i32_181 = arith.constant 8 : i32
    %324 = arith.muli %c2_i32_180, %c8_i32_181 : i32
    %325 = tpu.assume_multiple %324, 8 : i32
    %326 = arith.index_cast %325 : i32 to index
    %c0_182 = arith.constant 0 : index
    %327 = vector.load %arg13[%326, %c0_182] : memref<32x512xf32, #tpu.memory_space<vmem>>, vector<8x512xf32>
    %c1_183 = arith.constant 1 : index
    %c0_184 = arith.constant 0 : index
    %c0_185 = arith.constant 0 : index
    %328 = vector.load %arg15[%c1_183, %c0_184, %c0_185] : memref<2x8x128xf32, #tpu.memory_space<vmem>>, vector<1x8x128xf32>
    %329 = vector.shape_cast %328 : vector<1x8x128xf32> to vector<8x128xf32>
    %330 = arith.truncf %329 : vector<8x128xf32> to vector<8x128xbf16>
    %c0_186 = arith.constant 0 : index
    %c0_187 = arith.constant 0 : index
    %331 = vector.load %arg6[%c0_186, %c0_187] : memref<128x512xbf16, #tpu.memory_space<vmem>>, vector<128x512xbf16>
    %cst_188 = arith.constant dense<0.000000e+00> : vector<8x512xf32>
    %332 = tpu.matmul %330, %331, %cst_188 {dimension_numbers = #tpu.dot_dimension_numbers<[1], [0], [0], [1], [0, 0, 1, 1], [], []>} : vector<8x128xbf16>, vector<128x512xbf16>, vector<8x512xf32> -> vector<8x512xf32>
    %333 = arith.addf %327, %332 : vector<8x512xf32>
    %334 = vector.extract_strided_slice %333 {offsets = [0, 0], sizes = [8, 128], strides = [1, 1]} : vector<8x512xf32> to vector<8x128xf32>
    %cst_189 = arith.constant 5.000000e-01 : f32
    %335 = vector.broadcast %cst_189 : f32 to vector<8x128xf32>
    %336 = arith.mulf %335, %334 : vector<8x128xf32>
    %337 = math.tanh %336 : vector<8x128xf32>
    %cst_190 = arith.constant 1.000000e+00 : f32
    %338 = vector.broadcast %cst_190 : f32 to vector<8x128xf32>
    %339 = arith.addf %337, %338 : vector<8x128xf32>
    %cst_191 = arith.constant 5.000000e-01 : f32
    %340 = vector.broadcast %cst_191 : f32 to vector<8x128xf32>
    %341 = arith.mulf %340, %339 : vector<8x128xf32>
    %342 = vector.extract_strided_slice %333 {offsets = [0, 128], sizes = [8, 128], strides = [1, 1]} : vector<8x512xf32> to vector<8x128xf32>
    %cst_192 = arith.constant 5.000000e-01 : f32
    %343 = vector.broadcast %cst_192 : f32 to vector<8x128xf32>
    %344 = arith.mulf %343, %342 : vector<8x128xf32>
    %345 = math.tanh %344 : vector<8x128xf32>
    %cst_193 = arith.constant 1.000000e+00 : f32
    %346 = vector.broadcast %cst_193 : f32 to vector<8x128xf32>
    %347 = arith.addf %345, %346 : vector<8x128xf32>
    %cst_194 = arith.constant 5.000000e-01 : f32
    %348 = vector.broadcast %cst_194 : f32 to vector<8x128xf32>
    %349 = arith.mulf %348, %347 : vector<8x128xf32>
    %350 = vector.extract_strided_slice %333 {offsets = [0, 256], sizes = [8, 128], strides = [1, 1]} : vector<8x512xf32> to vector<8x128xf32>
    %351 = math.tanh %350 : vector<8x128xf32>
    %352 = vector.extract_strided_slice %333 {offsets = [0, 384], sizes = [8, 128], strides = [1, 1]} : vector<8x512xf32> to vector<8x128xf32>
    %cst_195 = arith.constant 5.000000e-01 : f32
    %353 = vector.broadcast %cst_195 : f32 to vector<8x128xf32>
    %354 = arith.mulf %353, %352 : vector<8x128xf32>
    %355 = math.tanh %354 : vector<8x128xf32>
    %cst_196 = arith.constant 1.000000e+00 : f32
    %356 = vector.broadcast %cst_196 : f32 to vector<8x128xf32>
    %357 = arith.addf %355, %356 : vector<8x128xf32>
    %cst_197 = arith.constant 5.000000e-01 : f32
    %358 = vector.broadcast %cst_197 : f32 to vector<8x128xf32>
    %359 = arith.mulf %358, %357 : vector<8x128xf32>
    %c1_198 = arith.constant 1 : index
    %c0_199 = arith.constant 0 : index
    %c0_200 = arith.constant 0 : index
    %360 = vector.load %arg16[%c1_198, %c0_199, %c0_200] : memref<2x8x128xf32, #tpu.memory_space<vmem>>, vector<1x8x128xf32>
    %361 = vector.shape_cast %360 : vector<1x8x128xf32> to vector<8x128xf32>
    %362 = arith.mulf %349, %361 : vector<8x128xf32>
    %363 = arith.mulf %341, %351 : vector<8x128xf32>
    %364 = arith.addf %362, %363 : vector<8x128xf32>
    %365 = math.tanh %364 : vector<8x128xf32>
    %366 = arith.mulf %359, %365 : vector<8x128xf32>
    %c1_201 = arith.constant 1 : index
    %c0_202 = arith.constant 0 : index
    %c0_203 = arith.constant 0 : index
    %367 = vector.load %arg16[%c1_201, %c0_202, %c0_203] : memref<2x8x128xf32, #tpu.memory_space<vmem>>, vector<1x8x128xf32>
    %368 = vector.shape_cast %367 : vector<1x8x128xf32> to vector<8x128xf32>
    %369 = vector.shape_cast %364 : vector<8x128xf32> to vector<1x8x128xf32>
    tpu.vector_store %arg16[%c1_201, %c0_202, %c0_203], %369 {strides = array<i32>} : memref<2x8x128xf32, #tpu.memory_space<vmem>>, vector<1x8x128xf32>,
    %c1_204 = arith.constant 1 : index
    %c0_205 = arith.constant 0 : index
    %c0_206 = arith.constant 0 : index
    %370 = vector.load %arg15[%c1_204, %c0_205, %c0_206] : memref<2x8x128xf32, #tpu.memory_space<vmem>>, vector<1x8x128xf32>
    %371 = vector.shape_cast %370 : vector<1x8x128xf32> to vector<8x128xf32>
    %372 = vector.shape_cast %366 : vector<8x128xf32> to vector<1x8x128xf32>
    tpu.vector_store %arg15[%c1_204, %c0_205, %c0_206], %372 {strides = array<i32>} : memref<2x8x128xf32, #tpu.memory_space<vmem>>, vector<1x8x128xf32>,
    %373 = arith.index_cast %325 : i32 to index
    %c0_207 = arith.constant 0 : index
    %374 = vector.load %arg14[%373, %c0_207] : memref<32x128xf32, #tpu.memory_space<vmem>>, vector<8x128xf32>
    tpu.vector_store %arg14[%373, %c0_207], %366 {strides = array<i32>} : memref<32x128xf32, #tpu.memory_space<vmem>>, vector<8x128xf32>,
    %c3_i32_208 = arith.constant 3 : i32
    %c8_i32_209 = arith.constant 8 : i32
    %375 = arith.muli %c3_i32_208, %c8_i32_209 : i32
    %376 = tpu.assume_multiple %375, 8 : i32
    %377 = arith.index_cast %376 : i32 to index
    %c0_210 = arith.constant 0 : index
    %378 = vector.load %arg13[%377, %c0_210] : memref<32x512xf32, #tpu.memory_space<vmem>>, vector<8x512xf32>
    %c1_211 = arith.constant 1 : index
    %c0_212 = arith.constant 0 : index
    %c0_213 = arith.constant 0 : index
    %379 = vector.load %arg15[%c1_211, %c0_212, %c0_213] : memref<2x8x128xf32, #tpu.memory_space<vmem>>, vector<1x8x128xf32>
    %380 = vector.shape_cast %379 : vector<1x8x128xf32> to vector<8x128xf32>
    %381 = arith.truncf %380 : vector<8x128xf32> to vector<8x128xbf16>
    %c0_214 = arith.constant 0 : index
    %c0_215 = arith.constant 0 : index
    %382 = vector.load %arg6[%c0_214, %c0_215] : memref<128x512xbf16, #tpu.memory_space<vmem>>, vector<128x512xbf16>
    %cst_216 = arith.constant dense<0.000000e+00> : vector<8x512xf32>
    %383 = tpu.matmul %381, %382, %cst_216 {dimension_numbers = #tpu.dot_dimension_numbers<[1], [0], [0], [1], [0, 0, 1, 1], [], []>} : vector<8x128xbf16>, vector<128x512xbf16>, vector<8x512xf32> -> vector<8x512xf32>
    %384 = arith.addf %378, %383 : vector<8x512xf32>
    %385 = vector.extract_strided_slice %384 {offsets = [0, 0], sizes = [8, 128], strides = [1, 1]} : vector<8x512xf32> to vector<8x128xf32>
    %cst_217 = arith.constant 5.000000e-01 : f32
    %386 = vector.broadcast %cst_217 : f32 to vector<8x128xf32>
    %387 = arith.mulf %386, %385 : vector<8x128xf32>
    %388 = math.tanh %387 : vector<8x128xf32>
    %cst_218 = arith.constant 1.000000e+00 : f32
    %389 = vector.broadcast %cst_218 : f32 to vector<8x128xf32>
    %390 = arith.addf %388, %389 : vector<8x128xf32>
    %cst_219 = arith.constant 5.000000e-01 : f32
    %391 = vector.broadcast %cst_219 : f32 to vector<8x128xf32>
    %392 = arith.mulf %391, %390 : vector<8x128xf32>
    %393 = vector.extract_strided_slice %384 {offsets = [0, 128], sizes = [8, 128], strides = [1, 1]} : vector<8x512xf32> to vector<8x128xf32>
    %cst_220 = arith.constant 5.000000e-01 : f32
    %394 = vector.broadcast %cst_220 : f32 to vector<8x128xf32>
    %395 = arith.mulf %394, %393 : vector<8x128xf32>
    %396 = math.tanh %395 : vector<8x128xf32>
    %cst_221 = arith.constant 1.000000e+00 : f32
    %397 = vector.broadcast %cst_221 : f32 to vector<8x128xf32>
    %398 = arith.addf %396, %397 : vector<8x128xf32>
    %cst_222 = arith.constant 5.000000e-01 : f32
    %399 = vector.broadcast %cst_222 : f32 to vector<8x128xf32>
    %400 = arith.mulf %399, %398 : vector<8x128xf32>
    %401 = vector.extract_strided_slice %384 {offsets = [0, 256], sizes = [8, 128], strides = [1, 1]} : vector<8x512xf32> to vector<8x128xf32>
    %402 = math.tanh %401 : vector<8x128xf32>
    %403 = vector.extract_strided_slice %384 {offsets = [0, 384], sizes = [8, 128], strides = [1, 1]} : vector<8x512xf32> to vector<8x128xf32>
    %cst_223 = arith.constant 5.000000e-01 : f32
    %404 = vector.broadcast %cst_223 : f32 to vector<8x128xf32>
    %405 = arith.mulf %404, %403 : vector<8x128xf32>
    %406 = math.tanh %405 : vector<8x128xf32>
    %cst_224 = arith.constant 1.000000e+00 : f32
    %407 = vector.broadcast %cst_224 : f32 to vector<8x128xf32>
    %408 = arith.addf %406, %407 : vector<8x128xf32>
    %cst_225 = arith.constant 5.000000e-01 : f32
    %409 = vector.broadcast %cst_225 : f32 to vector<8x128xf32>
    %410 = arith.mulf %409, %408 : vector<8x128xf32>
    %c1_226 = arith.constant 1 : index
    %c0_227 = arith.constant 0 : index
    %c0_228 = arith.constant 0 : index
    %411 = vector.load %arg16[%c1_226, %c0_227, %c0_228] : memref<2x8x128xf32, #tpu.memory_space<vmem>>, vector<1x8x128xf32>
    %412 = vector.shape_cast %411 : vector<1x8x128xf32> to vector<8x128xf32>
    %413 = arith.mulf %400, %412 : vector<8x128xf32>
    %414 = arith.mulf %392, %402 : vector<8x128xf32>
    %415 = arith.addf %413, %414 : vector<8x128xf32>
    %416 = math.tanh %415 : vector<8x128xf32>
    %417 = arith.mulf %410, %416 : vector<8x128xf32>
    %c1_229 = arith.constant 1 : index
    %c0_230 = arith.constant 0 : index
    %c0_231 = arith.constant 0 : index
    %418 = vector.load %arg16[%c1_229, %c0_230, %c0_231] : memref<2x8x128xf32, #tpu.memory_space<vmem>>, vector<1x8x128xf32>
    %419 = vector.shape_cast %418 : vector<1x8x128xf32> to vector<8x128xf32>
    %420 = vector.shape_cast %415 : vector<8x128xf32> to vector<1x8x128xf32>
    tpu.vector_store %arg16[%c1_229, %c0_230, %c0_231], %420 {strides = array<i32>} : memref<2x8x128xf32, #tpu.memory_space<vmem>>, vector<1x8x128xf32>,
    %c1_232 = arith.constant 1 : index
    %c0_233 = arith.constant 0 : index
    %c0_234 = arith.constant 0 : index
    %421 = vector.load %arg15[%c1_232, %c0_233, %c0_234] : memref<2x8x128xf32, #tpu.memory_space<vmem>>, vector<1x8x128xf32>
    %422 = vector.shape_cast %421 : vector<1x8x128xf32> to vector<8x128xf32>
    %423 = vector.shape_cast %417 : vector<8x128xf32> to vector<1x8x128xf32>
    tpu.vector_store %arg15[%c1_232, %c0_233, %c0_234], %423 {strides = array<i32>} : memref<2x8x128xf32, #tpu.memory_space<vmem>>, vector<1x8x128xf32>,
    %424 = arith.index_cast %376 : i32 to index
    %c0_235 = arith.constant 0 : index
    %425 = vector.load %arg14[%424, %c0_235] : memref<32x128xf32, #tpu.memory_space<vmem>>, vector<8x128xf32>
    tpu.vector_store %arg14[%424, %c0_235], %417 {strides = array<i32>} : memref<32x128xf32, #tpu.memory_space<vmem>>, vector<8x128xf32>,
    %c4_i32_236 = arith.constant 4 : i32
    %c0_237 = arith.constant 0 : index
    %c0_238 = arith.constant 0 : index
    %426 = vector.load %arg14[%c0_237, %c0_238] : memref<32x128xf32, #tpu.memory_space<vmem>>, vector<32x128xf32>
    %427 = arith.truncf %426 : vector<32x128xf32> to vector<32x128xbf16>
    %c0_239 = arith.constant 0 : index
    %c0_240 = arith.constant 0 : index
    %428 = vector.load %arg10[%c0_239, %c0_240] : memref<32x128xbf16, #tpu.memory_space<vmem>>, vector<32x128xbf16>
    tpu.vector_store %arg10[%c0_239, %c0_240], %427 {strides = array<i32>} : memref<32x128xbf16, #tpu.memory_space<vmem>>, vector<32x128xbf16>,
    %c1_i32_241 = arith.constant 1 : i32
    %429 = arith.cmpi eq, %arg0, %c1_i32_241 : i32
    %430 = arith.extui %429 : i1 to i32
    %c0_i32_242 = arith.constant 0 : i32
    %431 = arith.cmpi ne, %430, %c0_i32_242 : i32
    scf.if %431 {
      %c0_243 = arith.constant 0 : index
      %c0_244 = arith.constant 0 : index
      %c0_245 = arith.constant 0 : index
      %432 = vector.load %arg15[%c0_243, %c0_244, %c0_245] : memref<2x8x128xf32, #tpu.memory_space<vmem>>, vector<2x8x128xf32>
      %c0_246 = arith.constant 0 : index
      %c0_247 = arith.constant 0 : index
      %c0_248 = arith.constant 0 : index
      %433 = vector.load %arg11[%c0_246, %c0_247, %c0_248] : memref<2x8x128xf32, #tpu.memory_space<vmem>>, vector<2x8x128xf32>
      tpu.vector_store %arg11[%c0_246, %c0_247, %c0_248], %432 {strides = array<i32>} : memref<2x8x128xf32, #tpu.memory_space<vmem>>, vector<2x8x128xf32>,
      %c0_249 = arith.constant 0 : index
      %c0_250 = arith.constant 0 : index
      %c0_251 = arith.constant 0 : index
      %434 = vector.load %arg16[%c0_249, %c0_250, %c0_251] : memref<2x8x128xf32, #tpu.memory_space<vmem>>, vector<2x8x128xf32>
      %c0_252 = arith.constant 0 : index
      %c0_253 = arith.constant 0 : index
      %c0_254 = arith.constant 0 : index
      %435 = vector.load %arg12[%c0_252, %c0_253, %c0_254] : memref<2x8x128xf32, #tpu.memory_space<vmem>>, vector<2x8x128xf32>
      tpu.vector_store %arg12[%c0_252, %c0_253, %c0_254], %434 {strides = array<i32>} : memref<2x8x128xf32, #tpu.memory_space<vmem>>, vector<2x8x128xf32>,
    } else {
    }
    return
  }
  func.func @transform_0(%arg0: i32) -> (i32, i32) {
    %c0_i32 = arith.constant 0 : i32
    %c0_i32_0 = arith.constant 0 : i32
    return %arg0, %c0_i32 : i32, i32
  }
  func.func @transform_1(%arg0: i32) -> (i32, i32) {
    %c0_i32 = arith.constant 0 : i32
    %c0_i32_0 = arith.constant 0 : i32
    %c0_i32_1 = arith.constant 0 : i32
    return %c0_i32, %c0_i32_0 : i32, i32
  }
  func.func @transform_2(%arg0: i32) -> (i32, i32) {
    %c0_i32 = arith.constant 0 : i32
    %c0_i32_0 = arith.constant 0 : i32
    %c0_i32_1 = arith.constant 0 : i32
    return %c0_i32, %c0_i32_0 : i32, i32
  }
  func.func @transform_3(%arg0: i32) -> (i32, i32) {
    %c0_i32 = arith.constant 0 : i32
    %c0_i32_0 = arith.constant 0 : i32
    %c0_i32_1 = arith.constant 0 : i32
    return %c0_i32, %c0_i32_0 : i32, i32
  }
  func.func @transform_4(%arg0: i32) -> (i32, i32) {
    %c0_i32 = arith.constant 0 : i32
    %c0_i32_0 = arith.constant 0 : i32
    %c0_i32_1 = arith.constant 0 : i32
    return %c0_i32, %c0_i32_0 : i32, i32
  }
  func.func @transform_5(%arg0: i32) -> (i32, i32) {
    %c0_i32 = arith.constant 0 : i32
    %c0_i32_0 = arith.constant 0 : i32
    %c0_i32_1 = arith.constant 0 : i32
    return %c0_i32, %c0_i32_0 : i32, i32
  }
  func.func @transform_6(%arg0: i32) -> (i32, i32) {
    %c0_i32 = arith.constant 0 : i32
    %c0_i32_0 = arith.constant 0 : i32
    %c0_i32_1 = arith.constant 0 : i32
    return %c0_i32, %c0_i32_0 : i32, i32
  }
  func.func @transform_7(%arg0: i32) -> (i32, i32, i32) {
    %c0_i32 = arith.constant 0 : i32
    %c0_i32_0 = arith.constant 0 : i32
    %c0_i32_1 = arith.constant 0 : i32
    %c0_i32_2 = arith.constant 0 : i32
    return %c0_i32, %c0_i32_0, %c0_i32_1 : i32, i32, i32
  }
  func.func @transform_8(%arg0: i32) -> (i32, i32, i32) {
    %c0_i32 = arith.constant 0 : i32
    %c0_i32_0 = arith.constant 0 : i32
    %c0_i32_1 = arith.constant 0 : i32
    %c0_i32_2 = arith.constant 0 : i32
    return %c0_i32, %c0_i32_0, %c0_i32_1 : i32, i32, i32
  }
  func.func @transform_9(%arg0: i32) -> (i32, i32) {
    %c0_i32 = arith.constant 0 : i32
    %c0_i32_0 = arith.constant 0 : i32
    return %arg0, %c0_i32 : i32, i32
  }
  func.func @transform_10(%arg0: i32) -> (i32, i32, i32) {
    %c0_i32 = arith.constant 0 : i32
    %c0_i32_0 = arith.constant 0 : i32
    %c0_i32_1 = arith.constant 0 : i32
    %c0_i32_2 = arith.constant 0 : i32
    return %c0_i32, %c0_i32_0, %c0_i32_1 : i32, i32, i32
  }
  func.func @transform_11(%arg0: i32) -> (i32, i32, i32) {
    %c0_i32 = arith.constant 0 : i32
    %c0_i32_0 = arith.constant 0 : i32
    %c0_i32_1 = arith.constant 0 : i32
    %c0_i32_2 = arith.constant 0 : i32
    return %c0_i32, %c0_i32_0, %c0_i32_1 : i32, i32, i32
  }
}

</mosaic_0001>

<bundles_post_ra>
// kernel: _lambda_.3
= control target key start
LH: loop header
LB: loop body
LE: loop exit
PB: predicated region body
PF: predicated region fallthrough
CT: control target
= control target key end

     0   :  { %s355_s1 = inlined_call_operand.vmem [shape: bf16[128,128], index: 1, kind: input, shape index: {}]   ;;  %s356_s0 = inlined_call_operand.vmem [shape: bf16[64,128], index: 0, kind: input, shape index: {}]   ;;  %s357_s2 = inlined_call_operand.vmem [shape: f32[1,128], index: 2, kind: input, shape index: {}]   ;;  %s358_s3 = inlined_call_operand.vmem [shape: f32[64,128], index: 3, kind: output, shape index: {}]  }
   0x1   :  { %v260_v0 = vld [vmem:[%s355_s1] sm:$0xff]   ;;  %v261_v1 = vld [vmem:[%s355_s1 + $0x8] sm:$0xff]   ;;  %v262_v2 = vld [vmem:[%s355_s1 + $0x10] sm:$0xff]  }
   0x2   :  { %220 = vmatprep.subr.bf16.mxu0 %v260_v0  ;;  %244 = vmatprep.subr.bf16.mxu1 %v260_v0  ;;  %v263_v3 = vld [vmem:[%s355_s1 + $0x18] sm:$0xff]   ;;  %v268_v4 = vld [vmem:[%s356_s0] sm:$0xff]   ;;  %v269_v5 = vld [vmem:[%s356_s0 + $0x10] sm:$0xff]  }
   0x3   :  { %221 = vmatpush3.bf16.msra.mxu0 %v260_v0  ;;  %252 = vmatpush3.bf16.msra.mxu1 %v260_v0  ;;  %v264_v6 = vld [vmem:[%s355_s1 + $0x20] sm:$0xff]   ;;  %v265_v7 = vld [vmem:[%s355_s1 + $0x28] sm:$0xff]   ;;  %v266_v8 = vld [vmem:[%s355_s1 + $0x30] sm:$0xff]  }
   0x4   :  { %222 = vmatprep.subr.bf16.mxu0 %v261_v1  ;;  %245 = vmatprep.subr.bf16.mxu1 %v261_v1  ;;  %v267_v9 = vld [vmem:[%s355_s1 + $0x38] sm:$0xff]   ;;  %v270_v10 = vld [vmem:[%s356_s0 + $0x8] sm:$0xff]   ;;  %v195_v12 = vld [vmem:[%s357_s2] ss:$0 sm:$0xff] }
   0x5   :  { %236 = vmatprep.mubr.bf16.mxu0 %v268_v4  ;;  %240 = vmatprep.mubr.bf16.mxu1 %v269_v5  ;;  %v271_v11 = vld [vmem:[%s356_s0 + $0x18] sm:$0xff]  }
   0x7   :  { %223 = vmatpush3.bf16.msra.mxu0 %v261_v1  ;;  %253 = vmatpush3.bf16.msra.mxu1 %v261_v1 }
   0x8   :  { %224 = vmatprep.subr.bf16.mxu0 %v262_v2  ;;  %246 = vmatprep.subr.bf16.mxu1 %v262_v2 }
   0xb   :  { %225 = vmatpush3.bf16.msra.mxu0 %v262_v2  ;;  %254 = vmatpush3.bf16.msra.mxu1 %v262_v2 }
   0xc   :  { %226 = vmatprep.subr.bf16.mxu0 %v263_v3  ;;  %247 = vmatprep.subr.bf16.mxu1 %v263_v3 }
   0xf   :  { %227 = vmatpush3.bf16.msra.mxu0 %v263_v3  ;;  %255 = vmatpush3.bf16.msra.mxu1 %v263_v3 }
  0x10   :  { %228 = vmatprep.subr.bf16.mxu0 %v264_v6  ;;  %248 = vmatprep.subr.bf16.mxu1 %v264_v6 }
  0x13   :  { %229 = vmatpush3.bf16.msra.mxu0 %v264_v6  ;;  %256 = vmatpush3.bf16.msra.mxu1 %v264_v6 }
  0x14   :  { %230 = vmatprep.subr.bf16.mxu0 %v265_v7  ;;  %249 = vmatprep.subr.bf16.mxu1 %v265_v7 }
  0x17   :  { %231 = vmatpush3.bf16.msra.mxu0 %v265_v7  ;;  %257 = vmatpush3.bf16.msra.mxu1 %v265_v7 }
  0x18   :  { %232 = vmatprep.subr.bf16.mxu0 %v266_v8  ;;  %250 = vmatprep.subr.bf16.mxu1 %v266_v8 }
  0x1b   :  { %233 = vmatpush3.bf16.msra.mxu0 %v266_v8  ;;  %258 = vmatpush3.bf16.msra.mxu1 %v266_v8 }
  0x1c   :  { %234 = vmatprep.subr.bf16.mxu0 %v267_v9  ;;  %251 = vmatprep.subr.bf16.mxu1 %v267_v9 }
  0x1f   :  { %235 = vmatpush3.bf16.msra.mxu0 %v267_v9  ;;  %259 = vmatpush3.bf16.msra.mxu1 %v267_v9 }
  0x22   :  { %237 = vmatmul.mubr.bf16.vlgmr.msra.gmra.mrb[0].mxu0 %v270_v10  ;;  %241 = vmatmul.mubr.bf16.vlgmr.msra.gmra.mrb[0].mxu1 %v271_v11 }
  0xf5   :  { %v238_v13 = vpop.f32.mrb[0].mxu0  ;;  %v242_v14 = vpop.f32.mrb[0].mxu1 }
  0xf6   :  { %v161_v15 = vadd.f32 %v238_v13, %v195_v12  ;;  %v177_v16 = vadd.f32 %v242_v14, %v195_v12  ;;  %v152_v17 = vpop.f32.mrb[1].mxu0  ;;  %v168_v18 = vpop.f32.mrb[1].mxu1 }
  0xf7   :  { %v153_v19 = vadd.f32 %v195_v12, %v152_v17  ;;  %v169_v20 = vadd.f32 %v195_v12, %v168_v18  ;;  %v239_v21 = vpop.f32.mrb[2].mxu0  ;;  %v243_v22 = vpop.f32.mrb[2].mxu1 }
  0xf8   :  { %185 = vst [vmem:[%s358_s3 + $0x10] sm:$0xff] %v161_v15  ;;  %189 = vst [vmem:[%s358_s3 + $0x30] sm:$0xff] %v177_v16  ;;  %v164_v23 = vadd.f32 %v239_v21, %v195_v12  ;;  %v180_v24 = vadd.f32 %v243_v22, %v195_v12  ;;  %v155_v25 = vpop.f32.mrb[3].mxu0  ;;  %v171_v26 = vpop.f32.mrb[3].mxu1 }
  0xf9   :  { %183 = vst [vmem:[%s358_s3] sm:$0xff] %v153_v19  ;;  %187 = vst [vmem:[%s358_s3 + $0x20] sm:$0xff] %v169_v20  ;;  %v156_v27 = vadd.f32 %v195_v12, %v155_v25  ;;  %v172_v28 = vadd.f32 %v195_v12, %v171_v26 }
  0xfa   :  { %186 = vst [vmem:[%s358_s3 + $0x18] sm:$0xff] %v164_v23  ;;  %190 = vst [vmem:[%s358_s3 + $0x38] sm:$0xff] %v180_v24 }
  0xfb   :  { %184 = vst [vmem:[%s358_s3 + $0x8] sm:$0xff] %v156_v27  ;;  %188 = vst [vmem:[%s358_s3 + $0x28] sm:$0xff] %v172_v28 }

// kernel: _lambda_.2
= control target key start
LH: loop header
LB: loop body
LE: loop exit
PB: predicated region body
PF: predicated region fallthrough
CT: control target
= control target key end

     0   :  { %17 = vsyncpa [#allocation7], 0  ;;  %s5432_s0 = inlined_call_operand.vmem [shape: bf16[64,128], index: 0, kind: input, shape index: {}]   ;;  %s5433_s1 = inlined_call_operand.hbm [shape: bf16[128,512], index: 1, kind: input, shape index: {}]   ;;  %s5434_s2 = inlined_call_operand.hbm [shape: bf16[128,512], index: 2, kind: input, shape index: {}]   ;;  %s5435_s3 = inlined_call_operand.vmem [shape: f32[1,512], index: 3, kind: input, shape index: {}]   ;;  %s5436_s4 = inlined_call_operand.hbm [shape: bf16[128,512], index: 4, kind: input, shape index: {}]   ;;  %s5437_s5 = inlined_call_operand.hbm [shape: bf16[128,512], index: 5, kind: input, shape index: {}]   ;;  %s5438_s6 = inlined_call_operand.vmem [shape: f32[1,512], index: 6, kind: input, shape index: {}]   ;;  %s5439_s7 = inlined_call_operand.vmem [shape: f32[2,8,128], index: 7, kind: input, shape index: {}]   ;;  %s5440_s8 = inlined_call_operand.vmem [shape: f32[2,8,128], index: 8, kind: input, shape index: {}]   ;;  %s5441_s9 = inlined_call_operand.vmem [shape: bf16[64,128], index: 9, kind: output, shape index: {0}]   ;;  %s5442_s10 = inlined_call_operand.vmem [shape: f32[2,8,128], index: 10, kind: output, shape index: {1}]   ;;  %s5443_s11 = inlined_call_operand.vmem [shape: f32[2,8,128], index: 11, kind: output, shape index: {2}]  }
   0x1   :  { %18 = vsyncpa [#allocation9], 0 }
   0x2   :  { %19 = vsyncpa [#allocation12], 0  ;;  %s4651_s17 = smov 0  }
   0x3 LB: > { %5455 = sst [smem:[#allocation16_spill]] %s4582_s17  ;;  %s4657_s18 = sadd.s32 4294967295, %s4582_s17   ;;  %s4582_s17 = sphi %s4651_s17, %s25_s17  }
   0x4   : > { %p3766_p0 = scmp.ge.s32.totalorder %s4582_s17, 1  ;;  %p292_p1 = scmp.lt.s32.totalorder %s4582_s17, 3 }
   0x5   : > { %p5445_p3 = scmp.eq.s32.totalorder %s4657_s18, 0  ;;  %s4584_s20 = smov [#allocation8]  }
   0x6   : > { %p4663_p4 = pnand %p3766_p0, %p292_p1  ;;  %s317_s21 = sshll.u32 %s4584_s20, 4  ;;  %s4667_s21 = int_to_ptr.vmem [resolvable:$true] %s317_s21 }
   0x7   : > { %s4585_s22 = smov [#allocation6]   ;;  %s4586_s25 = smov [#allocation10]  }
   0x8   : > { %s5456_s19 = scalar_select %p4663_p4, 1, 0 }
   0x9   : > { %p4142_p5 = pneg %p4663_p4  ;;  %s304_s23 = sshll.u32 %s4585_s22, 4  ;;  %s4671_s23 = int_to_ptr.vmem [resolvable:$true] %s304_s23 }
   0xa   : > { %s333_s26 = sshll.u32 %s4586_s25, 4  ;;  %s4587_s27 = smov [#allocation11]   ;;  %s4679_s26 = int_to_ptr.vmem [resolvable:$true] %s333_s26 }
   0xb   : > { %p4675_p6 = pnand %p5445_p3, %p4142_p5  ;;  %s4681_s28 = sshll.u32 %s4587_s27, 4  ;;  %s347_s28 = int_to_ptr.vmem [resolvable:$true] %s4681_s28 }
   0xc   : > { %s4452_s12 = scalar_lea.hbm %s5434_s2, 4096 }
   0xd   : > { %p4453_p7 = scmp.ne.s32.totalorder %s5434_s2, %s4452_s12  ;;  %p4691_p8 = pneg %p4675_p6 }
   0xe   : > { %p4459_p11 = scmp.lt.u32.totalorder %s4452_s12, %s5434_s2 }
   0xf   : > { %p4455_p9 = pnand %p4691_p8, %p4453_p7 }
  0x11   : > { %p4456_p10 = pneg %p4455_p9 }
  0x13   : > { %p4461_p12 = pnand %p4459_p11, %p4456_p10 }
  0x15   : > { %4464 = shalt.err (!%p4461_p12)
}
  0x16   : > { %s4465_s22 = scalar_lea.vmem %s4667_s21, 4096  ;;  %p4473_p5 = scmp.lt.s32.totalorder %s4667_s21, %s4667_s21 }
  0x17   : > { %p4466_p13 = scmp.ne.s32.totalorder %s4667_s21, %s4465_s22  ;;  %p4474_p2 = scmp.lt.s32.totalorder %s4465_s22, %s4465_s22 }
  0x19   : > { %p4468_p0 = pnand %p4466_p13, %p4691_p8  ;;  %p4475_p7 = por %p4474_p2, %p4473_p5 }
  0x1b   : > { %p4469_p1 = pneg %p4468_p0 }
  0x1d   : > { %p4476_p9 = pnand %p4475_p7, %p4469_p1 }
  0x1f   : > { %4479 = shalt.err (!%p4476_p9)
}
  0x20   : > { %s4588_s25 = smov 256   ;;  %s4589_s27 = smov 16  }
  0x21   : > { %4148 = dma.hbm_to_vmem [thread:$0]  (!%p4675_p6), %s5434_s2, 4096, %s4667_s21, [#allocation9], %s4588_s25, %s4588_s25, %s4589_s27  }
  0x22   : > { %s4480_s14 = scalar_lea.hbm %s5433_s1, 4096 }
  0x23   : > { %p4481_p2 = scmp.ne.s32.totalorder %s5433_s1, %s4480_s14  ;;  %p4487_p12 = scmp.lt.u32.totalorder %s4480_s14, %s5433_s1 }
  0x25   : > { %p4483_p10 = pnand %p4481_p2, %p4691_p8 }
  0x27   : > { %p4484_p11 = pneg %p4483_p10 }
  0x29   : > { %p4489_p13 = pnand %p4487_p12, %p4484_p11 }
  0x2b   : > { %4492 = shalt.err (!%p4489_p13)
}
  0x2c   : > { %s4493_s21 = scalar_lea.vmem %s4671_s23, 4096  ;;  %p4501_p7 = scmp.lt.s32.totalorder %s4671_s23, %s4671_s23 }
  0x2d   : > { %p4494_p0 = scmp.ne.s32.totalorder %s4671_s23, %s4493_s21  ;;  %p4502_p9 = scmp.lt.s32.totalorder %s4493_s21, %s4493_s21 }
  0x2f   : > { %p4496_p1 = pnand %p4494_p0, %p4691_p8  ;;  %p4503_p2 = por %p4502_p9, %p4501_p7 }
  0x31   : > { %p4497_p5 = pneg %p4496_p1 }
  0x33   : > { %p4504_p10 = pnand %p4503_p2, %p4497_p5 }
  0x35   : > { %4507 = shalt.err (!%p4504_p10)
}
  0x36   : > { %4145 = dma.hbm_to_vmem [thread:$0]  (!%p4675_p6), %s5433_s1, 4096, %s4671_s23, [#allocation7], %s4588_s25, %s4588_s25, %s4589_s27  }
  0x37   : > { %s4508_s13 = scalar_lea.hbm %s5436_s4, 4096 }
  0x38   : > { %p4509_p11 = scmp.ne.s32.totalorder %s5436_s4, %s4508_s13  ;;  %p4515_p0 = scmp.lt.u32.totalorder %s4508_s13, %s5436_s4 }
  0x3a   : > { %p4511_p12 = pnand %p4509_p11, %p4691_p8 }
  0x3c   : > { %p4512_p13 = pneg %p4511_p12 }
  0x3e   : > { %p4517_p1 = pnand %p4515_p0, %p4512_p13 }
  0x40   : > { %4520 = shalt.err (!%p4517_p1)
}
  0x41   : > { %s4521_s23 = scalar_lea.vmem %s4679_s26, 4096  ;;  %p4529_p2 = scmp.lt.s32.totalorder %s4679_s26, %s4679_s26 }
  0x42   : > { %p4522_p5 = scmp.ne.s32.totalorder %s4679_s26, %s4521_s23  ;;  %p4530_p10 = scmp.lt.s32.totalorder %s4521_s23, %s4521_s23 }
  0x44   : > { %p4524_p7 = pnand %p4522_p5, %p4691_p8  ;;  %p4531_p11 = por %p4530_p10, %p4529_p2 }
  0x46   : > { %p4525_p9 = pneg %p4524_p7 }
  0x48   : > { %p4532_p12 = pnand %p4531_p11, %p4525_p9 }
  0x4a   : > { %4535 = shalt.err (!%p4532_p12)
}
  0x4b   : > { %4151 = dma.hbm_to_vmem [thread:$0]  (!%p4675_p6), %s5436_s4, 4096, %s4679_s26, [#allocation9], %s4588_s25, %s4588_s25, %s4589_s27  }
  0x4c   : > { %s4536_s12 = scalar_lea.hbm %s5437_s5, 4096 }
  0x4d   : > { %p4537_p13 = scmp.ne.s32.totalorder %s5437_s5, %s4536_s12  ;;  %p4543_p5 = scmp.lt.u32.totalorder %s4536_s12, %s5437_s5 }
  0x4f   : > { %p4539_p0 = pnand %p4537_p13, %p4691_p8 }
  0x51   : > { %p4540_p1 = pneg %p4539_p0 }
  0x53   : > { %p4545_p7 = pnand %p4543_p5, %p4540_p1 }
  0x55   : > { %4548 = shalt.err (!%p4545_p7)
}
  0x56   : > { %s4549_s22 = scalar_lea.vmem %s347_s28, 4096  ;;  %p4557_p11 = scmp.lt.s32.totalorder %s347_s28, %s347_s28 }
  0x57   : > { %p4550_p9 = scmp.ne.s32.totalorder %s347_s28, %s4549_s22  ;;  %p4558_p12 = scmp.lt.s32.totalorder %s4549_s22, %s4549_s22 }
  0x59   : > { %p4552_p2 = pnand %p4550_p9, %p4691_p8  ;;  %p4559_p3 = por %p4558_p12, %p4557_p11 }
  0x5b   : > { %p4553_p10 = pneg %p4552_p2 }
  0x5d   : > { %p4560_p4 = pnand %p4559_p3, %p4553_p10 }
  0x5f   : > { %4563 = shalt.err (!%p4560_p4)
}
  0x60   : > { %4154 = dma.hbm_to_vmem [thread:$0]  (!%p4675_p6), %s5437_s5, 4096, %s347_s28, [#allocation12], %s4588_s25, %s4588_s25, %s4589_s27  }
  0x61   : > { %p5459_p13 = scmp.ne.s32.totalorder %s5456_s19, 0 }
  0x63   : > { %380 = sbr.rel (%p5459_p13) target bundleno = 2214 (0x8a6), region = 56 }
  0x6a   : > { %p5460_p8 = scmp.eq.s32.totalorder %s4657_s18, 0 }
  0x6c   : > { %4569 = dma.done.wait (%p5460_p8), [#allocation7], 4096   ;;  %p5461_p0 = pmov %p5460_p8 }
  0x6e   : > { %4571 = vsyncadd (%p5461_p0), [#allocation7], 4294963200  ;;  %p5462_p3 = pmov %p5461_p0 }
  0x6f   : > { %p5463_p4 = pmov %p5461_p0 }
  0x70   : > { %4573 = dma.done.wait (%p5462_p3), [#allocation9], 8192  }
  0x71   : > { %4575 = vsyncadd (%p5463_p4), [#allocation9], 4294959104  ;;  %p5464_p1 = pmov %p5461_p0 }
  0x72   : > { %p5465_p6 = pmov %p5461_p0 }
  0x73   : > { %4577 = dma.done.wait (%p5464_p1), [#allocation12], 4096  }
  0x74   : > { %4579 = vsyncadd (%p5465_p6), [#allocation12], 4294963200  ;;  %s3777_s19 = sshll.u32 %s4657_s18, 2  ;;  %p5466_p7 = scmp.ne.s32.totalorder %s4657_s18, 0 }
  0x75   : > { %p433_p5 = scmp.lt.s32.totalorder %s3777_s19, 7  ;;  %v449_v0 = vld [vmem:[%s5439_s7] sm:$0xff] (!%p5466_p7)  ;;  %v450_v1 = vld [vmem:[%s5439_s7 + $0x8] sm:$0xff] (!%p5466_p7) }
  0x76   : > { %448 = sbr.rel (%p5466_p7) target bundleno = 125 (0x7d), region = 76  ;;  %v453_v2 = vld [vmem:[%s5440_s8] sm:$0xff] (!%p5466_p7)  ;;  %451 = vst [vmem:[#allocation4] sm:$0xff] (!%p5466_p7), %v449_v0  ;;  %452 = vst [vmem:[#allocation4 + $0x8] sm:$0xff] (!%p5466_p7), %v450_v1  ;;  %v454_v3 = vld [vmem:[%s5440_s8 + $0x8] sm:$0xff] (!%p5466_p7) }
  0x77   : > { %s5506_s19 = smov (!%p433_p5, %s3777_s19), 7  ;;  %455 = vst [vmem:[#allocation5] sm:$0xff] (!%p5466_p7), %v453_v2  ;;  %456 = vst [vmem:[#allocation5 + $0x8] sm:$0xff] (!%p5466_p7), %v454_v3 }
  0x78   : > { %s3778_s24 = sshll.u32 %s5506_s19, 2 }
  0x79   : > { %s4807_s25 = scalar_lea.vmem %s5432_s0, %s3778_s24  ;;  %s4812_s17 = scalar_lea.vmem %s5441_s9, %s3778_s24 }
  0x7d PF: > { %v4178_v4 = vld [vmem:[#allocation6 + $0x4] ss:$16 sps:$4 sm:$0xff]   ;;  %v4180_v5 = vld [vmem:[#allocation6 + $0xc] ss:$16 sps:$4 sm:$0xff]   ;;  %v5451_v6 = vmov 0   ;;  %p4108_p9 = scmp.ne.s32.totalorder %s4657_s18, 1 }
  0x7e   : > { %719 = vmatprep.mubr.bf16.mxu0 %v5451_v6  ;;  %772 = vmatprep.mubr.bf16.mxu1 %v5451_v6  ;;  %v4182_v7 = vld [vmem:[#allocation6] ss:$16 sps:$4 sm:$0xff]   ;;  %v4183_v8 = vld [vmem:[#allocation6 + $0x8] ss:$16 sps:$4 sm:$0xff]   ;;  %v4184_v9 = vld [vmem:[#allocation6 + $0x24] ss:$16 sps:$4 sm:$0xff]  }
  0x7f   : > { %687 = vmatprep.subr.bf16.mxu0 %v4178_v4  ;;  %740 = vmatprep.subr.bf16.mxu1 %v4180_v5  ;;  %v4186_v10 = vld [vmem:[#allocation6 + $0x2c] ss:$16 sps:$4 sm:$0xff]   ;;  %v4188_v11 = vld [vmem:[#allocation6 + $0x20] ss:$16 sps:$4 sm:$0xff]   ;;  %v4189_v12 = vld [vmem:[#allocation6 + $0x28] ss:$16 sps:$4 sm:$0xff]  }
  0x80   : > { %688 = vmatpush1.bf16.msra.mxu0 %v4182_v7  ;;  %741 = vmatpush1.bf16.msra.mxu1 %v4183_v8  ;;  %v4190_v13 = vld [vmem:[#allocation6 + $0x44] ss:$16 sps:$4 sm:$0xff]   ;;  %v4192_v14 = vld [vmem:[#allocation6 + $0x4c] ss:$16 sps:$4 sm:$0xff]   ;;  %v4194_v15 = vld [vmem:[#allocation6 + $0x40] ss:$16 sps:$4 sm:$0xff]  }
  0x81   : > { %689 = vmatprep.subr.bf16.mxu0 %v4184_v9  ;;  %742 = vmatprep.subr.bf16.mxu1 %v4186_v10  ;;  %v4195_v16 = vld [vmem:[#allocation6 + $0x48] ss:$16 sps:$4 sm:$0xff]   ;;  %v4196_v17 = vld [vmem:[#allocation6 + $0x64] ss:$16 sps:$4 sm:$0xff]   ;;  %v4198_v18 = vld [vmem:[#allocation6 + $0x6c] ss:$16 sps:$4 sm:$0xff]   ;;  %v495_v10 = vlaneseq }
  0x82   : > { %v4200_v19 = vld [vmem:[#allocation6 + $0x60] ss:$16 sps:$4 sm:$0xff]   ;;  %v4201_v20 = vld [vmem:[#allocation6 + $0x68] ss:$16 sps:$4 sm:$0xff]   ;;  %v4202_v21 = vld [vmem:[#allocation6 + $0x84] ss:$16 sps:$4 sm:$0xff]  }
  0x83   : > { %v4204_v22 = vld [vmem:[#allocation6 + $0x8c] ss:$16 sps:$4 sm:$0xff]   ;;  %v4206_v23 = vld [vmem:[#allocation6 + $0x80] ss:$16 sps:$4 sm:$0xff]   ;;  %v4207_v24 = vld [vmem:[#allocation6 + $0x88] ss:$16 sps:$4 sm:$0xff]  }
  0x84   : > { %690 = vmatpush1.bf16.msra.mxu0 %v4188_v11  ;;  %743 = vmatpush1.bf16.msra.mxu1 %v4189_v12  ;;  %v4208_v25 = vld [vmem:[#allocation6 + $0xa4] ss:$16 sps:$4 sm:$0xff]   ;;  %v4210_v26 = vld [vmem:[#allocation6 + $0xac] ss:$16 sps:$4 sm:$0xff]   ;;  %v4212_v27 = vld [vmem:[#allocation6 + $0xa0] ss:$16 sps:$4 sm:$0xff]  }
  0x85   : > { %691 = vmatprep.subr.bf16.mxu0 %v4190_v13  ;;  %744 = vmatprep.subr.bf16.mxu1 %v4192_v14  ;;  %v4213_v28 = vld [vmem:[#allocation6 + $0xa8] ss:$16 sps:$4 sm:$0xff]   ;;  %v4214_v29 = vld [vmem:[#allocation6 + $0xc4] ss:$16 sps:$4 sm:$0xff]   ;;  %v4216_v30 = vld [vmem:[#allocation6 + $0xcc] ss:$16 sps:$4 sm:$0xff]  }
  0x86   : > { %v4218_v31 = vld [vmem:[#allocation6 + $0xc0] ss:$16 sps:$4 sm:$0xff]   ;;  %v4219_v32 = vld [vmem:[#allocation6 + $0xc8] ss:$16 sps:$4 sm:$0xff]   ;;  %v4220_v33 = vld [vmem:[#allocation6 + $0xe4] ss:$16 sps:$4 sm:$0xff]  }
  0x87   : > { %v4222_v34 = vld [vmem:[#allocation6 + $0xec] ss:$16 sps:$4 sm:$0xff]   ;;  %v4224_v35 = vld [vmem:[#allocation6 + $0xe0] ss:$16 sps:$4 sm:$0xff]   ;;  %v4225_v36 = vld [vmem:[#allocation6 + $0xe8] ss:$16 sps:$4 sm:$0xff]  }
  0x88   : > { %692 = vmatpush1.bf16.msra.mxu0 %v4194_v15  ;;  %745 = vmatpush1.bf16.msra.mxu1 %v4195_v16  ;;  %v4830_v37 = vld [vmem:[#allocation8 + $0x4] ss:$16 sps:$4 sm:$0xff]   ;;  %v4832_v38 = vld [vmem:[#allocation8 + $0xc] ss:$16 sps:$4 sm:$0xff]   ;;  %v4835_v40 = vld [vmem:[#allocation8] ss:$16 sps:$4 sm:$0xff]  }
  0x89   : > { %693 = vmatprep.subr.bf16.mxu0 %v4196_v17  ;;  %746 = vmatprep.subr.bf16.mxu1 %v4198_v18  ;;  %v4226_v39 = vld [vmem:[%s4807_s25] sm:$0xff]   ;;  %v4837_v41 = vld [vmem:[#allocation8 + $0x8] ss:$16 sps:$4 sm:$0xff]   ;;  %v4843_v43 = vld [vmem:[#allocation8 + $0x2c] ss:$16 sps:$4 sm:$0xff]   ;;  %v4968_v11 = vshrl.u32 %v495_v10, 7 }
  0x8a   : > { %v4839_v42 = vld [vmem:[#allocation8 + $0x24] ss:$16 sps:$4 sm:$0xff]   ;;  %v4845_v44 = vld [vmem:[#allocation8 + $0x20] ss:$16 sps:$4 sm:$0xff]   ;;  %v4849_v45 = vld [vmem:[#allocation8 + $0x28] ss:$16 sps:$4 sm:$0xff]  }
  0x8b   : > { %v4851_v46 = vld [vmem:[#allocation8 + $0x44] ss:$16 sps:$4 sm:$0xff]   ;;  %v4855_v47 = vld [vmem:[#allocation8 + $0x4c] ss:$16 sps:$4 sm:$0xff]   ;;  %v4862_v49 = vld [vmem:[#allocation8 + $0x40] ss:$16 sps:$4 sm:$0xff]  }
  0x8c   : > { %694 = vmatpush1.bf16.msra.mxu0 %v4200_v19  ;;  %747 = vmatpush1.bf16.msra.mxu1 %v4201_v20  ;;  %v4263_v48 = vld [vmem:[%s4807_s25 + $0x8] sm:$0xff]   ;;  %v4868_v51 = vld [vmem:[#allocation8 + $0x64] ss:$16 sps:$4 sm:$0xff]   ;;  %v4874_v53 = vld [vmem:[#allocation8 + $0x60] ss:$16 sps:$4 sm:$0xff]   ;;  %5467 = vst [vmem:[#allocation17_spill] sm:$0xff] %v4968_v11 }
  0x8d   : > { %695 = vmatprep.subr.bf16.mxu0 %v4202_v21  ;;  %748 = vmatprep.subr.bf16.mxu1 %v4204_v22  ;;  %v4864_v50 = vld [vmem:[#allocation8 + $0x48] ss:$16 sps:$4 sm:$0xff]   ;;  %v4870_v52 = vld [vmem:[#allocation8 + $0x6c] ss:$16 sps:$4 sm:$0xff]   ;;  %v4878_v55 = vld [vmem:[#allocation8 + $0x84] ss:$16 sps:$4 sm:$0xff]  }
  0x8e   : > { %v4876_v54 = vld [vmem:[#allocation8 + $0x68] ss:$16 sps:$4 sm:$0xff]   ;;  %v4882_v56 = vld [vmem:[#allocation8 + $0x8c] ss:$16 sps:$4 sm:$0xff]   ;;  %v4884_v57 = vld [vmem:[#allocation8 + $0x80] ss:$16 sps:$4 sm:$0xff]  }
  0x8f   : > { %v4886_v58 = vld [vmem:[#allocation8 + $0x88] ss:$16 sps:$4 sm:$0xff]   ;;  %v4890_v59 = vld [vmem:[#allocation8 + $0xa4] ss:$16 sps:$4 sm:$0xff]   ;;  %v4892_v60 = vld [vmem:[#allocation8 + $0xac] ss:$16 sps:$4 sm:$0xff]  }
  0x90   : > { %696 = vmatpush1.bf16.msra.mxu0 %v4206_v23  ;;  %749 = vmatpush1.bf16.msra.mxu1 %v4207_v24  ;;  %v4898_v61 = vld [vmem:[#allocation8 + $0xa0] ss:$16 sps:$4 sm:$0xff]   ;;  %v4900_v62 = vld [vmem:[#allocation8 + $0xa8] ss:$16 sps:$4 sm:$0xff]   ;;  %v4902_v63 = vld [vmem:[#allocation8 + $0xc4] ss:$16 sps:$4 sm:$0xff]  }
  0x91   : > { %697 = vmatprep.subr.bf16.mxu0 %v4208_v25  ;;  %750 = vmatprep.subr.bf16.mxu1 %v4210_v26  ;;  %v4904_v0 = vld [vmem:[#allocation8 + $0xcc] ss:$16 sps:$4 sm:$0xff]   ;;  %v4910_v1 = vld [vmem:[#allocation8 + $0xc0] ss:$16 sps:$4 sm:$0xff]   ;;  %v4912_v2 = vld [vmem:[#allocation8 + $0xc8] ss:$16 sps:$4 sm:$0xff]  }
  0x92   : > { %v4914_v3 = vld [vmem:[#allocation8 + $0xe4] ss:$16 sps:$4 sm:$0xff]   ;;  %v4916_v4 = vld [vmem:[#allocation8 + $0xec] ss:$16 sps:$4 sm:$0xff]   ;;  %v4922_v5 = vld [vmem:[#allocation8 + $0xe0] ss:$16 sps:$4 sm:$0xff]  }
  0x93   : > { %v4924_v7 = vld [vmem:[#allocation8 + $0xe8] ss:$16 sps:$4 sm:$0xff]   ;;  %v816_v8 = vld [vmem:[#allocation4] sm:$0xff]  ;;  %v5450_v12 = vsub.s32 0, %v4968_v11  ;;  %v5449_v13 = vsub.s32 2, %v4968_v11  ;;  %v5447_v15 = vsub.s32 3, %v4968_v11 }
  0x94   : > { %698 = vmatpush1.bf16.msra.mxu0 %v4212_v27  ;;  %751 = vmatpush1.bf16.msra.mxu1 %v4213_v28  ;;  %v817_v9 = vpack.c.bf16 %v816_v8, %v816_v8  ;;  %v493_v14 = vld [vmem:[%s5435_s3] sm:$0xf]  ;;  %v5448_v16 = vsub.s32 1, %v4968_v11 }
  0x95   : > { %699 = vmatprep.subr.bf16.mxu0 %v4214_v29  ;;  %752 = vmatprep.subr.bf16.mxu1 %v4216_v30  ;;  %v498_v17 = vrot.slane %v493_v14, %v5450_v12  ;;  %v506_v18 = vrot.slane %v493_v14, %v5449_v13  ;;  %v510_v21 = vrot.slane %v493_v14, %v5447_v15 }
  0x96   : > { %v502_v24 = vrot.slane %v493_v14, %v5448_v16 }
  0x98   : > { %700 = vmatpush1.bf16.msra.mxu0 %v4218_v31  ;;  %753 = vmatpush1.bf16.msra.mxu1 %v4219_v32 }
  0x99   : > { %701 = vmatprep.subr.bf16.mxu0 %v4220_v33  ;;  %754 = vmatprep.subr.bf16.mxu1 %v4222_v34 }
  0x9c   : > { %702 = vmatpush1.bf16.msra.mxu0 %v4224_v35  ;;  %755 = vmatpush1.bf16.msra.mxu1 %v4225_v36 }
  0x9d   : > { %1010 = vmatprep.subr.bf16.mxu0 %v4830_v37  ;;  %1051 = vmatprep.subr.bf16.mxu1 %v4832_v38 }
  0x9f   : > { %720 = vmatmul.mubr.bf16.vlgmr.msra.gmra.mrb[0].mxu0 %v4226_v39  ;;  %773 = vmatmul.mubr.bf16.vlgmr.msra.gmra.mrb[0].mxu1 %v4226_v39 }
  0xa0   : > { %1011 = vmatpush1.bf16.msra.mxu0 %v4835_v40  ;;  %1052 = vmatpush1.bf16.msra.mxu1 %v4837_v41 }
  0xa1   : > { %1012 = vmatprep.subr.bf16.mxu0 %v4839_v42  ;;  %1053 = vmatprep.subr.bf16.mxu1 %v4843_v43 }
  0xa2   : > { %729 = vmatprep.mubr.bf16.mxu0 %v5451_v6  ;;  %782 = vmatprep.mubr.bf16.mxu1 %v5451_v6 }
  0xa4   : > { %1013 = vmatpush1.bf16.msra.mxu0 %v4845_v44  ;;  %1054 = vmatpush1.bf16.msra.mxu1 %v4849_v45 }
  0xa5   : > { %1014 = vmatprep.subr.bf16.mxu0 %v4851_v46  ;;  %1055 = vmatprep.subr.bf16.mxu1 %v4855_v47 }
  0xa7   : > { %730 = vmatmul.mubr.bf16.gmra.mrb[4].mxu0 %v4263_v48  ;;  %783 = vmatmul.mubr.bf16.gmra.mrb[4].mxu1 %v4263_v48 }
  0xa8   : > { %1015 = vmatpush1.bf16.msra.mxu0 %v4862_v49  ;;  %1056 = vmatpush1.bf16.msra.mxu1 %v4864_v50 }
  0xa9   : > { %1016 = vmatprep.subr.bf16.mxu0 %v4868_v51  ;;  %1057 = vmatprep.subr.bf16.mxu1 %v4870_v52 }
  0xaa   : > { %1042 = vmatprep.mubr.bf16.mxu0 %v5451_v6  ;;  %1083 = vmatprep.mubr.bf16.mxu1 %v5451_v6 }
  0xac   : > { %1017 = vmatpush1.bf16.msra.mxu0 %v4874_v53  ;;  %1058 = vmatpush1.bf16.msra.mxu1 %v4876_v54 }
  0xad   : > { %1018 = vmatprep.subr.bf16.mxu0 %v4878_v55  ;;  %1059 = vmatprep.subr.bf16.mxu1 %v4882_v56 }
  0xb0   : > { %1019 = vmatpush1.bf16.msra.mxu0 %v4884_v57  ;;  %1060 = vmatpush1.bf16.msra.mxu1 %v4886_v58 }
  0xb1   : > { %1020 = vmatprep.subr.bf16.mxu0 %v4890_v59  ;;  %1061 = vmatprep.subr.bf16.mxu1 %v4892_v60 }
  0xb4   : > { %1021 = vmatpush1.bf16.msra.mxu0 %v4898_v61  ;;  %1062 = vmatpush1.bf16.msra.mxu1 %v4900_v62 }
  0xb5   : > { %1022 = vmatprep.subr.bf16.mxu0 %v4902_v63  ;;  %1063 = vmatprep.subr.bf16.mxu1 %v4904_v0 }
  0xb8   : > { %1023 = vmatpush1.bf16.msra.mxu0 %v4910_v1  ;;  %1064 = vmatpush1.bf16.msra.mxu1 %v4912_v2 }
  0xb9   : > { %1024 = vmatprep.subr.bf16.mxu0 %v4914_v3  ;;  %1065 = vmatprep.subr.bf16.mxu1 %v4916_v4 }
  0xbc   : > { %1025 = vmatpush1.bf16.msra.mxu0 %v4922_v5  ;;  %1066 = vmatpush1.bf16.msra.mxu1 %v4924_v7 }
  0xbd   : > { %1319 = vmatprep.subr.bf16.mxu0 %v4830_v37  ;;  %1360 = vmatprep.subr.bf16.mxu1 %v4832_v38 }
  0xbf   : > { %1043 = vmatmul.mubr.bf16.vlgmr.msra.gmra.mrb[8].mxu0 %v817_v9  ;;  %1084 = vmatmul.mubr.bf16.vlgmr.msra.gmra.mrb[8].mxu1 %v817_v9 }
  0xc0   : > { %1320 = vmatpush1.bf16.msra.mxu0 %v4835_v40  ;;  %1361 = vmatpush1.bf16.msra.mxu1 %v4837_v41 }
  0xc1   : > { %1321 = vmatprep.subr.bf16.mxu0 %v4839_v42  ;;  %1362 = vmatprep.subr.bf16.mxu1 %v4843_v43 }
  0xc2   : > { %1351 = vmatprep.mubr.bf16.mxu0 %v5451_v6  ;;  %1392 = vmatprep.mubr.bf16.mxu1 %v5451_v6 }
  0xc4   : > { %1322 = vmatpush1.bf16.msra.mxu0 %v4845_v44  ;;  %1363 = vmatpush1.bf16.msra.mxu1 %v4849_v45 }
  0xc5   : > { %1323 = vmatprep.subr.bf16.mxu0 %v4851_v46  ;;  %1364 = vmatprep.subr.bf16.mxu1 %v4855_v47 }
  0xc8   : > { %1324 = vmatpush1.bf16.msra.mxu0 %v4862_v49  ;;  %1365 = vmatpush1.bf16.msra.mxu1 %v4864_v50 }
  0xc9   : > { %1325 = vmatprep.subr.bf16.mxu0 %v4868_v51  ;;  %1366 = vmatprep.subr.bf16.mxu1 %v4870_v52 }
  0xcc   : > { %1326 = vmatpush1.bf16.msra.mxu0 %v4874_v53  ;;  %1367 = vmatpush1.bf16.msra.mxu1 %v4876_v54 }
  0xcd   : > { %1327 = vmatprep.subr.bf16.mxu0 %v4878_v55  ;;  %1368 = vmatprep.subr.bf16.mxu1 %v4882_v56 }
  0xd0   : > { %1328 = vmatpush1.bf16.msra.mxu0 %v4884_v57  ;;  %1369 = vmatpush1.bf16.msra.mxu1 %v4886_v58 }
  0xd1   : > { %1329 = vmatprep.subr.bf16.mxu0 %v4890_v59  ;;  %1370 = vmatprep.subr.bf16.mxu1 %v4892_v60 }
  0xd4   : > { %1330 = vmatpush1.bf16.msra.mxu0 %v4898_v61  ;;  %1371 = vmatpush1.bf16.msra.mxu1 %v4900_v62 }
  0xd5   : > { %1331 = vmatprep.subr.bf16.mxu0 %v4902_v63  ;;  %1372 = vmatprep.subr.bf16.mxu1 %v4904_v0 }
  0xd8   : > { %1332 = vmatpush1.bf16.msra.mxu0 %v4910_v1  ;;  %1373 = vmatpush1.bf16.msra.mxu1 %v4912_v2 }
  0xd9   : > { %1333 = vmatprep.subr.bf16.mxu0 %v4914_v3  ;;  %1374 = vmatprep.subr.bf16.mxu1 %v4916_v4 }
  0xdc   : > { %1334 = vmatpush1.bf16.msra.mxu0 %v4922_v5  ;;  %1375 = vmatpush1.bf16.msra.mxu1 %v4924_v7 }
  0xdd   : > { %1629 = vmatprep.subr.bf16.mxu0 %v4830_v37  ;;  %1670 = vmatprep.subr.bf16.mxu1 %v4832_v38 }
 0x172   : > { %v721_v19 = vpop.f32.mrb[0].mxu0  ;;  %v774_v20 = vpop.f32.mrb[0].mxu1 }
 0x173   : > { %v723_v22 = vpop.f32.mrb[1].mxu0  ;;  %v776_v23 = vpop.f32.mrb[1].mxu1  ;;  %v722_v16 = vadd.f32 %v721_v19, %v498_v17 }
 0x174   : > { %v725_v25 = vpop.f32.mrb[2].mxu0  ;;  %v778_v26 = vpop.f32.mrb[2].mxu1  ;;  %v724_v13 = vadd.f32 %v723_v22, %v502_v24  ;;  %v777_v12 = vadd.f32 %v776_v23, %v510_v21 }
 0x175   : > { %v4985_v27 = vadd.f32 %v725_v25, %v498_v17  ;;  %v727_v28 = vpop.f32.mrb[3].mxu0  ;;  %v4987_v29 = vadd.f32 %v778_v26, %v506_v18  ;;  %v780_v30 = vpop.f32.mrb[3].mxu1 }
 0x176   : > { %v4989_v31 = vadd.f32 %v727_v28, %v502_v24  ;;  %v4991_v32 = vadd.f32 %v780_v30, %v510_v21 }
 0x17a   : > { %v731_v33 = vpop.f32.mrb[4].mxu0  ;;  %v784_v34 = vpop.f32.mrb[4].mxu1 }
 0x17b   : > { %v4993_v35 = vadd.f32 %v731_v33, %v498_v17  ;;  %v733_v36 = vpop.f32.mrb[5].mxu0  ;;  %v4995_v39 = vadd.f32 %v784_v34, %v506_v18  ;;  %v786_v48 = vpop.f32.mrb[5].mxu1  ;;  %v775_v34 = vadd.f32 %v774_v20, %v506_v18 }
 0x17c   : > { %v4997_v8 = vadd.f32 %v733_v36, %v502_v24  ;;  %v735_v9 = vpop.f32.mrb[6].mxu0  ;;  %v4999_v10 = vadd.f32 %v786_v48, %v510_v21  ;;  %v788_v14 = vpop.f32.mrb[6].mxu1 }
 0x17d   : > { %5468 = vst [vmem:[#allocation18_spill] sm:$0xff] %v4993_v35  ;;  %5469 = vst [vmem:[#allocation19_spill] sm:$0xff] %v4995_v39  ;;  %v5001_v25 = vadd.f32 %v735_v9, %v498_v17  ;;  %v737_v26 = vpop.f32.mrb[7].mxu0  ;;  %v5003_v28 = vadd.f32 %v788_v14, %v506_v18  ;;  %v790_v30 = vpop.f32.mrb[7].mxu1 }
 0x17e   : > { %5470 = vst [vmem:[#allocation20_spill] sm:$0xff] %v4997_v8  ;;  %5471 = vst [vmem:[#allocation21_spill] sm:$0xff] %v4999_v10  ;;  %v5005_v15 = vadd.f32 %v737_v26, %v502_v24  ;;  %v5007_v33 = vadd.f32 %v790_v30, %v510_v21 }
 0x17f   : > { %5472 = vst [vmem:[#allocation22_spill] sm:$0xff] %v5001_v25  ;;  %5473 = vst [vmem:[#allocation23_spill] sm:$0xff] %v5003_v28 }
 0x180   : > { %5474 = vst [vmem:[#allocation24_spill] sm:$0xff] %v5005_v15 }
 0x192   : > { %v1044_v36 = vpop.f32.mrb[8].mxu0  ;;  %v1085_v6 = vpop.f32.mrb[8].mxu1 }
 0x193   : > { %v1092_v11 = vadd.f32 %v1044_v36, %v722_v16  ;;  %v1094_v48 = vadd.f32 %v1085_v6, %v775_v34  ;;  %v1046_v10 = vpop.f32.mrb[9].mxu0  ;;  %v1087_v8 = vpop.f32.mrb[9].mxu1  ;;  %v1109_v16 = vld [vmem:[#allocation5] sm:$0xff] }
 0x194   : > { %v1093_v9 = vadd.f32 %v1046_v10, %v724_v13  ;;  %v1095_v25 = vadd.f32 %v1087_v8, %v777_v12  ;;  %v1048_v39 = vpop.f32.mrb[10].mxu0  ;;  %v1089_v14 = vpop.f32.mrb[10].mxu1 }
 0x195   : > { %v1096_v28 = vmul.f32 0.5, %v1092_v11  ;;  %v1049_v35 = vpop.f32.mrb[11].mxu0  ;;  %v1090_v26 = vpop.f32.mrb[11].mxu1 }
 0x196   : > { %v1100_v15 = vmul.f32 0.5, %v1093_v9  ;;  %v1105_v17 = vmul.f32 0.5, %v1095_v25  ;;  %v5475_v25 = vmov 0  }
 0x197   : > { %4372 = vtanh.f32 %v1096_v28 }
 0x198   : > { %4374 = vtanh.f32 %v1100_v15 }
 0x199   : > { %4376 = vtanh.f32 %v1094_v48 }
 0x19a   : > { %4378 = vtanh.f32 %v1105_v17 }
 0x1a1   : > { %v4373_v18 = vpop.eup %4372 }
 0x1a2   : > { %v4375_v19 = vpop.eup %4374  ;;  %v1098_v20 = vadd.f32 1.0, %v4373_v18 }
 0x1a3   : > { %v1102_v21 = vadd.f32 1.0, %v4375_v19  ;;  %v4377_v22 = vpop.eup %4376 }
 0x1a4   : > { %v1099_v6 = vmul.f32 0.5, %v1098_v20  ;;  %v4379_v11 = vpop.eup %4378 }
 0x1a5   : > { %v1103_v13 = vmul.f32 0.5, %v1102_v21  ;;  %v1107_v35 = vadd.f32 1.0, %v4379_v11 }
 0x1a6   : > { %v1111_v12 = vmul.f32 %v4377_v22, %v1099_v6 }
 0x1a7   : > { %v1110_v23 = vmul.f32 %v1109_v16, %v1103_v13  ;;  %v1108_v15 = vmul.f32 0.5, %v1107_v35 }
 0x1a9   : > { %v5009_v24 = vadd.f32 %v1111_v12, %v1110_v23 }
 0x1ab   : > { %4380 = vtanh.f32 %v5009_v24 }
 0x1b5   : > { %v4381_v39 = vpop.eup %4380 }
 0x1b6   : > { %v5012_v8 = vmul.f32 %v4381_v39, %v1108_v15 }
 0x1b8   : > { %v1126_v10 = vpack.c.bf16 %v5012_v8, %v5012_v8 }
 0x1ba   : > { %1352 = vmatmul.mubr.bf16.vlgmr.msra.gmra.mrb[12].mxu0 %v1126_v10  ;;  %1393 = vmatmul.mubr.bf16.vlgmr.msra.gmra.mrb[12].mxu1 %v1126_v10 }
 0x1bb   : > { %1630 = vmatpush1.bf16.msra.mxu0 %v4835_v40  ;;  %1671 = vmatpush1.bf16.msra.mxu1 %v4837_v41 }
 0x1bc   : > { %1631 = vmatprep.subr.bf16.mxu0 %v4839_v42  ;;  %1672 = vmatprep.subr.bf16.mxu1 %v4843_v43 }
 0x1bd   : > { %1661 = vmatprep.mubr.bf16.mxu0 %v5475_v25  ;;  %1702 = vmatprep.mubr.bf16.mxu1 %v5475_v25 }
 0x1bf   : > { %1632 = vmatpush1.bf16.msra.mxu0 %v4845_v44  ;;  %1673 = vmatpush1.bf16.msra.mxu1 %v4849_v45 }
 0x1c0   : > { %1633 = vmatprep.subr.bf16.mxu0 %v4851_v46  ;;  %1674 = vmatprep.subr.bf16.mxu1 %v4855_v47 }
 0x1c3   : > { %1634 = vmatpush1.bf16.msra.mxu0 %v4862_v49  ;;  %1675 = vmatpush1.bf16.msra.mxu1 %v4864_v50 }
 0x1c4   : > { %1635 = vmatprep.subr.bf16.mxu0 %v4868_v51  ;;  %1676 = vmatprep.subr.bf16.mxu1 %v4870_v52 }
 0x1c7   : > { %1636 = vmatpush1.bf16.msra.mxu0 %v4874_v53  ;;  %1677 = vmatpush1.bf16.msra.mxu1 %v4876_v54 }
 0x1c8   : > { %1637 = vmatprep.subr.bf16.mxu0 %v4878_v55  ;;  %1678 = vmatprep.subr.bf16.mxu1 %v4882_v56 }
 0x1cb   : > { %1638 = vmatpush1.bf16.msra.mxu0 %v4884_v57  ;;  %1679 = vmatpush1.bf16.msra.mxu1 %v4886_v58 }
 0x1cc   : > { %1639 = vmatprep.subr.bf16.mxu0 %v4890_v59  ;;  %1680 = vmatprep.subr.bf16.mxu1 %v4892_v60 }
 0x1cf   : > { %1640 = vmatpush1.bf16.msra.mxu0 %v4898_v61  ;;  %1681 = vmatpush1.bf16.msra.mxu1 %v4900_v62 }
 0x1d0   : > { %1641 = vmatprep.subr.bf16.mxu0 %v4902_v63  ;;  %1682 = vmatprep.subr.bf16.mxu1 %v4904_v0 }
 0x1d3   : > { %1642 = vmatpush1.bf16.msra.mxu0 %v4910_v1  ;;  %1683 = vmatpush1.bf16.msra.mxu1 %v4912_v2 }
 0x1d4   : > { %1643 = vmatprep.subr.bf16.mxu0 %v4914_v3  ;;  %1684 = vmatprep.subr.bf16.mxu1 %v4916_v4 }
 0x1d7   : > { %1644 = vmatpush1.bf16.msra.mxu0 %v4922_v5  ;;  %1685 = vmatpush1.bf16.msra.mxu1 %v4924_v7 }
 0x1d8   : > { %1939 = vmatprep.subr.bf16.mxu0 %v4830_v37  ;;  %1980 = vmatprep.subr.bf16.mxu1 %v4832_v38 }
 0x28d   : > { %v1353_v28 = vpop.f32.mrb[12].mxu0  ;;  %v1394_v30 = vpop.f32.mrb[12].mxu1 }
 0x28e   : > { %v1401_v34 = vadd.f32 %v1353_v28, %v4985_v27  ;;  %v1403_v36 = vadd.f32 %v1394_v30, %v4987_v29  ;;  %v1355_v48 = vpop.f32.mrb[13].mxu0  ;;  %v1396_v9 = vpop.f32.mrb[13].mxu1 }
 0x28f   : > { %v1402_v14 = vadd.f32 %v1355_v48, %v4989_v31  ;;  %v1404_v26 = vadd.f32 %v1396_v9, %v4991_v32  ;;  %v1357_v17 = vpop.f32.mrb[14].mxu0  ;;  %v1398_v18 = vpop.f32.mrb[14].mxu1 }
 0x290   : > { %v1405_v19 = vmul.f32 0.5, %v1401_v34  ;;  %v1358_v20 = vpop.f32.mrb[15].mxu0  ;;  %v1399_v21 = vpop.f32.mrb[15].mxu1  ;;  %v4284_v18 = vld [vmem:[#allocation10 + $0x24] ss:$16 sps:$4 sm:$0xff]  }
 0x291   : > { %v1409_v37 = vmul.f32 0.5, %v1402_v14  ;;  %v1414_v38 = vmul.f32 0.5, %v1404_v26  ;;  %v4276_v14 = vld [vmem:[#allocation10] ss:$16 sps:$4 sm:$0xff]   ;;  %v4279_v26 = vld [vmem:[#allocation10 + $0x8] ss:$16 sps:$4 sm:$0xff]  }
 0x292   : > { %4382 = vtanh.f32 %v1405_v19  ;;  %v4287_v19 = vld [vmem:[#allocation10 + $0x2c] ss:$16 sps:$4 sm:$0xff]   ;;  %v4282_v20 = vld [vmem:[#allocation10 + $0x20] ss:$16 sps:$4 sm:$0xff]   ;;  %v4285_v21 = vld [vmem:[#allocation10 + $0x28] ss:$16 sps:$4 sm:$0xff]  }
 0x293   : > { %4384 = vtanh.f32 %v1409_v37  ;;  %v4290_v37 = vld [vmem:[#allocation10 + $0x44] ss:$16 sps:$4 sm:$0xff]  }
 0x294   : > { %4386 = vtanh.f32 %v1403_v36 }
 0x295   : > { %4388 = vtanh.f32 %v1414_v38  ;;  %v4293_v38 = vld [vmem:[#allocation10 + $0x4c] ss:$16 sps:$4 sm:$0xff]  }
 0x29c   : > { %v4383_v6 = vpop.eup %4382 }
 0x29d   : > { %v4385_v27 = vpop.eup %4384  ;;  %v1407_v16 = vadd.f32 1.0, %v4383_v6  ;;  %v4288_v6 = vld [vmem:[#allocation10 + $0x40] ss:$16 sps:$4 sm:$0xff]  }
 0x29e   : > { %v1411_v29 = vadd.f32 1.0, %v4385_v27  ;;  %v4387_v13 = vpop.eup %4386  ;;  %v4291_v27 = vld [vmem:[#allocation10 + $0x48] ss:$16 sps:$4 sm:$0xff]  }
 0x29f   : > { %v1408_v22 = vmul.f32 0.5, %v1407_v16  ;;  %v4389_v11 = vpop.eup %4388  ;;  %v4296_v16 = vld [vmem:[#allocation10 + $0x64] ss:$16 sps:$4 sm:$0xff]  }
 0x2a0   : > { %v1412_v31 = vmul.f32 0.5, %v1411_v29  ;;  %v1416_v35 = vadd.f32 1.0, %v4389_v11  ;;  %v4299_v29 = vld [vmem:[#allocation10 + $0x6c] ss:$16 sps:$4 sm:$0xff]   ;;  %v4308_v11 = vld [vmem:[#allocation10 + $0xa4] ss:$16 sps:$4 sm:$0xff]  }
 0x2a1   : > { %v1420_v12 = vmul.f32 %v4387_v13, %v1408_v22  ;;  %v4294_v22 = vld [vmem:[#allocation10 + $0x60] ss:$16 sps:$4 sm:$0xff]   ;;  %v4297_v13 = vld [vmem:[#allocation10 + $0x68] ss:$16 sps:$4 sm:$0xff]  }
 0x2a2   : > { %v1419_v32 = vmul.f32 %v1412_v31, %v5009_v24  ;;  %v1417_v15 = vmul.f32 0.5, %v1416_v35  ;;  %v4302_v31 = vld [vmem:[#allocation10 + $0x84] ss:$16 sps:$4 sm:$0xff]   ;;  %v4311_v35 = vld [vmem:[#allocation10 + $0xac] ss:$16 sps:$4 sm:$0xff]  }
 0x2a4   : > { %v5055_v23 = vadd.f32 %v1420_v12, %v1419_v32  ;;  %v4305_v12 = vld [vmem:[#allocation10 + $0x8c] ss:$16 sps:$4 sm:$0xff]   ;;  %v4300_v32 = vld [vmem:[#allocation10 + $0x80] ss:$16 sps:$4 sm:$0xff]  }
 0x2a6   : > { %4390 = vtanh.f32 %v5055_v23 }
 0x2b0   : > { %v4391_v39 = vpop.eup %4390 }
 0x2b1   : > { %v5058_v10 = vmul.f32 %v4391_v39, %v1417_v15  ;;  %v4306_v15 = vld [vmem:[#allocation10 + $0xa0] ss:$16 sps:$4 sm:$0xff]   ;;  %v4309_v39 = vld [vmem:[#allocation10 + $0xa8] ss:$16 sps:$4 sm:$0xff]  }
 0x2b3   : > { %v1436_v28 = vpack.c.bf16 %v5058_v10, %v5058_v10 }
 0x2b5   : > { %1662 = vmatmul.mubr.bf16.vlgmr.msra.gmra.mrb[16].mxu0 %v1436_v28  ;;  %1703 = vmatmul.mubr.bf16.vlgmr.msra.gmra.mrb[16].mxu1 %v1436_v28  ;;  %v4314_v28 = vld [vmem:[#allocation10 + $0xc4] ss:$16 sps:$4 sm:$0xff]  }
 0x2b6   : > { %1940 = vmatpush1.bf16.msra.mxu0 %v4835_v40  ;;  %1981 = vmatpush1.bf16.msra.mxu1 %v4837_v41  ;;  %v4278_v40 = vld [vmem:[#allocation10 + $0x4] ss:$16 sps:$4 sm:$0xff]   ;;  %v4281_v41 = vld [vmem:[#allocation10 + $0xc] ss:$16 sps:$4 sm:$0xff]  }
 0x2b7   : > { %1941 = vmatprep.subr.bf16.mxu0 %v4839_v42  ;;  %1982 = vmatprep.subr.bf16.mxu1 %v4843_v43 }
 0x2b8   : > { %1971 = vmatprep.mubr.bf16.mxu0 %v5475_v25  ;;  %2012 = vmatprep.mubr.bf16.mxu1 %v5475_v25 }
 0x2ba   : > { %1942 = vmatpush1.bf16.msra.mxu0 %v4845_v44  ;;  %1983 = vmatpush1.bf16.msra.mxu1 %v4849_v45  ;;  %v5476_v44 = vld [vmem:[#allocation18_spill] sm:$0xff] }
 0x2bb   : > { %1943 = vmatprep.subr.bf16.mxu0 %v4851_v46  ;;  %1984 = vmatprep.subr.bf16.mxu1 %v4855_v47  ;;  %v5477_v46 = vld [vmem:[#allocation19_spill] sm:$0xff] }
 0x2be   : > { %1944 = vmatpush1.bf16.msra.mxu0 %v4862_v49  ;;  %1985 = vmatpush1.bf16.msra.mxu1 %v4864_v50 }
 0x2bf   : > { %1945 = vmatprep.subr.bf16.mxu0 %v4868_v51  ;;  %1986 = vmatprep.subr.bf16.mxu1 %v4870_v52  ;;  %v5478_v51 = vld [vmem:[#allocation20_spill] sm:$0xff] }
 0x2c2   : > { %1946 = vmatpush1.bf16.msra.mxu0 %v4874_v53  ;;  %1987 = vmatpush1.bf16.msra.mxu1 %v4876_v54  ;;  %v5479_v53 = vld [vmem:[#allocation21_spill] sm:$0xff] }
 0x2c3   : > { %1947 = vmatprep.subr.bf16.mxu0 %v4878_v55  ;;  %1988 = vmatprep.subr.bf16.mxu1 %v4882_v56 }
 0x2c6   : > { %1948 = vmatpush1.bf16.msra.mxu0 %v4884_v57  ;;  %1989 = vmatpush1.bf16.msra.mxu1 %v4886_v58 }
 0x2c7   : > { %1949 = vmatprep.subr.bf16.mxu0 %v4890_v59  ;;  %1990 = vmatprep.subr.bf16.mxu1 %v4892_v60 }
 0x2ca   : > { %1950 = vmatpush1.bf16.msra.mxu0 %v4898_v61  ;;  %1991 = vmatpush1.bf16.msra.mxu1 %v4900_v62 }
 0x2cb   : > { %1951 = vmatprep.subr.bf16.mxu0 %v4902_v63  ;;  %1992 = vmatprep.subr.bf16.mxu1 %v4904_v0 }
 0x2ce   : > { %1952 = vmatpush1.bf16.msra.mxu0 %v4910_v1  ;;  %1993 = vmatpush1.bf16.msra.mxu1 %v4912_v2 }
 0x2cf   : > { %1953 = vmatprep.subr.bf16.mxu0 %v4914_v3  ;;  %1994 = vmatprep.subr.bf16.mxu1 %v4916_v4 }
 0x2d2   : > { %1954 = vmatpush1.bf16.msra.mxu0 %v4922_v5  ;;  %1995 = vmatpush1.bf16.msra.mxu1 %v4924_v7 }
 0x2d3   : > { %2268 = vmatprep.subr.bf16.mxu0 %v4278_v40  ;;  %2321 = vmatprep.subr.bf16.mxu1 %v4281_v41  ;;  %v4317_v40 = vld [vmem:[#allocation10 + $0xcc] ss:$16 sps:$4 sm:$0xff]   ;;  %v4312_v41 = vld [vmem:[#allocation10 + $0xc0] ss:$16 sps:$4 sm:$0xff]  }
 0x388   : > { %v1663_v42 = vpop.f32.mrb[16].mxu0  ;;  %v1704_v43 = vpop.f32.mrb[16].mxu1 }
 0x389   : > { %v1711_v45 = vadd.f32 %v1663_v42, %v5476_v44  ;;  %v1713_v47 = vadd.f32 %v1704_v43, %v5477_v46  ;;  %v1665_v49 = vpop.f32.mrb[17].mxu0  ;;  %v1706_v50 = vpop.f32.mrb[17].mxu1  ;;  %v4315_v42 = vld [vmem:[#allocation10 + $0xc8] ss:$16 sps:$4 sm:$0xff]   ;;  %v4320_v43 = vld [vmem:[#allocation10 + $0xe4] ss:$16 sps:$4 sm:$0xff]  }
 0x38a   : > { %v1712_v52 = vadd.f32 %v1665_v49, %v5478_v51  ;;  %v1714_v54 = vadd.f32 %v1706_v50, %v5479_v53  ;;  %v1667_v55 = vpop.f32.mrb[18].mxu0  ;;  %v1708_v56 = vpop.f32.mrb[18].mxu1  ;;  %v4323_v44 = vld [vmem:[#allocation10 + $0xec] ss:$16 sps:$4 sm:$0xff]   ;;  %v4321_v46 = vld [vmem:[#allocation10 + $0xe8] ss:$16 sps:$4 sm:$0xff]  }
 0x38b   : > { %v1715_v57 = vmul.f32 0.5, %v1711_v45  ;;  %v1668_v58 = vpop.f32.mrb[19].mxu0  ;;  %v1709_v59 = vpop.f32.mrb[19].mxu1  ;;  %v4318_v45 = vld [vmem:[#allocation10 + $0xe0] ss:$16 sps:$4 sm:$0xff]  }
 0x38c   : > { %v1719_v60 = vmul.f32 0.5, %v1712_v52  ;;  %v1724_v61 = vmul.f32 0.5, %v1714_v54  ;;  %v5112_v49 = vld [vmem:[#allocation11 + $0x4] ss:$16 sps:$4 sm:$0xff]   ;;  %v5114_v50 = vld [vmem:[#allocation11 + $0xc] ss:$16 sps:$4 sm:$0xff]  }
 0x38d   : > { %4392 = vtanh.f32 %v1715_v57  ;;  %v5116_v51 = vld [vmem:[#allocation11] ss:$16 sps:$4 sm:$0xff]   ;;  %v5118_v52 = vld [vmem:[#allocation11 + $0x8] ss:$16 sps:$4 sm:$0xff]   ;;  %v5136_v55 = vld [vmem:[#allocation11 + $0x44] ss:$16 sps:$4 sm:$0xff]  }
 0x38e   : > { %4394 = vtanh.f32 %v1719_v60  ;;  %v5128_v53 = vld [vmem:[#allocation11 + $0x20] ss:$16 sps:$4 sm:$0xff]   ;;  %v5130_v54 = vld [vmem:[#allocation11 + $0x28] ss:$16 sps:$4 sm:$0xff]   ;;  %v5138_v56 = vld [vmem:[#allocation11 + $0x4c] ss:$16 sps:$4 sm:$0xff]  }
 0x38f   : > { %4396 = vtanh.f32 %v1713_v47  ;;  %v2052_v47 = vpack.c.bf16 %v5058_v10, %v5012_v8  ;;  %v5124_v8 = vld [vmem:[#allocation11 + $0x24] ss:$16 sps:$4 sm:$0xff]   ;;  %v5126_v10 = vld [vmem:[#allocation11 + $0x2c] ss:$16 sps:$4 sm:$0xff]   ;;  %v5140_v57 = vld [vmem:[#allocation11 + $0x40] ss:$16 sps:$4 sm:$0xff]  }
 0x390   : > { %4398 = vtanh.f32 %v1724_v61  ;;  %v5142_v58 = vld [vmem:[#allocation11 + $0x48] ss:$16 sps:$4 sm:$0xff]   ;;  %v5146_v59 = vld [vmem:[#allocation11 + $0x64] ss:$16 sps:$4 sm:$0xff]   ;;  %v5150_v60 = vld [vmem:[#allocation11 + $0x60] ss:$16 sps:$4 sm:$0xff]  }
 0x391   : > { %v5152_v61 = vld [vmem:[#allocation11 + $0x68] ss:$16 sps:$4 sm:$0xff]  }
 0x397   : > { %v4393_v62 = vpop.eup %4392 }
 0x398   : > { %v4395_v63 = vpop.eup %4394  ;;  %v1717_v0 = vadd.f32 1.0, %v4393_v62  ;;  %v5154_v62 = vld [vmem:[#allocation11 + $0x6c] ss:$16 sps:$4 sm:$0xff]  }
 0x399   : > { %v1721_v1 = vadd.f32 1.0, %v4395_v63  ;;  %v4397_v3 = vpop.eup %4396  ;;  %v5160_v63 = vld [vmem:[#allocation11 + $0x84] ss:$16 sps:$4 sm:$0xff]  }
 0x39a   : > { %v1718_v2 = vmul.f32 0.5, %v1717_v0  ;;  %v4399_v30 = vpop.eup %4398  ;;  %v5162_v0 = vld [vmem:[#allocation11 + $0x8c] ss:$16 sps:$4 sm:$0xff]  }
 0x39b   : > { %v1722_v4 = vmul.f32 0.5, %v1721_v1  ;;  %v1726_v34 = vadd.f32 1.0, %v4399_v30  ;;  %v5164_v1 = vld [vmem:[#allocation11 + $0x80] ss:$16 sps:$4 sm:$0xff]   ;;  %v5184_v30 = vld [vmem:[#allocation11 + $0xc4] ss:$16 sps:$4 sm:$0xff]  }
 0x39c   : > { %v1730_v5 = vmul.f32 %v4397_v3, %v1718_v2  ;;  %v5166_v2 = vld [vmem:[#allocation11 + $0x88] ss:$16 sps:$4 sm:$0xff]   ;;  %v5172_v3 = vld [vmem:[#allocation11 + $0xa4] ss:$16 sps:$4 sm:$0xff]  }
 0x39d   : > { %v1729_v7 = vmul.f32 %v1722_v4, %v5055_v23  ;;  %v1727_v36 = vmul.f32 0.5, %v1726_v34  ;;  %v4303_v23 = vld [vmem:[#allocation10 + $0x88] ss:$16 sps:$4 sm:$0xff]   ;;  %v5174_v4 = vld [vmem:[#allocation11 + $0xac] ss:$16 sps:$4 sm:$0xff]  }
 0x39e   : > { %v5186_v34 = vld [vmem:[#allocation11 + $0xcc] ss:$16 sps:$4 sm:$0xff]  }
 0x39f   : > { %v5099_v24 = vadd.f32 %v1730_v5, %v1729_v7  ;;  %v5176_v5 = vld [vmem:[#allocation11 + $0xa0] ss:$16 sps:$4 sm:$0xff]   ;;  %v5178_v7 = vld [vmem:[#allocation11 + $0xa8] ss:$16 sps:$4 sm:$0xff]  }
 0x3a1   : > { %4400 = vtanh.f32 %v5099_v24 }
 0x3ab   : > { %v4401_v48 = vpop.eup %4400 }
 0x3ac   : > { %v5102_v9 = vmul.f32 %v4401_v48, %v1727_v36  ;;  %v5188_v36 = vld [vmem:[#allocation11 + $0xc0] ss:$16 sps:$4 sm:$0xff]   ;;  %v5190_v48 = vld [vmem:[#allocation11 + $0xc8] ss:$16 sps:$4 sm:$0xff]  }
 0x3ae   : > { %v1746_v17 = vpack.c.bf16 %v5102_v9, %v5102_v9 }
 0x3b0   : > { %1972 = vmatmul.mubr.bf16.vlgmr.msra.gmra.mrb[20].mxu0 %v1746_v17  ;;  %2013 = vmatmul.mubr.bf16.vlgmr.msra.gmra.mrb[20].mxu1 %v1746_v17  ;;  %v5200_v17 = vld [vmem:[#allocation11 + $0xe0] ss:$16 sps:$4 sm:$0xff]  }
 0x3b1   : > { %2269 = vmatpush1.bf16.msra.mxu0 %v4276_v14  ;;  %2322 = vmatpush1.bf16.msra.mxu1 %v4279_v26  ;;  %v5194_v14 = vld [vmem:[#allocation11 + $0xe4] ss:$16 sps:$4 sm:$0xff]   ;;  %v5196_v26 = vld [vmem:[#allocation11 + $0xec] ss:$16 sps:$4 sm:$0xff]  }
 0x3b2   : > { %2270 = vmatprep.subr.bf16.mxu0 %v4284_v18  ;;  %2323 = vmatprep.subr.bf16.mxu1 %v4287_v19  ;;  %v5202_v18 = vld [vmem:[#allocation11 + $0xe8] ss:$16 sps:$4 sm:$0xff]  }
 0x3b3   : > { %2300 = vmatprep.mubr.bf16.mxu0 %v5475_v25  ;;  %2353 = vmatprep.mubr.bf16.mxu1 %v5475_v25 }
 0x3b5   : > { %2271 = vmatpush1.bf16.msra.mxu0 %v4282_v20  ;;  %2324 = vmatpush1.bf16.msra.mxu1 %v4285_v21  ;;  %v5480_v21 = vld [vmem:[#allocation22_spill] sm:$0xff] }
 0x3b6   : > { %2272 = vmatprep.subr.bf16.mxu0 %v4290_v37  ;;  %2325 = vmatprep.subr.bf16.mxu1 %v4293_v38  ;;  %v5481_v38 = vld [vmem:[#allocation23_spill] sm:$0xff] }
 0x3b9   : > { %2273 = vmatpush1.bf16.msra.mxu0 %v4288_v6  ;;  %2326 = vmatpush1.bf16.msra.mxu1 %v4291_v27 }
 0x3ba   : > { %2274 = vmatprep.subr.bf16.mxu0 %v4296_v16  ;;  %2327 = vmatprep.subr.bf16.mxu1 %v4299_v29  ;;  %v5482_v29 = vld [vmem:[#allocation24_spill] sm:$0xff] }
 0x3bd   : > { %2275 = vmatpush1.bf16.msra.mxu0 %v4294_v22  ;;  %2328 = vmatpush1.bf16.msra.mxu1 %v4297_v13 }
 0x3be   : > { %2276 = vmatprep.subr.bf16.mxu0 %v4302_v31  ;;  %2329 = vmatprep.subr.bf16.mxu1 %v4305_v12 }
 0x3c1   : > { %2277 = vmatpush1.bf16.msra.mxu0 %v4300_v32  ;;  %2330 = vmatpush1.bf16.msra.mxu1 %v4303_v23 }
 0x3c2   : > { %2278 = vmatprep.subr.bf16.mxu0 %v4308_v11  ;;  %2331 = vmatprep.subr.bf16.mxu1 %v4311_v35 }
 0x3c5   : > { %2279 = vmatpush1.bf16.msra.mxu0 %v4306_v15  ;;  %2332 = vmatpush1.bf16.msra.mxu1 %v4309_v39 }
 0x3c6   : > { %2280 = vmatprep.subr.bf16.mxu0 %v4314_v28  ;;  %2333 = vmatprep.subr.bf16.mxu1 %v4317_v40 }
 0x3c9   : > { %2281 = vmatpush1.bf16.msra.mxu0 %v4312_v41  ;;  %2334 = vmatpush1.bf16.msra.mxu1 %v4315_v42 }
 0x3ca   : > { %2282 = vmatprep.subr.bf16.mxu0 %v4320_v43  ;;  %2335 = vmatprep.subr.bf16.mxu1 %v4323_v44 }
 0x3cd   : > { %2283 = vmatpush1.bf16.msra.mxu0 %v4318_v45  ;;  %2336 = vmatpush1.bf16.msra.mxu1 %v4321_v46 }
 0x3ce   : > { %2589 = vmatprep.subr.bf16.mxu0 %v5112_v49  ;;  %2630 = vmatprep.subr.bf16.mxu1 %v5114_v50 }
 0x3d0   : > { %2301 = vmatmul.mubr.bf16.vlgmr.msra.gmra.mrb[24].mxu0 %v2052_v47  ;;  %2354 = vmatmul.mubr.bf16.vlgmr.msra.gmra.mrb[24].mxu1 %v2052_v47 }
 0x3d1   : > { %2310 = vmatprep.mubr.bf16.mxu0 %v5475_v25  ;;  %2363 = vmatprep.mubr.bf16.mxu1 %v5475_v25 }
 0x3d2   : > { %2590 = vmatpush1.bf16.msra.mxu0 %v5116_v51  ;;  %2631 = vmatpush1.bf16.msra.mxu1 %v5118_v52 }
 0x3d3   : > { %2591 = vmatprep.subr.bf16.mxu0 %v5124_v8  ;;  %2632 = vmatprep.subr.bf16.mxu1 %v5126_v10 }
 0x3d6   : > { %2592 = vmatpush1.bf16.msra.mxu0 %v5128_v53  ;;  %2633 = vmatpush1.bf16.msra.mxu1 %v5130_v54 }
 0x3d7   : > { %2593 = vmatprep.subr.bf16.mxu0 %v5136_v55  ;;  %2634 = vmatprep.subr.bf16.mxu1 %v5138_v56 }
 0x3da   : > { %2594 = vmatpush1.bf16.msra.mxu0 %v5140_v57  ;;  %2635 = vmatpush1.bf16.msra.mxu1 %v5142_v58 }
 0x3db   : > { %2595 = vmatprep.subr.bf16.mxu0 %v5146_v59  ;;  %2636 = vmatprep.subr.bf16.mxu1 %v5154_v62 }
 0x3de   : > { %2596 = vmatpush1.bf16.msra.mxu0 %v5150_v60  ;;  %2637 = vmatpush1.bf16.msra.mxu1 %v5152_v61 }
 0x3df   : > { %2597 = vmatprep.subr.bf16.mxu0 %v5160_v63  ;;  %2638 = vmatprep.subr.bf16.mxu1 %v5162_v0 }
 0x3e2   : > { %2598 = vmatpush1.bf16.msra.mxu0 %v5164_v1  ;;  %2639 = vmatpush1.bf16.msra.mxu1 %v5166_v2 }
 0x3e3   : > { %2599 = vmatprep.subr.bf16.mxu0 %v5172_v3  ;;  %2640 = vmatprep.subr.bf16.mxu1 %v5174_v4 }
 0x3e6   : > { %2600 = vmatpush1.bf16.msra.mxu0 %v5176_v5  ;;  %2641 = vmatpush1.bf16.msra.mxu1 %v5178_v7 }
 0x3e7   : > { %2601 = vmatprep.subr.bf16.mxu0 %v5184_v30  ;;  %2642 = vmatprep.subr.bf16.mxu1 %v5186_v34 }
 0x3ea   : > { %2602 = vmatpush1.bf16.msra.mxu0 %v5188_v36  ;;  %2643 = vmatpush1.bf16.msra.mxu1 %v5190_v48 }
 0x3eb   : > { %2603 = vmatprep.subr.bf16.mxu0 %v5194_v14  ;;  %2644 = vmatprep.subr.bf16.mxu1 %v5196_v26 }
 0x3ee   : > { %2604 = vmatpush1.bf16.msra.mxu0 %v5200_v17  ;;  %2645 = vmatpush1.bf16.msra.mxu1 %v5202_v18 }
 0x3ef   : > { %2896 = vmatprep.subr.bf16.mxu0 %v5112_v49  ;;  %2937 = vmatprep.subr.bf16.mxu1 %v5114_v50 }
 0x483   : > { %v1973_v19 = vpop.f32.mrb[20].mxu0  ;;  %v2014_v20 = vpop.f32.mrb[20].mxu1 }
 0x484   : > { %v2021_v37 = vadd.f32 %v1973_v19, %v5480_v21  ;;  %v2023_v6 = vadd.f32 %v2014_v20, %v5481_v38  ;;  %v1975_v27 = vpop.f32.mrb[21].mxu0  ;;  %v2016_v16 = vpop.f32.mrb[21].mxu1 }
 0x485   : > { %v2022_v22 = vadd.f32 %v1975_v27, %v5482_v29  ;;  %v2024_v13 = vadd.f32 %v2016_v16, %v5007_v33  ;;  %v1977_v31 = vpop.f32.mrb[22].mxu0  ;;  %v2018_v12 = vpop.f32.mrb[22].mxu1 }
 0x486   : > { %v2025_v32 = vmul.f32 0.5, %v2021_v37  ;;  %v1978_v23 = vpop.f32.mrb[23].mxu0  ;;  %v2019_v11 = vpop.f32.mrb[23].mxu1  ;;  %v2395_v12 = vld [vmem:[#allocation4 + $0x8] sm:$0xff] }
 0x487   : > { %v2029_v35 = vmul.f32 0.5, %v2022_v22  ;;  %v2034_v15 = vmul.f32 0.5, %v2024_v13 }
 0x488   : > { %4402 = vtanh.f32 %v2025_v32  ;;  %v2396_v32 = vpack.c.bf16 %v2395_v12, %v2395_v12 }
 0x489   : > { %4404 = vtanh.f32 %v2029_v35 }
 0x48a   : > { %4406 = vtanh.f32 %v2023_v6 }
 0x48b   : > { %4408 = vtanh.f32 %v2034_v15 }
 0x492   : > { %v4403_v39 = vpop.eup %4402 }
 0x493   : > { %v4405_v28 = vpop.eup %4404  ;;  %v2027_v40 = vadd.f32 1.0, %v4403_v39 }
 0x494   : > { %v2031_v41 = vadd.f32 1.0, %v4405_v28  ;;  %v4407_v43 = vpop.eup %4406 }
 0x495   : > { %v2028_v42 = vmul.f32 0.5, %v2027_v40  ;;  %v4409_v47 = vpop.eup %4408  ;;  %v5489_v40 = vld [vmem:[#allocation17_spill] sm:$0xff] }
 0x496   : > { %v2032_v44 = vmul.f32 0.5, %v2031_v41  ;;  %v2036_v19 = vadd.f32 1.0, %v4409_v47  ;;  %v5490_v41 = vsub.s32 0, %v5489_v40 }
 0x497   : > { %v2040_v45 = vmul.f32 %v4407_v43, %v2028_v42  ;;  %v5491_v43 = vsub.s32 2, %v5489_v40 }
 0x498   : > { %v2039_v33 = vmul.f32 %v2032_v44, %v5099_v24  ;;  %v2037_v6 = vmul.f32 0.5, %v2036_v19  ;;  %v5495_v19 = vsub.s32 3, %v5489_v40 }
 0x49a   : > { %v2041_v46 = vadd.f32 %v2040_v45, %v2039_v33 }
 0x49c   : > { %4410 = vtanh.f32 %v2041_v46  ;;  %2044 = vst [vmem:[#allocation5] sm:$0xff] %v2041_v46  ;;  %v5494_v46 = vsub.s32 1, %v5489_v40 }
 0x4a3   : > { %v5215_v20 = vpop.f32.mrb[24].mxu0  ;;  %v5217_v21 = vpop.f32.mrb[24].mxu1 }
 0x4a4   : > { %v5219_v37 = vpop.f32.mrb[25].mxu0  ;;  %v5221_v38 = vpop.f32.mrb[25].mxu1 }
 0x4a5   : > { %v5223_v27 = vpop.f32.mrb[26].mxu0  ;;  %v5225_v16 = vpop.f32.mrb[26].mxu1 }
 0x4a6   : > { %v4411_v29 = vpop.eup %4410  ;;  %v5227_v24 = vpop.f32.mrb[27].mxu0 }
 0x4a7   : > { %v5229_v22 = vpop.f32.mrb[27].mxu1  ;;  %v2043_v13 = vmul.f32 %v4411_v29, %v2037_v6 }
 0x4a9   : > { %2045 = vst [vmem:[#allocation4] sm:$0xff] %v2043_v13  ;;  %v2053_v31 = vpack.c.bf16 %v2043_v13, %v5102_v9  ;;  %v2086_v9 = vld [vmem:[%s5438_s6] sm:$0xf] }
 0x4aa   : > { %v5285_v42 = vrot.slane %v2086_v9, %v5490_v41  ;;  %v5289_v44 = vrot.slane %v2086_v9, %v5491_v43  ;;  %v5297_v47 = vrot.slane %v2086_v9, %v5494_v46  ;;  %v5301_v6 = vrot.slane %v2086_v9, %v5495_v19 }
 0x4ab   : > { %2311 = vmatmul.mubr.bf16.gmra.mrb[28].mxu0 %v2053_v31  ;;  %2364 = vmatmul.mubr.bf16.gmra.mrb[28].mxu1 %v2053_v31 }
 0x4ac   : > { %2621 = vmatprep.mubr.bf16.mxu0 %v5475_v25  ;;  %2662 = vmatprep.mubr.bf16.mxu1 %v5475_v25  ;;  %v2303_v29 = vadd.f32 %v5215_v20, %v5285_v42  ;;  %v2356_v13 = vadd.f32 %v5217_v21, %v5289_v44  ;;  %v2305_v31 = vadd.f32 %v5219_v37, %v5297_v47 }
 0x4ad   : > { %v2358_v12 = vadd.f32 %v5221_v38, %v5301_v6 }
 0x4b3   : > { %2622 = vmatmul.mubr.bf16.vlgmr.msra.gmra.mrb[32].mxu0 %v2396_v32  ;;  %2663 = vmatmul.mubr.bf16.vlgmr.msra.gmra.mrb[32].mxu1 %v2396_v32 }
 0x4b4   : > { %2897 = vmatpush1.bf16.msra.mxu0 %v5116_v51  ;;  %2938 = vmatpush1.bf16.msra.mxu1 %v5118_v52 }
 0x4b5   : > { %2898 = vmatprep.subr.bf16.mxu0 %v5124_v8  ;;  %2939 = vmatprep.subr.bf16.mxu1 %v5126_v10 }
 0x4b6   : > { %2928 = vmatprep.mubr.bf16.mxu0 %v5475_v25  ;;  %2969 = vmatprep.mubr.bf16.mxu1 %v5475_v25 }
 0x4b8   : > { %2899 = vmatpush1.bf16.msra.mxu0 %v5128_v53  ;;  %2940 = vmatpush1.bf16.msra.mxu1 %v5130_v54 }
 0x4b9   : > { %2900 = vmatprep.subr.bf16.mxu0 %v5136_v55  ;;  %2941 = vmatprep.subr.bf16.mxu1 %v5138_v56 }
 0x4bc   : > { %2901 = vmatpush1.bf16.msra.mxu0 %v5140_v57  ;;  %2942 = vmatpush1.bf16.msra.mxu1 %v5142_v58 }
 0x4bd   : > { %2902 = vmatprep.subr.bf16.mxu0 %v5146_v59  ;;  %2943 = vmatprep.subr.bf16.mxu1 %v5154_v62 }
 0x4c0   : > { %2903 = vmatpush1.bf16.msra.mxu0 %v5150_v60  ;;  %2944 = vmatpush1.bf16.msra.mxu1 %v5152_v61 }
 0x4c1   : > { %2904 = vmatprep.subr.bf16.mxu0 %v5160_v63  ;;  %2945 = vmatprep.subr.bf16.mxu1 %v5162_v0 }
 0x4c4   : > { %2905 = vmatpush1.bf16.msra.mxu0 %v5164_v1  ;;  %2946 = vmatpush1.bf16.msra.mxu1 %v5166_v2 }
 0x4c5   : > { %2906 = vmatprep.subr.bf16.mxu0 %v5172_v3  ;;  %2947 = vmatprep.subr.bf16.mxu1 %v5174_v4 }
 0x4c8   : > { %2907 = vmatpush1.bf16.msra.mxu0 %v5176_v5  ;;  %2948 = vmatpush1.bf16.msra.mxu1 %v5178_v7 }
 0x4c9   : > { %2908 = vmatprep.subr.bf16.mxu0 %v5184_v30  ;;  %2949 = vmatprep.subr.bf16.mxu1 %v5186_v34 }
 0x4cc   : > { %2909 = vmatpush1.bf16.msra.mxu0 %v5188_v36  ;;  %2950 = vmatpush1.bf16.msra.mxu1 %v5190_v48 }
 0x4cd   : > { %2910 = vmatprep.subr.bf16.mxu0 %v5194_v14  ;;  %2951 = vmatprep.subr.bf16.mxu1 %v5196_v26 }
 0x4d0   : > { %2911 = vmatpush1.bf16.msra.mxu0 %v5200_v17  ;;  %2952 = vmatpush1.bf16.msra.mxu1 %v5202_v18 }
 0x4d1   : > { %3202 = vmatprep.subr.bf16.mxu0 %v5112_v49  ;;  %3243 = vmatprep.subr.bf16.mxu1 %v5114_v50 }
 0x57e   : > { %v5271_v23 = vpop.f32.mrb[28].mxu0  ;;  %v5273_v11 = vpop.f32.mrb[28].mxu1 }
 0x57f   : > { %5483 = vst [vmem:[#allocation18_spill] sm:$0xff] %v5271_v23  ;;  %5484 = vst [vmem:[#allocation19_spill] sm:$0xff] %v5273_v11  ;;  %v5275_v35 = vpop.f32.mrb[29].mxu0  ;;  %v5277_v15 = vpop.f32.mrb[29].mxu1 }
 0x580   : > { %5485 = vst [vmem:[#allocation20_spill] sm:$0xff] %v5275_v35  ;;  %5486 = vst [vmem:[#allocation21_spill] sm:$0xff] %v5277_v15  ;;  %v5279_v39 = vpop.f32.mrb[30].mxu0  ;;  %v5281_v28 = vpop.f32.mrb[30].mxu1 }
 0x581   : > { %5487 = vst [vmem:[#allocation22_spill] sm:$0xff] %v5279_v39  ;;  %5488 = vst [vmem:[#allocation23_spill] sm:$0xff] %v5281_v28  ;;  %v5291_v45 = vpop.f32.mrb[31].mxu0  ;;  %v5293_v33 = vpop.f32.mrb[31].mxu1 }
 0x582   : > { %5492 = vst [vmem:[#allocation24_spill] sm:$0xff] %v5291_v45  ;;  %5493 = vst [vmem:[#allocation17_spill] sm:$0xff] %v5293_v33 }
 0x586   : > { %v2623_v32 = vpop.f32.mrb[32].mxu0  ;;  %v2664_v41 = vpop.f32.mrb[32].mxu1 }
 0x587   : > { %v2671_v43 = vadd.f32 %v2623_v32, %v2303_v29  ;;  %v2673_v46 = vadd.f32 %v2664_v41, %v2356_v13  ;;  %v2625_v33 = vpop.f32.mrb[33].mxu0  ;;  %v2666_v40 = vpop.f32.mrb[33].mxu1  ;;  %v2689_v13 = vld [vmem:[#allocation5 + $0x8] sm:$0xff] }
 0x588   : > { %v2672_v9 = vadd.f32 %v2625_v33, %v2305_v31  ;;  %v2674_v19 = vadd.f32 %v2666_v40, %v2358_v12  ;;  %v2627_v45 = vpop.f32.mrb[34].mxu0  ;;  %v2668_v28 = vpop.f32.mrb[34].mxu1  ;;  %v2362_v40 = vadd.f32 %v5229_v22, %v5301_v6 }
 0x589   : > { %v2675_v20 = vmul.f32 0.5, %v2671_v43  ;;  %v2628_v39 = vpop.f32.mrb[35].mxu0  ;;  %v2669_v15 = vpop.f32.mrb[35].mxu1 }
 0x58a   : > { %v2679_v21 = vmul.f32 0.5, %v2672_v9  ;;  %v2684_v37 = vmul.f32 0.5, %v2674_v19 }
 0x58b   : > { %4412 = vtanh.f32 %v2675_v20 }
 0x58c   : > { %4414 = vtanh.f32 %v2679_v21 }
 0x58d   : > { %4416 = vtanh.f32 %v2673_v46  ;;  %v2309_v46 = vadd.f32 %v5227_v24, %v5297_v47 }
 0x58e   : > { %4418 = vtanh.f32 %v2684_v37 }
 0x595   : > { %v4413_v35 = vpop.eup %4412 }
 0x596   : > { %v4415_v38 = vpop.eup %4414  ;;  %v2677_v11 = vadd.f32 1.0, %v4413_v35 }
 0x597   : > { %v2681_v23 = vadd.f32 1.0, %v4415_v38  ;;  %v4417_v32 = vpop.eup %4416 }
 0x598   : > { %v2678_v29 = vmul.f32 0.5, %v2677_v11  ;;  %v4419_v15 = vpop.eup %4418  ;;  %v2360_v11 = vadd.f32 %v5225_v16, %v5289_v44 }
 0x599   : > { %v2682_v33 = vmul.f32 0.5, %v2681_v23  ;;  %v2686_v39 = vadd.f32 1.0, %v4419_v15  ;;  %v2307_v23 = vadd.f32 %v5223_v27, %v5285_v42 }
 0x59a   : > { %v2691_v31 = vmul.f32 %v4417_v32, %v2678_v29 }
 0x59b   : > { %v2690_v45 = vmul.f32 %v2689_v13, %v2682_v33  ;;  %v2687_v12 = vmul.f32 0.5, %v2686_v39 }
 0x59d   : > { %v5311_v28 = vadd.f32 %v2691_v31, %v2690_v45 }
 0x59f   : > { %4420 = vtanh.f32 %v5311_v28 }
 0x5a9   : > { %v4421_v41 = vpop.eup %4420 }
 0x5aa   : > { %v5314_v43 = vmul.f32 %v4421_v41, %v2687_v12 }
 0x5ac   : > { %v2703_v35 = vpack.c.bf16 %v5314_v43, %v5314_v43 }
 0x5ae   : > { %2929 = vmatmul.mubr.bf16.vlgmr.msra.gmra.mrb[36].mxu0 %v2703_v35  ;;  %2970 = vmatmul.mubr.bf16.vlgmr.msra.gmra.mrb[36].mxu1 %v2703_v35 }
 0x5af   : > { %3203 = vmatpush1.bf16.msra.mxu0 %v5116_v51  ;;  %3244 = vmatpush1.bf16.msra.mxu1 %v5118_v52 }
 0x5b0   : > { %3204 = vmatprep.subr.bf16.mxu0 %v5124_v8  ;;  %3245 = vmatprep.subr.bf16.mxu1 %v5126_v10 }
 0x5b1   : > { %3234 = vmatprep.mubr.bf16.mxu0 %v5475_v25  ;;  %3275 = vmatprep.mubr.bf16.mxu1 %v5475_v25 }
 0x5b3   : > { %3205 = vmatpush1.bf16.msra.mxu0 %v5128_v53  ;;  %3246 = vmatpush1.bf16.msra.mxu1 %v5130_v54 }
 0x5b4   : > { %3206 = vmatprep.subr.bf16.mxu0 %v5136_v55  ;;  %3247 = vmatprep.subr.bf16.mxu1 %v5138_v56 }
 0x5b7   : > { %3207 = vmatpush1.bf16.msra.mxu0 %v5140_v57  ;;  %3248 = vmatpush1.bf16.msra.mxu1 %v5142_v58 }
 0x5b8   : > { %3208 = vmatprep.subr.bf16.mxu0 %v5146_v59  ;;  %3249 = vmatprep.subr.bf16.mxu1 %v5154_v62 }
 0x5bb   : > { %3209 = vmatpush1.bf16.msra.mxu0 %v5150_v60  ;;  %3250 = vmatpush1.bf16.msra.mxu1 %v5152_v61 }
 0x5bc   : > { %3210 = vmatprep.subr.bf16.mxu0 %v5160_v63  ;;  %3251 = vmatprep.subr.bf16.mxu1 %v5162_v0 }
 0x5bf   : > { %3211 = vmatpush1.bf16.msra.mxu0 %v5164_v1  ;;  %3252 = vmatpush1.bf16.msra.mxu1 %v5166_v2 }
 0x5c0   : > { %3212 = vmatprep.subr.bf16.mxu0 %v5172_v3  ;;  %3253 = vmatprep.subr.bf16.mxu1 %v5174_v4 }
 0x5c3   : > { %3213 = vmatpush1.bf16.msra.mxu0 %v5176_v5  ;;  %3254 = vmatpush1.bf16.msra.mxu1 %v5178_v7 }
 0x5c4   : > { %3214 = vmatprep.subr.bf16.mxu0 %v5184_v30  ;;  %3255 = vmatprep.subr.bf16.mxu1 %v5186_v34 }
 0x5c7   : > { %3215 = vmatpush1.bf16.msra.mxu0 %v5188_v36  ;;  %3256 = vmatpush1.bf16.msra.mxu1 %v5190_v48 }
 0x5c8   : > { %3216 = vmatprep.subr.bf16.mxu0 %v5194_v14  ;;  %3257 = vmatprep.subr.bf16.mxu1 %v5196_v26 }
 0x5cb   : > { %3217 = vmatpush1.bf16.msra.mxu0 %v5200_v17  ;;  %3258 = vmatpush1.bf16.msra.mxu1 %v5202_v18 }
 0x5cc   : > { %3508 = vmatprep.subr.bf16.mxu0 %v5112_v49  ;;  %3549 = vmatprep.subr.bf16.mxu1 %v5114_v50 }
 0x681   : > { %v2930_v9 = vpop.f32.mrb[36].mxu0  ;;  %v2971_v19 = vpop.f32.mrb[36].mxu1 }
 0x682   : > { %v2978_v20 = vadd.f32 %v2930_v9, %v2307_v23  ;;  %v2980_v21 = vadd.f32 %v2971_v19, %v2360_v11  ;;  %v2932_v37 = vpop.f32.mrb[37].mxu0  ;;  %v2973_v49 = vpop.f32.mrb[37].mxu1 }
 0x683   : > { %v2979_v38 = vadd.f32 %v2932_v37, %v2309_v46  ;;  %v2981_v50 = vadd.f32 %v2973_v49, %v2362_v40  ;;  %v2934_v29 = vpop.f32.mrb[38].mxu0  ;;  %v2975_v13 = vpop.f32.mrb[38].mxu1 }
 0x684   : > { %v2982_v27 = vmul.f32 0.5, %v2978_v20  ;;  %v2935_v32 = vpop.f32.mrb[39].mxu0  ;;  %v2976_v33 = vpop.f32.mrb[39].mxu1 }
 0x685   : > { %v2986_v16 = vmul.f32 0.5, %v2979_v38  ;;  %v2991_v24 = vmul.f32 0.5, %v2981_v50  ;;  %v5500_v32 = vld [vmem:[#allocation22_spill] sm:$0xff] }
 0x686   : > { %4422 = vtanh.f32 %v2982_v27  ;;  %v2317_v33 = vadd.f32 %v5500_v32, %v5285_v42 }
 0x687   : > { %4424 = vtanh.f32 %v2986_v16  ;;  %v5501_v16 = vld [vmem:[#allocation23_spill] sm:$0xff] }
 0x688   : > { %4426 = vtanh.f32 %v2980_v21 }
 0x689   : > { %4428 = vtanh.f32 %v2991_v24  ;;  %v2370_v24 = vadd.f32 %v5501_v16, %v5289_v44 }
 0x690   : > { %v4423_v31 = vpop.eup %4422 }
 0x691   : > { %v4425_v22 = vpop.eup %4424  ;;  %v2984_v45 = vadd.f32 1.0, %v4423_v31  ;;  %v5502_v31 = vld [vmem:[#allocation24_spill] sm:$0xff] }
 0x692   : > { %v2988_v15 = vadd.f32 1.0, %v4425_v22  ;;  %v4427_v12 = vpop.eup %4426  ;;  %v2319_v22 = vadd.f32 %v5502_v31, %v5297_v47 }
 0x693   : > { %v2985_v39 = vmul.f32 0.5, %v2984_v45  ;;  %v4429_v46 = vpop.eup %4428  ;;  %v5503_v45 = vld [vmem:[#allocation17_spill] sm:$0xff] }
 0x694   : > { %v2989_v41 = vmul.f32 0.5, %v2988_v15  ;;  %v2993_v40 = vadd.f32 1.0, %v4429_v46  ;;  %v2372_v15 = vadd.f32 %v5503_v45, %v5301_v6 }
 0x695   : > { %v2997_v35 = vmul.f32 %v4427_v12, %v2985_v39 }
 0x696   : > { %v2996_v23 = vmul.f32 %v2989_v41, %v5311_v28  ;;  %v2994_v9 = vmul.f32 0.5, %v2993_v40 }
 0x698   : > { %v5361_v11 = vadd.f32 %v2997_v35, %v2996_v23 }
 0x69a   : > { %4430 = vtanh.f32 %v5361_v11 }
 0x6a4   : > { %v4431_v19 = vpop.eup %4430 }
 0x6a5   : > { %v3000_v20 = vmul.f32 %v4431_v19, %v2994_v9 }
 0x6a7   : > { %v4118_v21 = vpack.c.bf16 %v3000_v20, %v5314_v43  ;;  %v3009_v37 = vpack.c.bf16 %v3000_v20, %v3000_v20 }
 0x6a9   : > { %4119 = vst [vmem:[%s4812_s17] sm:$0xff] %v4118_v21   ;;  %3235 = vmatmul.mubr.bf16.vlgmr.msra.gmra.mrb[40].mxu0 %v3009_v37  ;;  %3276 = vmatmul.mubr.bf16.vlgmr.msra.gmra.mrb[40].mxu1 %v3009_v37 }
 0x6aa   : > { %3509 = vmatpush1.bf16.msra.mxu0 %v5116_v51  ;;  %3550 = vmatpush1.bf16.msra.mxu1 %v5118_v52  ;;  %v5497_v52 = vld [vmem:[#allocation19_spill] sm:$0xff] }
 0x6ab   : > { %3510 = vmatprep.subr.bf16.mxu0 %v5124_v8  ;;  %3551 = vmatprep.subr.bf16.mxu1 %v5126_v10  ;;  %v2366_v8 = vadd.f32 %v5497_v52, %v5289_v44  ;;  %v5498_v10 = vld [vmem:[#allocation20_spill] sm:$0xff] }
 0x6ac   : > { %3540 = vmatprep.mubr.bf16.mxu0 %v5475_v25  ;;  %3581 = vmatprep.mubr.bf16.mxu1 %v5475_v25  ;;  %v5496_v25 = vld [vmem:[#allocation18_spill] sm:$0xff] }
 0x6ad   : > { %v2313_v51 = vadd.f32 %v5496_v25, %v5285_v42 }
 0x6ae   : > { %3511 = vmatpush1.bf16.msra.mxu0 %v5128_v53  ;;  %3552 = vmatpush1.bf16.msra.mxu1 %v5130_v54  ;;  %v2315_v53 = vadd.f32 %v5498_v10, %v5297_v47  ;;  %v5499_v54 = vld [vmem:[#allocation21_spill] sm:$0xff] }
 0x6af   : > { %3512 = vmatprep.subr.bf16.mxu0 %v5136_v55  ;;  %3553 = vmatprep.subr.bf16.mxu1 %v5138_v56  ;;  %v2368_v55 = vadd.f32 %v5499_v54, %v5301_v6 }
 0x6b2   : > { %3513 = vmatpush1.bf16.msra.mxu0 %v5140_v57  ;;  %3554 = vmatpush1.bf16.msra.mxu1 %v5142_v58 }
 0x6b3   : > { %3514 = vmatprep.subr.bf16.mxu0 %v5146_v59  ;;  %3555 = vmatprep.subr.bf16.mxu1 %v5154_v62 }
 0x6b6   : > { %3515 = vmatpush1.bf16.msra.mxu0 %v5150_v60  ;;  %3556 = vmatpush1.bf16.msra.mxu1 %v5152_v61 }
 0x6b7   : > { %3516 = vmatprep.subr.bf16.mxu0 %v5160_v63  ;;  %3557 = vmatprep.subr.bf16.mxu1 %v5162_v0 }
 0x6ba   : > { %3517 = vmatpush1.bf16.msra.mxu0 %v5164_v1  ;;  %3558 = vmatpush1.bf16.msra.mxu1 %v5166_v2 }
 0x6bb   : > { %3518 = vmatprep.subr.bf16.mxu0 %v5172_v3  ;;  %3559 = vmatprep.subr.bf16.mxu1 %v5174_v4 }
 0x6be   : > { %3519 = vmatpush1.bf16.msra.mxu0 %v5176_v5  ;;  %3560 = vmatpush1.bf16.msra.mxu1 %v5178_v7 }
 0x6bf   : > { %3520 = vmatprep.subr.bf16.mxu0 %v5184_v30  ;;  %3561 = vmatprep.subr.bf16.mxu1 %v5186_v34 }
 0x6c2   : > { %3521 = vmatpush1.bf16.msra.mxu0 %v5188_v36  ;;  %3562 = vmatpush1.bf16.msra.mxu1 %v5190_v48 }
 0x6c3   : > { %3522 = vmatprep.subr.bf16.mxu0 %v5194_v14  ;;  %3563 = vmatprep.subr.bf16.mxu1 %v5196_v26 }
 0x6c6   : > { %3523 = vmatpush1.bf16.msra.mxu0 %v5200_v17  ;;  %3564 = vmatpush1.bf16.msra.mxu1 %v5202_v18 }
 0x77c   : > { %v3236_v56 = vpop.f32.mrb[40].mxu0  ;;  %v3277_v57 = vpop.f32.mrb[40].mxu1 }
 0x77d   : > { %v3284_v58 = vadd.f32 %v3236_v56, %v2313_v51  ;;  %v3286_v59 = vadd.f32 %v3277_v57, %v2366_v8  ;;  %v3238_v60 = vpop.f32.mrb[41].mxu0  ;;  %v3279_v61 = vpop.f32.mrb[41].mxu1 }
 0x77e   : > { %v3285_v62 = vadd.f32 %v3238_v60, %v2315_v53  ;;  %v3287_v63 = vadd.f32 %v3279_v61, %v2368_v55  ;;  %v3240_v0 = vpop.f32.mrb[42].mxu0  ;;  %v3281_v1 = vpop.f32.mrb[42].mxu1 }
 0x77f   : > { %v3288_v2 = vmul.f32 0.5, %v3284_v58  ;;  %v3241_v3 = vpop.f32.mrb[43].mxu0  ;;  %v3282_v4 = vpop.f32.mrb[43].mxu1  ;;  %v3648_v0 = vld [vmem:[#allocation5] sm:$0xff] (!%p4108_p9) }
 0x780   : > { %v3292_v5 = vmul.f32 0.5, %v3285_v62  ;;  %v3297_v7 = vmul.f32 0.5, %v3287_v63  ;;  %v3644_v62 = vld [vmem:[#allocation4] sm:$0xff] (!%p4108_p9)  ;;  %3650 = vst [vmem:[%s5443_s11] sm:$0xff] (!%p4108_p9), %v3648_v0 }
 0x781   : > { %4432 = vtanh.f32 %v3288_v2  ;;  %3646 = vst [vmem:[%s5442_s10] sm:$0xff] (!%p4108_p9), %v3644_v62 }
 0x782   : > { %4434 = vtanh.f32 %v3292_v5 }
 0x783   : > { %4436 = vtanh.f32 %v3286_v59 }
 0x784   : > { %4438 = vtanh.f32 %v3297_v7 }
 0x78b   : > { %v4433_v30 = vpop.eup %4432 }
 0x78c   : > { %v4435_v34 = vpop.eup %4434  ;;  %v3290_v36 = vadd.f32 1.0, %v4433_v30 }
 0x78d   : > { %v3294_v48 = vadd.f32 1.0, %v4435_v34  ;;  %v4437_v26 = vpop.eup %4436 }
 0x78e   : > { %v3291_v14 = vmul.f32 0.5, %v3290_v36  ;;  %v4439_v49 = vpop.eup %4438 }
 0x78f   : > { %v3295_v17 = vmul.f32 0.5, %v3294_v48  ;;  %v3299_v38 = vadd.f32 1.0, %v4439_v49 }
 0x790   : > { %v3303_v18 = vmul.f32 %v4437_v26, %v3291_v14 }
 0x791   : > { %v3302_v28 = vmul.f32 %v3295_v17, %v5361_v11  ;;  %v3300_v50 = vmul.f32 0.5, %v3299_v38 }
 0x793   : > { %v3304_v43 = vadd.f32 %v3303_v18, %v3302_v28 }
 0x795   : > { %4440 = vtanh.f32 %v3304_v43 }
 0x79f   : > { %v4441_v29 = vpop.eup %4440 }
 0x7a0   : > { %v3306_v13 = vmul.f32 %v4441_v29, %v3300_v50 }
 0x7a2   : > { %v3315_v27 = vpack.c.bf16 %v3306_v13, %v3306_v13 }
 0x7a4   : > { %3541 = vmatmul.mubr.bf16.vlgmr.msra.gmra.mrb[44].mxu0 %v3315_v27  ;;  %3582 = vmatmul.mubr.bf16.vlgmr.msra.gmra.mrb[44].mxu1 %v3315_v27 }
 0x877   : > { %v3542_v39 = vpop.f32.mrb[44].mxu0  ;;  %v3583_v12 = vpop.f32.mrb[44].mxu1 }
 0x878   : > { %v3590_v41 = vadd.f32 %v3542_v39, %v2317_v33  ;;  %v3592_v35 = vadd.f32 %v3583_v12, %v2370_v24  ;;  %v3544_v23 = vpop.f32.mrb[45].mxu0  ;;  %v3585_v11 = vpop.f32.mrb[45].mxu1 }
 0x879   : > { %v3591_v46 = vadd.f32 %v3544_v23, %v2319_v22  ;;  %v3593_v40 = vadd.f32 %v3585_v11, %v2372_v15  ;;  %v3546_v9 = vpop.f32.mrb[46].mxu0  ;;  %v3587_v19 = vpop.f32.mrb[46].mxu1 }
 0x87a   : > { %v3594_v42 = vmul.f32 0.5, %v3590_v41  ;;  %v3547_v20 = vpop.f32.mrb[47].mxu0  ;;  %v3588_v21 = vpop.f32.mrb[47].mxu1 }
 0x87b   : > { %v3598_v44 = vmul.f32 0.5, %v3591_v46  ;;  %v3603_v47 = vmul.f32 0.5, %v3593_v40 }
 0x87c   : > { %4442 = vtanh.f32 %v3594_v42 }
 0x87d   : > { %4444 = vtanh.f32 %v3598_v44 }
 0x87e   : > { %4446 = vtanh.f32 %v3592_v35 }
 0x87f   : > { %4448 = vtanh.f32 %v3603_v47 }
 0x886   : > { %v4443_v37 = vpop.eup %4442 }
 0x887   : > { %v4445_v6 = vpop.eup %4444  ;;  %v3596_v25 = vadd.f32 1.0, %v4443_v37 }
 0x888   : > { %v3600_v51 = vadd.f32 1.0, %v4445_v6  ;;  %v4447_v8 = vpop.eup %4446 }
 0x889   : > { %v3597_v52 = vmul.f32 0.5, %v3596_v25  ;;  %v4449_v56 = vpop.eup %4448 }
 0x88a   : > { %v3601_v10 = vmul.f32 0.5, %v3600_v51  ;;  %v3605_v57 = vadd.f32 1.0, %v4449_v56 }
 0x88b   : > { %v3609_v53 = vmul.f32 %v4447_v8, %v3597_v52 }
 0x88c   : > { %v3608_v54 = vmul.f32 %v3601_v10, %v3304_v43  ;;  %v3606_v58 = vmul.f32 0.5, %v3605_v57 }
 0x88e   : > { %v3610_v55 = vadd.f32 %v3609_v53, %v3608_v54 }
 0x890   : > { %4450 = vtanh.f32 %v3610_v55  ;;  %3613 = vst [vmem:[#allocation5 + $0x8] sm:$0xff] %v3610_v55 }
 0x897   : > { %v3649_v1 = vld [vmem:[#allocation5 + $0x8] sm:$0xff] (!%p4108_p9) }
 0x898   : > { %3651 = vst [vmem:[%s5443_s11 + $0x8] sm:$0xff] (!%p4108_p9), %v3649_v1 }
 0x899   : > { %3643 = sbr.rel (%p4108_p9) target bundleno = 2214 (0x8a6), region = 80 }
 0x89a   : > { %v4451_v59 = vpop.eup %4450 }
 0x89b   : > { %v3612_v60 = vmul.f32 %v4451_v59, %v3606_v58 }
 0x89d   : > { %3614 = vst [vmem:[#allocation4 + $0x8] sm:$0xff] %v3612_v60  ;;  %v4123_v61 = vpack.c.bf16 %v3612_v60, %v3306_v13 }
 0x89f   : > { %4125 = vst [vmem:[%s4812_s17 + $0x8] sm:$0xff] %v4123_v61  }
 0x8a4   : > { %v3645_v63 = vld [vmem:[#allocation4 + $0x8] sm:$0xff] }
 0x8a5   : > { %3647 = vst [vmem:[%s5442_s10 + $0x8] sm:$0xff] %v3645_v63 }
 0x8a6 PF: > { %s5504_s18 = sld [smem:[#allocation16_spill]] }
 0x8ac   : > { %s25_s17 = sadd.s32 1, %s5504_s18  }
 0x8ad   : > { %p22_p2 = scmp.ge.s32.totalorder %s25_s17, 4  }
 0x8af   :  { %24 = sbr.rel (!%p22_p2) target bundleno = 3 (0x3), region = 136 }
 0x8b6   :  { %3686 = vsyncpa [#allocation7], 1 }
 0x8b7   :  { %3688 = vsyncpa [#allocation7 + $0x1], 1 }
 0x8b8   :  { %3689 = vsyncpa [#allocation9], 1 }
 0x8b9   :  { %3690 = vsyncpa [#allocation12], 1 }

</bundles_post_ra>
